<compile_context>
chip_gen: v7x
topology: tpu7x:2x2x1
jax: 0.10.0
libtpu: 0.0.40
codegen_flags: <defaults>
</compile_context>

<pallas_src>
import jax
import jax.numpy as jnp
from jax.experimental import pallas as pl
from jax.experimental.pallas import tpu as pltpu

BN_EPS = 1e-5
NORM_EPS = 1e-12


# ---------------------------------------------------------------------------
# In-kernel MLPHead: Linear -> BatchNorm1d(train, batch stats) -> ReLU -> Linear
# One-pass BN with folded scale/shift; matmul operands bf16, accumulation f32.
# ---------------------------------------------------------------------------
def _mlp_head(a_f32, w1_bf16, b1, gamma, beta, w2_bf16, b2):
    h = jnp.dot(a_f32.astype(jnp.bfloat16), w1_bf16,
                preferred_element_type=jnp.float32) + b1           # [B, H] f32
    mean = jnp.mean(h, axis=0, keepdims=True)                      # [1, H]
    mean_sq = jnp.mean(h * h, axis=0, keepdims=True)               # [1, H]
    var = jnp.maximum(mean_sq - mean * mean, 0.0)                  # clamp: no cancellation blowup
    scale = gamma * jax.lax.rsqrt(var + BN_EPS)                    # [1, H]
    shift = beta - mean * scale                                    # [1, H]
    act = jnp.maximum(h * scale + shift, 0.0)                      # BN + ReLU, one FMA pass
    return jnp.dot(act.astype(jnp.bfloat16), w2_bf16,
                   preferred_element_type=jnp.float32) + b2        # [B, out] f32


# ---------------------------------------------------------------------------
# Fused BYOL kernel.  grid=(2,): step 0 = online(x1) (backbone->head->predictor,
# stash z1); step 1 = target(x2) (backbone->head) + loss epilogue.
# ---------------------------------------------------------------------------
def _byol_kernel(x1_ref, x2_ref,
                 bbw_ref, bbb_ref,
                 hw1_ref, hb1_ref, hg_ref, hbt_ref, hw2_ref, hb2_ref,
                 pw1_ref, pb1_ref, pg_ref, pbt_ref, pw2_ref, pb2_ref,
                 loss_ref,
                 pooled_scr, z1_scr):
    branch = pl.program_id(0)

    # ---- stand-in backbone: global average pool over HW (branch-selected
    #      input read under pl.when so only one big tensor is touched/step) ----
    @pl.when(branch == 0)
    def _():
        pooled_scr[...] = jnp.mean(x1_ref[...].astype(jnp.float32), axis=-1)

    @pl.when(branch == 1)
    def _():
        pooled_scr[...] = jnp.mean(x2_ref[...].astype(jnp.float32), axis=-1)

    pooled = pooled_scr[...]                                       # [B, C] f32
    bbw = bbw_ref[...]                                             # [C, 512] f32

    # ---- Linear(C -> 512): K=C is degenerate for the MXU, so do an unrolled
    #      VPU multiply-accumulate for small C (bf16 MXU fallback otherwise).
    C = pooled.shape[1]
    if C <= 16:
        feat = bbb_ref[...]                                        # (1, 512) -> broadcasts to (B, 512)
        for c in range(C):
            feat = feat + pooled[:, c:c + 1] * bbw[c:c + 1, :]
    else:
        feat = jnp.dot(pooled.astype(jnp.bfloat16), bbw.astype(jnp.bfloat16),
                       preferred_element_type=jnp.float32) + bbb_ref[...]

    # ---- projection head (per-branch weights selected by BlockSpec) ----
    p = _mlp_head(feat, hw1_ref[...], hb1_ref[...], hg_ref[...], hbt_ref[...],
                  hw2_ref[...], hb2_ref[...])                      # [B, out] f32

    # ---- online branch: predictor, stash z1 in VMEM scratch ----
    @pl.when(branch == 0)
    def _():
        z1_scr[...] = _mlp_head(p, pw1_ref[...], pb1_ref[...], pg_ref[...],
                                pbt_ref[...], pw2_ref[...], pb2_ref[...])

    # ---- target branch: z2 = p, then fused loss epilogue ----
    @pl.when(branch == 1)
    def _():
        z1 = z1_scr[...]
        z2 = p
        # F.normalize(x) = x / max(||x||, eps) == x * rsqrt(max(||x||^2, eps^2))
        inv1 = jax.lax.rsqrt(jnp.maximum(
            jnp.sum(z1 * z1, axis=-1, keepdims=True), NORM_EPS * NORM_EPS))
        inv2 = jax.lax.rsqrt(jnp.maximum(
            jnp.sum(z2 * z2, axis=-1, keepdims=True), NORM_EPS * NORM_EPS))
        sim = jnp.sum(z1 * z2, axis=-1, keepdims=True) * inv1 * inv2   # [B, 1]
        loss_ref[...] = 2.0 - 2.0 * jnp.mean(sim, axis=0, keepdims=True)  # (1, 1)


# ---------------------------------------------------------------------------
# Parameter construction (deterministic, PyTorch-style Linear init).
# Encoder params are stacked [2, ...]: 0 = online, 1 = target
# (target_encoder = deepcopy(online_encoder) -> identical at init).
# ---------------------------------------------------------------------------
def _linear_params(key, in_dim, out_dim):
    kw, kb = jax.random.split(key)
    bound = 1.0 / jnp.sqrt(jnp.float32(in_dim))
    w = jax.random.uniform(kw, (in_dim, out_dim), jnp.float32, -bound, bound)
    b = jax.random.uniform(kb, (1, out_dim), jnp.float32, -bound, bound)
    return w, b


def _mlp_head_params(key, in_dim, hidden_dim, out_dim):
    k1, k2 = jax.random.split(key)
    w1, b1 = _linear_params(k1, in_dim, hidden_dim)
    gamma = jnp.ones((1, hidden_dim), jnp.float32)    # BatchNorm1d weight
    beta = jnp.zeros((1, hidden_dim), jnp.float32)    # BatchNorm1d bias
    w2, b2 = _linear_params(k2, hidden_dim, out_dim)
    return w1, b1, gamma, beta, w2, b2


def init_byol_params(key, in_channels, feat_dim=512, hidden_dim=1024, out_dim=256):
    kb, kh, kp = jax.random.split(key, 3)
    bb_w, bb_b = _linear_params(kb, in_channels, feat_dim)
    hw1, hb1, hg, hbt, hw2, hb2 = _mlp_head_params(kh, feat_dim, hidden_dim, out_dim)
    pw1, pb1, pg, pbt, pw2, pb2 = _mlp_head_params(kp, out_dim, hidden_dim, out_dim)

    def stack2(a):
        return jnp.stack([a, a], axis=0)

    return {
        # branch-stacked encoder params
        "backbone_w": stack2(bb_w),                       # f32 (small-K VPU MAC)
        "backbone_b": stack2(bb_b),
        "head_w1": stack2(hw1).astype(jnp.bfloat16),      # bf16 MXU operand
        "head_b1": stack2(hb1),
        "head_gamma": stack2(hg),
        "head_beta": stack2(hbt),
        "head_w2": stack2(hw2).astype(jnp.bfloat16),
        "head_b2": stack2(hb2),
        # predictor (online branch only)
        "pred_w1": pw1.astype(jnp.bfloat16),
        "pred_b1": pb1,
        "pred_gamma": pg,
        "pred_beta": pbt,
        "pred_w2": pw2.astype(jnp.bfloat16),
        "pred_b2": pb2,
    }


# ---------------------------------------------------------------------------
# BYOL forward: one fused pallas_call -> scalar loss
# ---------------------------------------------------------------------------
@jax.jit
def byol_forward(params, x1, x2):
    B, C, H, W = x1.shape
    out_dim = params["head_w2"].shape[-1]
    # Free metadata reshape (merge trailing dims); keep native dtype — no
    # wrapper-side concat or upcast (HBM traffic stays 1x input bytes).
    x1r = x1.reshape(B, C, H * W)
    x2r = x2.reshape(B, C, H * W)

    args = (x1r, x2r,
            params["backbone_w"], params["backbone_b"],
            params["head_w1"], params["head_b1"],
            params["head_gamma"], params["head_beta"],
            params["head_w2"], params["head_b2"],
            params["pred_w1"], params["pred_b1"],
            params["pred_gamma"], params["pred_beta"],
            params["pred_w2"], params["pred_b2"])

    def stacked_spec(a):
        # leading [2] branch dim squeezed away; other dims full-extent blocks
        zeros = (0,) * (a.ndim - 1)
        return pl.BlockSpec((pl.Squeezed(),) + a.shape[1:],
                            lambda b: (b,) + zeros)

    def shared_spec(a):
        # full array, constant index map -> DMA'd once, resident across steps
        zeros = (0,) * a.ndim
        return pl.BlockSpec(a.shape, lambda b: zeros)

    in_specs = [shared_spec(x1r), shared_spec(x2r)]
    in_specs += [stacked_spec(a) for a in args[2:10]]   # branch-stacked encoder
    in_specs += [shared_spec(a) for a in args[10:]]     # predictor params

    loss = pl.pallas_call(
        _byol_kernel,
        out_shape=jax.ShapeDtypeStruct((1, 1), jnp.float32),
        grid=(2,),                                      # branch axis (sequential)
        in_specs=in_specs,
        out_specs=pl.BlockSpec((1, 1), lambda b: (0, 0)),
        scratch_shapes=[pltpu.VMEM((B, C), jnp.float32),        # pooled features
                        pltpu.VMEM((B, out_dim), jnp.float32)],  # z1 carry
        compiler_params=pltpu.CompilerParams(
            # "arbitrary": the loss needs z1 carried from step 0 to step 1 in
            # VMEM scratch, so the branch axis must run sequentially.
            dimension_semantics=("arbitrary",),
            vmem_limit_bytes=32 * 1024 * 1024),         # safe on v5e/v6e/v7x
    )(*args)
    return loss[0, 0]


if __name__ == "__main__":
    key = jax.random.PRNGKey(0)
    k_params, k1, k2 = jax.random.split(key, 3)

    B, C, H, W = 2, 4, 16, 16
    x1 = jax.random.normal(k1, (B, C, H, W), jnp.float32)
    x2 = jax.random.normal(k2, (B, C, H, W), jnp.float32)

    params = init_byol_params(k_params, in_channels=C,
                              feat_dim=512, hidden_dim=1024, out_dim=256)

    loss = byol_forward(params, x1, x2)
    jax.block_until_ready(loss)
    assert loss.shape == () and loss.dtype == jnp.float32
    print("KERNEL_OK")
</pallas_src>

<mosaic_0001>
module attributes {stable_mosaic.version = 11 : i64} {
  func.func @_byol_kernel(%arg0: i32, %arg1: memref<2x4x256xf32, #tpu.memory_space<vmem>>, %arg2: memref<2x4x256xf32, #tpu.memory_space<vmem>>, %arg3: memref<1x4x512xf32, #tpu.memory_space<vmem>>, %arg4: memref<1x1x512xf32, #tpu.memory_space<vmem>>, %arg5: memref<1x512x1024xbf16, #tpu.memory_space<vmem>>, %arg6: memref<1x1x1024xf32, #tpu.memory_space<vmem>>, %arg7: memref<1x1x1024xf32, #tpu.memory_space<vmem>>, %arg8: memref<1x1x1024xf32, #tpu.memory_space<vmem>>, %arg9: memref<1x1024x256xbf16, #tpu.memory_space<vmem>>, %arg10: memref<1x1x256xf32, #tpu.memory_space<vmem>>, %arg11: memref<256x1024xbf16, #tpu.memory_space<vmem>>, %arg12: memref<1x1024xf32, #tpu.memory_space<vmem>>, %arg13: memref<1x1024xf32, #tpu.memory_space<vmem>>, %arg14: memref<1x1024xf32, #tpu.memory_space<vmem>>, %arg15: memref<1024x256xbf16, #tpu.memory_space<vmem>>, %arg16: memref<1x256xf32, #tpu.memory_space<vmem>>, %arg17: memref<1x1xf32, #tpu.memory_space<vmem>>, %arg18: memref<2x4xf32, #tpu.memory_space<vmem>>, %arg19: memref<2x256xf32, #tpu.memory_space<vmem>>) attributes {dimension_semantics = [#tpu.dimension_semantics<arbitrary>], iteration_bounds = array<i64: 2>, scalar_prefetch = 0 : i64, scratch_operands = 2 : i64, tpu.core_type = #tpu.core_type<tc>, window_params = [{pipeline_mode = #tpu.pipeline_mode<synchronous>, transform_indices = @transform_0, window_bounds = array<i64: 2, 4, 256>}, {pipeline_mode = #tpu.pipeline_mode<synchronous>, transform_indices = @transform_1, window_bounds = array<i64: 2, 4, 256>}, {transform_indices = @transform_2, window_bounds = array<i64: 1, 4, 512>}, {transform_indices = @transform_3, window_bounds = array<i64: 1, 1, 512>}, {transform_indices = @transform_4, window_bounds = array<i64: 1, 512, 1024>}, {transform_indices = @transform_5, window_bounds = array<i64: 1, 1, 1024>}, {transform_indices = @transform_6, window_bounds = array<i64: 1, 1, 1024>}, {transform_indices = @transform_7, window_bounds = array<i64: 1, 1, 1024>}, {transform_indices = @transform_8, window_bounds = array<i64: 1, 1024, 256>}, {transform_indices = @transform_9, window_bounds = array<i64: 1, 1, 256>}, {pipeline_mode = #tpu.pipeline_mode<synchronous>, transform_indices = @transform_10, window_bounds = array<i64: 256, 1024>}, {pipeline_mode = #tpu.pipeline_mode<synchronous>, transform_indices = @transform_11, window_bounds = array<i64: 1, 1024>}, {pipeline_mode = #tpu.pipeline_mode<synchronous>, transform_indices = @transform_12, window_bounds = array<i64: 1, 1024>}, {pipeline_mode = #tpu.pipeline_mode<synchronous>, transform_indices = @transform_13, window_bounds = array<i64: 1, 1024>}, {pipeline_mode = #tpu.pipeline_mode<synchronous>, transform_indices = @transform_14, window_bounds = array<i64: 1024, 256>}, {pipeline_mode = #tpu.pipeline_mode<synchronous>, transform_indices = @transform_15, window_bounds = array<i64: 1, 256>}, {pipeline_mode = #tpu.pipeline_mode<synchronous>, transform_indices = @transform_16, window_bounds = array<i64: 1, 1>}]} {
    %c0_i32 = arith.constant 0 : i32
    %0 = arith.cmpi eq, %arg0, %c0_i32 : i32
    %1 = arith.extui %0 : i1 to i32
    %c0_i32_0 = arith.constant 0 : i32
    %2 = arith.cmpi ne, %1, %c0_i32_0 : i32
    scf.if %2 {
      %c0_39 = arith.constant 0 : index
      %c0_40 = arith.constant 0 : index
      %c0_41 = arith.constant 0 : index
      %87 = vector.load %arg1[%c0_39, %c0_40, %c0_41] : memref<2x4x256xf32, #tpu.memory_space<vmem>>, vector<2x4x256xf32>
      %cst_42 = arith.constant dense<0.000000e+00> : vector<2x4xf32>
      %88 = vector.multi_reduction <add>, %87, %cst_42 [2] : vector<2x4x256xf32> to vector<2x4xf32>
      %cst_43 = arith.constant 2.560000e+02 : f32
      %89 = vector.broadcast %cst_43 : f32 to vector<2x4xf32>
      %90 = arith.divf %88, %89 : vector<2x4xf32>
      %c0_44 = arith.constant 0 : index
      %c0_45 = arith.constant 0 : index
      %91 = vector.load %arg18[%c0_44, %c0_45] : memref<2x4xf32, #tpu.memory_space<vmem>>, vector<2x4xf32>
      tpu.vector_store %arg18[%c0_44, %c0_45], %90 {strides = array<i32>} : memref<2x4xf32, #tpu.memory_space<vmem>>, vector<2x4xf32>,
    } else {
    }
    %c1_i32 = arith.constant 1 : i32
    %3 = arith.cmpi eq, %arg0, %c1_i32 : i32
    %4 = arith.extui %3 : i1 to i32
    %c0_i32_1 = arith.constant 0 : i32
    %5 = arith.cmpi ne, %4, %c0_i32_1 : i32
    scf.if %5 {
      %c0_39 = arith.constant 0 : index
      %c0_40 = arith.constant 0 : index
      %c0_41 = arith.constant 0 : index
      %87 = vector.load %arg2[%c0_39, %c0_40, %c0_41] : memref<2x4x256xf32, #tpu.memory_space<vmem>>, vector<2x4x256xf32>
      %cst_42 = arith.constant dense<0.000000e+00> : vector<2x4xf32>
      %88 = vector.multi_reduction <add>, %87, %cst_42 [2] : vector<2x4x256xf32> to vector<2x4xf32>
      %cst_43 = arith.constant 2.560000e+02 : f32
      %89 = vector.broadcast %cst_43 : f32 to vector<2x4xf32>
      %90 = arith.divf %88, %89 : vector<2x4xf32>
      %c0_44 = arith.constant 0 : index
      %c0_45 = arith.constant 0 : index
      %91 = vector.load %arg18[%c0_44, %c0_45] : memref<2x4xf32, #tpu.memory_space<vmem>>, vector<2x4xf32>
      tpu.vector_store %arg18[%c0_44, %c0_45], %90 {strides = array<i32>} : memref<2x4xf32, #tpu.memory_space<vmem>>, vector<2x4xf32>,
    } else {
    }
    %c0 = arith.constant 0 : index
    %c0_2 = arith.constant 0 : index
    %6 = vector.load %arg18[%c0, %c0_2] : memref<2x4xf32, #tpu.memory_space<vmem>>, vector<2x4xf32>
    %c0_3 = arith.constant 0 : index
    %c0_4 = arith.constant 0 : index
    %c0_5 = arith.constant 0 : index
    %7 = vector.load %arg3[%c0_3, %c0_4, %c0_5] : memref<1x4x512xf32, #tpu.memory_space<vmem>>, vector<1x4x512xf32>
    %8 = vector.shape_cast %7 : vector<1x4x512xf32> to vector<4x512xf32>
    %c0_6 = arith.constant 0 : index
    %c0_7 = arith.constant 0 : index
    %c0_8 = arith.constant 0 : index
    %9 = vector.load %arg4[%c0_6, %c0_7, %c0_8] : memref<1x1x512xf32, #tpu.memory_space<vmem>>, vector<1x1x512xf32>
    %10 = vector.shape_cast %9 : vector<1x1x512xf32> to vector<1x512xf32>
    %11 = vector.extract_strided_slice %6 {offsets = [0, 0], sizes = [2, 1], strides = [1, 1]} : vector<2x4xf32> to vector<2x1xf32>
    %12 = vector.extract_strided_slice %8 {offsets = [0, 0], sizes = [1, 512], strides = [1, 1]} : vector<4x512xf32> to vector<1x512xf32>
    %13 = vector.broadcast %11 : vector<2x1xf32> to vector<2x512xf32>
    %14 = vector.broadcast %12 : vector<1x512xf32> to vector<2x512xf32>
    %15 = arith.mulf %13, %14 : vector<2x512xf32>
    %16 = vector.broadcast %10 : vector<1x512xf32> to vector<2x512xf32>
    %17 = arith.addf %16, %15 : vector<2x512xf32>
    %18 = vector.extract_strided_slice %6 {offsets = [0, 1], sizes = [2, 1], strides = [1, 1]} : vector<2x4xf32> to vector<2x1xf32>
    %19 = vector.extract_strided_slice %8 {offsets = [1, 0], sizes = [1, 512], strides = [1, 1]} : vector<4x512xf32> to vector<1x512xf32>
    %20 = vector.broadcast %18 : vector<2x1xf32> to vector<2x512xf32>
    %21 = vector.broadcast %19 : vector<1x512xf32> to vector<2x512xf32>
    %22 = arith.mulf %20, %21 : vector<2x512xf32>
    %23 = arith.addf %17, %22 : vector<2x512xf32>
    %24 = vector.extract_strided_slice %6 {offsets = [0, 2], sizes = [2, 1], strides = [1, 1]} : vector<2x4xf32> to vector<2x1xf32>
    %25 = vector.extract_strided_slice %8 {offsets = [2, 0], sizes = [1, 512], strides = [1, 1]} : vector<4x512xf32> to vector<1x512xf32>
    %26 = vector.broadcast %24 : vector<2x1xf32> to vector<2x512xf32>
    %27 = vector.broadcast %25 : vector<1x512xf32> to vector<2x512xf32>
    %28 = arith.mulf %26, %27 : vector<2x512xf32>
    %29 = arith.addf %23, %28 : vector<2x512xf32>
    %30 = vector.extract_strided_slice %6 {offsets = [0, 3], sizes = [2, 1], strides = [1, 1]} : vector<2x4xf32> to vector<2x1xf32>
    %31 = vector.extract_strided_slice %8 {offsets = [3, 0], sizes = [1, 512], strides = [1, 1]} : vector<4x512xf32> to vector<1x512xf32>
    %32 = vector.broadcast %30 : vector<2x1xf32> to vector<2x512xf32>
    %33 = vector.broadcast %31 : vector<1x512xf32> to vector<2x512xf32>
    %34 = arith.mulf %32, %33 : vector<2x512xf32>
    %35 = arith.addf %29, %34 : vector<2x512xf32>
    %c0_9 = arith.constant 0 : index
    %c0_10 = arith.constant 0 : index
    %c0_11 = arith.constant 0 : index
    %36 = vector.load %arg5[%c0_9, %c0_10, %c0_11] : memref<1x512x1024xbf16, #tpu.memory_space<vmem>>, vector<1x512x1024xbf16>
    %37 = vector.shape_cast %36 : vector<1x512x1024xbf16> to vector<512x1024xbf16>
    %c0_12 = arith.constant 0 : index
    %c0_13 = arith.constant 0 : index
    %c0_14 = arith.constant 0 : index
    %38 = vector.load %arg6[%c0_12, %c0_13, %c0_14] : memref<1x1x1024xf32, #tpu.memory_space<vmem>>, vector<1x1x1024xf32>
    %39 = vector.shape_cast %38 : vector<1x1x1024xf32> to vector<1x1024xf32>
    %c0_15 = arith.constant 0 : index
    %c0_16 = arith.constant 0 : index
    %c0_17 = arith.constant 0 : index
    %40 = vector.load %arg7[%c0_15, %c0_16, %c0_17] : memref<1x1x1024xf32, #tpu.memory_space<vmem>>, vector<1x1x1024xf32>
    %41 = vector.shape_cast %40 : vector<1x1x1024xf32> to vector<1x1024xf32>
    %c0_18 = arith.constant 0 : index
    %c0_19 = arith.constant 0 : index
    %c0_20 = arith.constant 0 : index
    %42 = vector.load %arg8[%c0_18, %c0_19, %c0_20] : memref<1x1x1024xf32, #tpu.memory_space<vmem>>, vector<1x1x1024xf32>
    %43 = vector.shape_cast %42 : vector<1x1x1024xf32> to vector<1x1024xf32>
    %c0_21 = arith.constant 0 : index
    %c0_22 = arith.constant 0 : index
    %c0_23 = arith.constant 0 : index
    %44 = vector.load %arg9[%c0_21, %c0_22, %c0_23] : memref<1x1024x256xbf16, #tpu.memory_space<vmem>>, vector<1x1024x256xbf16>
    %45 = vector.shape_cast %44 : vector<1x1024x256xbf16> to vector<1024x256xbf16>
    %c0_24 = arith.constant 0 : index
    %c0_25 = arith.constant 0 : index
    %c0_26 = arith.constant 0 : index
    %46 = vector.load %arg10[%c0_24, %c0_25, %c0_26] : memref<1x1x256xf32, #tpu.memory_space<vmem>>, vector<1x1x256xf32>
    %47 = vector.shape_cast %46 : vector<1x1x256xf32> to vector<1x256xf32>
    %48 = arith.truncf %35 : vector<2x512xf32> to vector<2x512xbf16>
    %cst = arith.constant dense<0.000000e+00> : vector<2x1024xf32>
    %49 = tpu.matmul %48, %37, %cst {dimension_numbers = #tpu.dot_dimension_numbers<[1], [0], [0], [1], [0, 0, 1, 1], [], []>} : vector<2x512xbf16>, vector<512x1024xbf16>, vector<2x1024xf32> -> vector<2x1024xf32>
    %50 = vector.broadcast %39 : vector<1x1024xf32> to vector<2x1024xf32>
    %51 = arith.addf %49, %50 : vector<2x1024xf32>
    %cst_27 = arith.constant dense<0.000000e+00> : vector<1024xf32>
    %52 = vector.multi_reduction <add>, %51, %cst_27 [0] : vector<2x1024xf32> to vector<1024xf32>
    %53 = vector.shape_cast %52 : vector<1024xf32> to vector<1x1024xf32>
    %cst_28 = arith.constant 2.000000e+00 : f32
    %54 = vector.broadcast %cst_28 : f32 to vector<1x1024xf32>
    %55 = arith.divf %53, %54 : vector<1x1024xf32>
    %56 = arith.mulf %51, %51 : vector<2x1024xf32>
    %cst_29 = arith.constant dense<0.000000e+00> : vector<1024xf32>
    %57 = vector.multi_reduction <add>, %56, %cst_29 [0] : vector<2x1024xf32> to vector<1024xf32>
    %58 = vector.shape_cast %57 : vector<1024xf32> to vector<1x1024xf32>
    %cst_30 = arith.constant 2.000000e+00 : f32
    %59 = vector.broadcast %cst_30 : f32 to vector<1x1024xf32>
    %60 = arith.divf %58, %59 : vector<1x1024xf32>
    %61 = arith.mulf %55, %55 : vector<1x1024xf32>
    %62 = arith.subf %60, %61 : vector<1x1024xf32>
    %cst_31 = arith.constant 0.000000e+00 : f32
    %63 = vector.broadcast %cst_31 : f32 to vector<1x1024xf32>
    %64 = arith.maximumf %62, %63 : vector<1x1024xf32>
    %cst_32 = arith.constant 9.99999974E-6 : f32
    %65 = vector.broadcast %cst_32 : f32 to vector<1x1024xf32>
    %66 = arith.addf %64, %65 : vector<1x1024xf32>
    %67 = math.rsqrt %66 : vector<1x1024xf32>
    %68 = arith.mulf %41, %67 : vector<1x1024xf32>
    %69 = arith.mulf %55, %68 : vector<1x1024xf32>
    %70 = arith.subf %43, %69 : vector<1x1024xf32>
    %71 = vector.broadcast %68 : vector<1x1024xf32> to vector<2x1024xf32>
    %72 = arith.mulf %51, %71 : vector<2x1024xf32>
    %73 = vector.broadcast %70 : vector<1x1024xf32> to vector<2x1024xf32>
    %74 = arith.addf %72, %73 : vector<2x1024xf32>
    %cst_33 = arith.constant 0.000000e+00 : f32
    %75 = vector.broadcast %cst_33 : f32 to vector<2x1024xf32>
    %76 = arith.maximumf %74, %75 : vector<2x1024xf32>
    %77 = arith.truncf %76 : vector<2x1024xf32> to vector<2x1024xbf16>
    %cst_34 = arith.constant dense<0.000000e+00> : vector<2x256xf32>
    %78 = tpu.matmul %77, %45, %cst_34 {dimension_numbers = #tpu.dot_dimension_numbers<[1], [0], [0], [1], [0, 0, 1, 1], [], []>} : vector<2x1024xbf16>, vector<1024x256xbf16>, vector<2x256xf32> -> vector<2x256xf32>
    %79 = vector.broadcast %47 : vector<1x256xf32> to vector<2x256xf32>
    %80 = arith.addf %78, %79 : vector<2x256xf32>
    %c0_i32_35 = arith.constant 0 : i32
    %81 = arith.cmpi eq, %arg0, %c0_i32_35 : i32
    %82 = arith.extui %81 : i1 to i32
    %c0_i32_36 = arith.constant 0 : i32
    %83 = arith.cmpi ne, %82, %c0_i32_36 : i32
    scf.if %83 {
      %c0_39 = arith.constant 0 : index
      %c0_40 = arith.constant 0 : index
      %87 = vector.load %arg11[%c0_39, %c0_40] : memref<256x1024xbf16, #tpu.memory_space<vmem>>, vector<256x1024xbf16>
      %c0_41 = arith.constant 0 : index
      %c0_42 = arith.constant 0 : index
      %88 = vector.load %arg12[%c0_41, %c0_42] : memref<1x1024xf32, #tpu.memory_space<vmem>>, vector<1x1024xf32>
      %c0_43 = arith.constant 0 : index
      %c0_44 = arith.constant 0 : index
      %89 = vector.load %arg13[%c0_43, %c0_44] : memref<1x1024xf32, #tpu.memory_space<vmem>>, vector<1x1024xf32>
      %c0_45 = arith.constant 0 : index
      %c0_46 = arith.constant 0 : index
      %90 = vector.load %arg14[%c0_45, %c0_46] : memref<1x1024xf32, #tpu.memory_space<vmem>>, vector<1x1024xf32>
      %c0_47 = arith.constant 0 : index
      %c0_48 = arith.constant 0 : index
      %91 = vector.load %arg15[%c0_47, %c0_48] : memref<1024x256xbf16, #tpu.memory_space<vmem>>, vector<1024x256xbf16>
      %c0_49 = arith.constant 0 : index
      %c0_50 = arith.constant 0 : index
      %92 = vector.load %arg16[%c0_49, %c0_50] : memref<1x256xf32, #tpu.memory_space<vmem>>, vector<1x256xf32>
      %93 = arith.truncf %80 : vector<2x256xf32> to vector<2x256xbf16>
      %cst_51 = arith.constant dense<0.000000e+00> : vector<2x1024xf32>
      %94 = tpu.matmul %93, %87, %cst_51 {dimension_numbers = #tpu.dot_dimension_numbers<[1], [0], [0], [1], [0, 0, 1, 1], [], []>} : vector<2x256xbf16>, vector<256x1024xbf16>, vector<2x1024xf32> -> vector<2x1024xf32>
      %95 = vector.broadcast %88 : vector<1x1024xf32> to vector<2x1024xf32>
      %96 = arith.addf %94, %95 : vector<2x1024xf32>
      %cst_52 = arith.constant dense<0.000000e+00> : vector<1024xf32>
      %97 = vector.multi_reduction <add>, %96, %cst_52 [0] : vector<2x1024xf32> to vector<1024xf32>
      %98 = vector.shape_cast %97 : vector<1024xf32> to vector<1x1024xf32>
      %cst_53 = arith.constant 2.000000e+00 : f32
      %99 = vector.broadcast %cst_53 : f32 to vector<1x1024xf32>
      %100 = arith.divf %98, %99 : vector<1x1024xf32>
      %101 = arith.mulf %96, %96 : vector<2x1024xf32>
      %cst_54 = arith.constant dense<0.000000e+00> : vector<1024xf32>
      %102 = vector.multi_reduction <add>, %101, %cst_54 [0] : vector<2x1024xf32> to vector<1024xf32>
      %103 = vector.shape_cast %102 : vector<1024xf32> to vector<1x1024xf32>
      %cst_55 = arith.constant 2.000000e+00 : f32
      %104 = vector.broadcast %cst_55 : f32 to vector<1x1024xf32>
      %105 = arith.divf %103, %104 : vector<1x1024xf32>
      %106 = arith.mulf %100, %100 : vector<1x1024xf32>
      %107 = arith.subf %105, %106 : vector<1x1024xf32>
      %cst_56 = arith.constant 0.000000e+00 : f32
      %108 = vector.broadcast %cst_56 : f32 to vector<1x1024xf32>
      %109 = arith.maximumf %107, %108 : vector<1x1024xf32>
      %cst_57 = arith.constant 9.99999974E-6 : f32
      %110 = vector.broadcast %cst_57 : f32 to vector<1x1024xf32>
      %111 = arith.addf %109, %110 : vector<1x1024xf32>
      %112 = math.rsqrt %111 : vector<1x1024xf32>
      %113 = arith.mulf %89, %112 : vector<1x1024xf32>
      %114 = arith.mulf %100, %113 : vector<1x1024xf32>
      %115 = arith.subf %90, %114 : vector<1x1024xf32>
      %116 = vector.broadcast %113 : vector<1x1024xf32> to vector<2x1024xf32>
      %117 = arith.mulf %96, %116 : vector<2x1024xf32>
      %118 = vector.broadcast %115 : vector<1x1024xf32> to vector<2x1024xf32>
      %119 = arith.addf %117, %118 : vector<2x1024xf32>
      %cst_58 = arith.constant 0.000000e+00 : f32
      %120 = vector.broadcast %cst_58 : f32 to vector<2x1024xf32>
      %121 = arith.maximumf %119, %120 : vector<2x1024xf32>
      %122 = arith.truncf %121 : vector<2x1024xf32> to vector<2x1024xbf16>
      %cst_59 = arith.constant dense<0.000000e+00> : vector<2x256xf32>
      %123 = tpu.matmul %122, %91, %cst_59 {dimension_numbers = #tpu.dot_dimension_numbers<[1], [0], [0], [1], [0, 0, 1, 1], [], []>} : vector<2x1024xbf16>, vector<1024x256xbf16>, vector<2x256xf32> -> vector<2x256xf32>
      %124 = vector.broadcast %92 : vector<1x256xf32> to vector<2x256xf32>
      %125 = arith.addf %123, %124 : vector<2x256xf32>
      %c0_60 = arith.constant 0 : index
      %c0_61 = arith.constant 0 : index
      %126 = vector.load %arg19[%c0_60, %c0_61] : memref<2x256xf32, #tpu.memory_space<vmem>>, vector<2x256xf32>
      tpu.vector_store %arg19[%c0_60, %c0_61], %125 {strides = array<i32>} : memref<2x256xf32, #tpu.memory_space<vmem>>, vector<2x256xf32>,
    } else {
    }
    %c1_i32_37 = arith.constant 1 : i32
    %84 = arith.cmpi eq, %arg0, %c1_i32_37 : i32
    %85 = arith.extui %84 : i1 to i32
    %c0_i32_38 = arith.constant 0 : i32
    %86 = arith.cmpi ne, %85, %c0_i32_38 : i32
    scf.if %86 {
      %c0_39 = arith.constant 0 : index
      %c0_40 = arith.constant 0 : index
      %87 = vector.load %arg19[%c0_39, %c0_40] : memref<2x256xf32, #tpu.memory_space<vmem>>, vector<2x256xf32>
      %88 = arith.mulf %87, %87 : vector<2x256xf32>
      %cst_41 = arith.constant dense<0.000000e+00> : vector<2xf32>
      %89 = vector.multi_reduction <add>, %88, %cst_41 [1] : vector<2x256xf32> to vector<2xf32>
      %90 = vector.shape_cast %89 : vector<2xf32> to vector<2x1xf32>
      %cst_42 = arith.constant 1.000000e-24 : f32
      %91 = vector.broadcast %cst_42 : f32 to vector<2x1xf32>
      %92 = arith.maximumf %90, %91 : vector<2x1xf32>
      %93 = math.rsqrt %92 : vector<2x1xf32>
      %94 = arith.mulf %80, %80 : vector<2x256xf32>
      %cst_43 = arith.constant dense<0.000000e+00> : vector<2xf32>
      %95 = vector.multi_reduction <add>, %94, %cst_43 [1] : vector<2x256xf32> to vector<2xf32>
      %96 = vector.shape_cast %95 : vector<2xf32> to vector<2x1xf32>
      %cst_44 = arith.constant 1.000000e-24 : f32
      %97 = vector.broadcast %cst_44 : f32 to vector<2x1xf32>
      %98 = arith.maximumf %96, %97 : vector<2x1xf32>
      %99 = math.rsqrt %98 : vector<2x1xf32>
      %100 = arith.mulf %87, %80 : vector<2x256xf32>
      %cst_45 = arith.constant dense<0.000000e+00> : vector<2xf32>
      %101 = vector.multi_reduction <add>, %100, %cst_45 [1] : vector<2x256xf32> to vector<2xf32>
      %102 = vector.shape_cast %101 : vector<2xf32> to vector<2x1xf32>
      %103 = arith.mulf %102, %93 : vector<2x1xf32>
      %104 = arith.mulf %103, %99 : vector<2x1xf32>
      %cst_46 = arith.constant dense<0.000000e+00> : vector<1xf32>
      %105 = vector.multi_reduction <add>, %104, %cst_46 [0] : vector<2x1xf32> to vector<1xf32>
      %106 = vector.shape_cast %105 : vector<1xf32> to vector<1x1xf32>
      %cst_47 = arith.constant 2.000000e+00 : f32
      %107 = vector.broadcast %cst_47 : f32 to vector<1x1xf32>
      %108 = arith.divf %106, %107 : vector<1x1xf32>
      %cst_48 = arith.constant 2.000000e+00 : f32
      %109 = vector.broadcast %cst_48 : f32 to vector<1x1xf32>
      %110 = arith.mulf %109, %108 : vector<1x1xf32>
      %cst_49 = arith.constant 2.000000e+00 : f32
      %111 = vector.broadcast %cst_49 : f32 to vector<1x1xf32>
      %112 = arith.subf %111, %110 : vector<1x1xf32>
      %c0_50 = arith.constant 0 : index
      %c0_51 = arith.constant 0 : index
      %113 = vector.load %arg17[%c0_50, %c0_51] : memref<1x1xf32, #tpu.memory_space<vmem>>, vector<1x1xf32>
      tpu.vector_store %arg17[%c0_50, %c0_51], %112 {strides = array<i32>} : memref<1x1xf32, #tpu.memory_space<vmem>>, vector<1x1xf32>,
    } else {
    }
    return
  }
  func.func @transform_0(%arg0: i32) -> (i32, i32, i32) {
    %c0_i32 = arith.constant 0 : i32
    %c0_i32_0 = arith.constant 0 : i32
    %c0_i32_1 = arith.constant 0 : i32
    %c0_i32_2 = arith.constant 0 : i32
    return %c0_i32, %c0_i32_0, %c0_i32_1 : i32, i32, i32
  }
  func.func @transform_1(%arg0: i32) -> (i32, i32, i32) {
    %c0_i32 = arith.constant 0 : i32
    %c0_i32_0 = arith.constant 0 : i32
    %c0_i32_1 = arith.constant 0 : i32
    %c0_i32_2 = arith.constant 0 : i32
    return %c0_i32, %c0_i32_0, %c0_i32_1 : i32, i32, i32
  }
  func.func @transform_2(%arg0: i32) -> (i32, i32, i32) {
    %c0_i32 = arith.constant 0 : i32
    %c0_i32_0 = arith.constant 0 : i32
    %c0_i32_1 = arith.constant 0 : i32
    return %arg0, %c0_i32, %c0_i32_0 : i32, i32, i32
  }
  func.func @transform_3(%arg0: i32) -> (i32, i32, i32) {
    %c0_i32 = arith.constant 0 : i32
    %c0_i32_0 = arith.constant 0 : i32
    %c0_i32_1 = arith.constant 0 : i32
    return %arg0, %c0_i32, %c0_i32_0 : i32, i32, i32
  }
  func.func @transform_4(%arg0: i32) -> (i32, i32, i32) {
    %c0_i32 = arith.constant 0 : i32
    %c0_i32_0 = arith.constant 0 : i32
    %c0_i32_1 = arith.constant 0 : i32
    return %arg0, %c0_i32, %c0_i32_0 : i32, i32, i32
  }
  func.func @transform_5(%arg0: i32) -> (i32, i32, i32) {
    %c0_i32 = arith.constant 0 : i32
    %c0_i32_0 = arith.constant 0 : i32
    %c0_i32_1 = arith.constant 0 : i32
    return %arg0, %c0_i32, %c0_i32_0 : i32, i32, i32
  }
  func.func @transform_6(%arg0: i32) -> (i32, i32, i32) {
    %c0_i32 = arith.constant 0 : i32
    %c0_i32_0 = arith.constant 0 : i32
    %c0_i32_1 = arith.constant 0 : i32
    return %arg0, %c0_i32, %c0_i32_0 : i32, i32, i32
  }
  func.func @transform_7(%arg0: i32) -> (i32, i32, i32) {
    %c0_i32 = arith.constant 0 : i32
    %c0_i32_0 = arith.constant 0 : i32
    %c0_i32_1 = arith.constant 0 : i32
    return %arg0, %c0_i32, %c0_i32_0 : i32, i32, i32
  }
  func.func @transform_8(%arg0: i32) -> (i32, i32, i32) {
    %c0_i32 = arith.constant 0 : i32
    %c0_i32_0 = arith.constant 0 : i32
    %c0_i32_1 = arith.constant 0 : i32
    return %arg0, %c0_i32, %c0_i32_0 : i32, i32, i32
  }
  func.func @transform_9(%arg0: i32) -> (i32, i32, i32) {
    %c0_i32 = arith.constant 0 : i32
    %c0_i32_0 = arith.constant 0 : i32
    %c0_i32_1 = arith.constant 0 : i32
    return %arg0, %c0_i32, %c0_i32_0 : i32, i32, i32
  }
  func.func @transform_10(%arg0: i32) -> (i32, i32) {
    %c0_i32 = arith.constant 0 : i32
    %c0_i32_0 = arith.constant 0 : i32
    %c0_i32_1 = arith.constant 0 : i32
    return %c0_i32, %c0_i32_0 : i32, i32
  }
  func.func @transform_11(%arg0: i32) -> (i32, i32) {
    %c0_i32 = arith.constant 0 : i32
    %c0_i32_0 = arith.constant 0 : i32
    %c0_i32_1 = arith.constant 0 : i32
    return %c0_i32, %c0_i32_0 : i32, i32
  }
  func.func @transform_12(%arg0: i32) -> (i32, i32) {
    %c0_i32 = arith.constant 0 : i32
    %c0_i32_0 = arith.constant 0 : i32
    %c0_i32_1 = arith.constant 0 : i32
    return %c0_i32, %c0_i32_0 : i32, i32
  }
  func.func @transform_13(%arg0: i32) -> (i32, i32) {
    %c0_i32 = arith.constant 0 : i32
    %c0_i32_0 = arith.constant 0 : i32
    %c0_i32_1 = arith.constant 0 : i32
    return %c0_i32, %c0_i32_0 : i32, i32
  }
  func.func @transform_14(%arg0: i32) -> (i32, i32) {
    %c0_i32 = arith.constant 0 : i32
    %c0_i32_0 = arith.constant 0 : i32
    %c0_i32_1 = arith.constant 0 : i32
    return %c0_i32, %c0_i32_0 : i32, i32
  }
  func.func @transform_15(%arg0: i32) -> (i32, i32) {
    %c0_i32 = arith.constant 0 : i32
    %c0_i32_0 = arith.constant 0 : i32
    %c0_i32_1 = arith.constant 0 : i32
    return %c0_i32, %c0_i32_0 : i32, i32
  }
  func.func @transform_16(%arg0: i32) -> (i32, i32) {
    %c0_i32 = arith.constant 0 : i32
    %c0_i32_0 = arith.constant 0 : i32
    %c0_i32_1 = arith.constant 0 : i32
    return %c0_i32, %c0_i32_0 : i32, i32
  }
}

</mosaic_0001>

<bundles_post_ra>
// kernel: byol_forward.1
= control target key start
LH: loop header
LB: loop body
LE: loop exit
PB: predicated region body
PF: predicated region fallthrough
CT: control target
= control target key end

     0   :  { %s10571_s0 = inlined_call_operand.vmem [shape: f32[2,4,256], index: 0, kind: input, shape index: {}]   ;;  %s10572_s1 = inlined_call_operand.vmem [shape: f32[2,4,256], index: 1, kind: input, shape index: {}]   ;;  %s10573_s2 = inlined_call_operand.hbm [shape: f32[2,4,512], index: 2, kind: input, shape index: {}]   ;;  %s10574_s3 = inlined_call_operand.hbm [shape: f32[2,1,512], index: 3, kind: input, shape index: {}]   ;;  %s10575_s4 = inlined_call_operand.hbm [shape: bf16[2,512,1024], index: 4, kind: input, shape index: {}]   ;;  %s10576_s5 = inlined_call_operand.hbm [shape: f32[2,1,1024], index: 5, kind: input, shape index: {}]   ;;  %s10577_s6 = inlined_call_operand.hbm [shape: f32[2,1,1024], index: 6, kind: input, shape index: {}]   ;;  %s10578_s7 = inlined_call_operand.hbm [shape: f32[2,1,1024], index: 7, kind: input, shape index: {}]   ;;  %s10579_s8 = inlined_call_operand.hbm [shape: bf16[2,1024,256], index: 8, kind: input, shape index: {}]   ;;  %s10580_s9 = inlined_call_operand.hbm [shape: f32[2,1,256], index: 9, kind: input, shape index: {}]   ;;  %s10581_s10 = inlined_call_operand.hbm [shape: bf16[256,1024], index: 10, kind: input, shape index: {}]   ;;  %s10582_s11 = inlined_call_operand.hbm [shape: f32[1,1024], index: 11, kind: input, shape index: {}]   ;;  %s10583_s12 = inlined_call_operand.hbm [shape: f32[1,1024], index: 12, kind: input, shape index: {}]   ;;  %s10584_s13 = inlined_call_operand.hbm [shape: f32[1,1024], index: 13, kind: input, shape index: {}]   ;;  %s10585_s14 = inlined_call_operand.hbm [shape: bf16[1024,256], index: 14, kind: input, shape index: {}]   ;;  %s10586_s15 = inlined_call_operand.hbm [shape: f32[1,256], index: 15, kind: input, shape index: {}]   ;;  %s10587_s16 = inlined_call_operand.hbm [shape: f32[1,1], index: 16, kind: output, shape index: {}]  }
   0x1   :  { %10615 = sst [smem:[#allocation41_spill]] %s10571_s0 }
   0x2   :  { %10616 = sst [smem:[#allocation42_spill]] %s10572_s1 }
   0x3   :  { %10617 = sst [smem:[#allocation43_spill]] %s10574_s3 }
   0x4   :  { %10618 = sst [smem:[#allocation44_spill]] %s10575_s4 }
   0x5   :  { %10619 = sst [smem:[#allocation45_spill]] %s10576_s5 }
   0x6   :  { %10620 = sst [smem:[#allocation46_spill]] %s10577_s6 }
   0x7   :  { %10621 = sst [smem:[#allocation47_spill]] %s10578_s7 }
   0x8   :  { %10622 = sst [smem:[#allocation48_spill]] %s10579_s8 }
   0x9   :  { %10623 = sst [smem:[#allocation49_spill]] %s10580_s9 }
   0xa   :  { %10624 = sst [smem:[#allocation50_spill]] %s10581_s10 }
   0xb   :  { %10625 = sst [smem:[#allocation51_spill]] %s10582_s11 }
   0xc   :  { %10626 = sst [smem:[#allocation52_spill]] %s10583_s12 }
   0xd   :  { %10627 = sst [smem:[#allocation53_spill]] %s10584_s13 }
   0xe   :  { %10628 = sst [smem:[#allocation54_spill]] %s10587_s16 }
   0xf   :  { %21 = vsyncpa [#allocation5], 0 }
  0x10   :  { %23 = vsyncpa [#allocation5 + $0x1], 0 }
  0x11   :  { %24 = vsyncpa [#allocation8], 0 }
  0x12   :  { %26 = vsyncpa [#allocation8 + $0x1], 0 }
  0x13   :  { %27 = vsyncpa [#allocation11], 0 }
  0x14   :  { %29 = vsyncpa [#allocation11 + $0x1], 0 }
  0x15   :  { %30 = vsyncpa [#allocation14], 0 }
  0x16   :  { %32 = vsyncpa [#allocation14 + $0x1], 0 }
  0x17   :  { %33 = vsyncpa [#allocation17], 0 }
  0x18   :  { %35 = vsyncpa [#allocation17 + $0x1], 0 }
  0x19   :  { %36 = vsyncpa [#allocation20], 0 }
  0x1a   :  { %37 = vsyncpa [#allocation23], 0 }
  0x1b   :  { %38 = vsyncpa [#allocation26], 0 }
  0x1c   :  { %39 = vsyncpa [#allocation6], 0  ;;  %s9093_s21 = smov 0   ;;  %s9095_s22 = smov 0  }
  0x1d   :  { %s9097_s23 = smov 0   ;;  %s9099_s24 = smov 0  }
  0x1e LB: > { %10629 = sst [smem:[#allocation38_spill]] %s8977_s23  ;;  %s8983_s25 = smov [#allocation18]   ;;  %s8981_s24 = sphi %s9099_s24, %s10685_s24   ;;  %s8977_s23 = sphi %s9097_s23, %s10682_s23   ;;  %s8973_s22 = sphi %s9095_s22, %s10684_s22   ;;  %s8969_s21 = sphi %s9093_s21, %s10683_s21  }
  0x1f   : > { %s465_s26 = sshll.u32 %s8983_s25, 4  ;;  %s9114_s27 = sadd.s32 4294967295, %s8981_s24   ;;  %s9120_s26 = int_to_ptr.vmem [resolvable:$true] %s465_s26 }
  0x20   : > { %p7140_p0 = scmp.ge.s32.totalorder %s8981_s24, 1  ;;  %p10598_p1 = scmp.eq.s32.totalorder %s9114_s27, 0 }
  0x21   : > { %p447_p2 = scmp.lt.s32.totalorder %s8981_s24, 3  ;;  %s8984_s29 = smov [#allocation19]  }
  0x22   : > { %s479_s30 = sshll.u32 %s8984_s29, 4  ;;  %s8985_s17 = smov [#allocation22]   ;;  %s9134_s30 = int_to_ptr.vmem [resolvable:$true] %s479_s30 }
  0x23   : > { %p9122_p4 = pnand %p7140_p0, %p447_p2  ;;  %s501_s18 = sshll.u32 %s8985_s17, 4  ;;  %s9136_s18 = int_to_ptr.vmem [resolvable:$true] %s501_s18 }
  0x24   : > { %s10633_s10 = sld [smem:[#allocation50_spill]] }
  0x25   : > { %s10630_s28 = scalar_select %p9122_p4, 1, 0 }
  0x26   : > { %p7940_p5 = pneg %p9122_p4 }
  0x27   : > { %10631 = sst [smem:[#allocation39_spill]] %s10630_s28 }
  0x28   : > { %p9130_p6 = pnand %p7940_p5, %p10598_p1 }
  0x2a   : > { %s10632_s0 = scalar_select %p9130_p6, 1, 0 }
  0x2b   : > { %s8477_s25 = scalar_lea.hbm %s10633_s10, 16384  ;;  %p9146_p8 = pneg %p9130_p6 }
  0x2c   : > { %p8478_p7 = scmp.ne.s32.totalorder %s10633_s10, %s8477_s25  ;;  %p8484_p11 = scmp.lt.u32.totalorder %s8477_s25, %s10633_s10 }
  0x2d   : > { %s10634_s29 = scalar_select %p9146_p8, 1, 0 }
  0x2e   : > { %p8480_p9 = pnand %p9146_p8, %p8478_p7 }
  0x30   : > { %p8481_p10 = pneg %p8480_p9 }
  0x32   : > { %p8486_p12 = pnand %p8484_p11, %p8481_p10 }
  0x34   : > { %8489 = shalt.err (!%p8486_p12)
}
  0x35   : > { %s8490_s1 = scalar_lea.vmem %s9120_s26, 16384  ;;  %p8498_p5 = scmp.lt.s32.totalorder %s9120_s26, %s9120_s26 }
  0x36   : > { %p8491_p13 = scmp.ne.s32.totalorder %s9120_s26, %s8490_s1  ;;  %p8499_p3 = scmp.lt.s32.totalorder %s8490_s1, %s8490_s1 }
  0x38   : > { %p8493_p0 = pnand %p8491_p13, %p9146_p8  ;;  %p8500_p7 = por %p8499_p3, %p8498_p5 }
  0x3a   : > { %p8494_p2 = pneg %p8493_p0 }
  0x3c   : > { %p8501_p9 = pnand %p8500_p7, %p8494_p2 }
  0x3e   : > { %8504 = shalt.err (!%p8501_p9)
}
  0x3f   : > { %s10596_s16 = smov 512   ;;  %s10597_s28 = smov 32  }
  0x40   : > { %7943 = dma.hbm_to_vmem [thread:$0]  (!%p9130_p6), %s10633_s10, 16384, %s9120_s26, [#allocation17], %s10596_s16, %s10596_s16, %s10597_s28  }
  0x41   : > { %s10635_s11 = sld [smem:[#allocation51_spill]] }
  0x47   : > { %s8505_s1 = scalar_lea.hbm %s10635_s11, 128 }
  0x48   : > { %p8506_p3 = scmp.ne.s32.totalorder %s10635_s11, %s8505_s1  ;;  %p8512_p12 = scmp.lt.u32.totalorder %s8505_s1, %s10635_s11 }
  0x4a   : > { %p8508_p10 = pnand %p8506_p3, %p9146_p8 }
  0x4c   : > { %p8509_p11 = pneg %p8508_p10 }
  0x4e   : > { %p8514_p13 = pnand %p8512_p12, %p8509_p11 }
  0x50   : > { %8517 = shalt.err (!%p8514_p13)
}
  0x51   : > { %s8518_s26 = scalar_lea.vmem %s9134_s30, 128  ;;  %p8526_p7 = scmp.lt.s32.totalorder %s9134_s30, %s9134_s30 }
  0x52   : > { %p8519_p0 = scmp.ne.s32.totalorder %s9134_s30, %s8518_s26  ;;  %p8527_p9 = scmp.lt.s32.totalorder %s8518_s26, %s8518_s26 }
  0x54   : > { %p8521_p2 = pnand %p8519_p0, %p9146_p8  ;;  %p8528_p3 = por %p8527_p9, %p8526_p7 }
  0x56   : > { %p8522_p5 = pneg %p8521_p2 }
  0x58   : > { %p8529_p10 = pnand %p8528_p3, %p8522_p5 }
  0x5a   : > { %8532 = shalt.err (!%p8529_p10)
}
  0x5b   : > { %7946 = dma.hbm_to_vmem [thread:$0]  (!%p9130_p6), %s10635_s11, 128, %s9134_s30, [#allocation20]  }
  0x5c   : > { %s10636_s13 = sld [smem:[#allocation53_spill]] }
  0x62   : > { %s8533_s19 = scalar_lea.hbm %s10636_s13, 128 }
  0x63   : > { %p8534_p11 = scmp.ne.s32.totalorder %s10636_s13, %s8533_s19  ;;  %p8540_p0 = scmp.lt.u32.totalorder %s8533_s19, %s10636_s13 }
  0x65   : > { %p8536_p12 = pnand %p8534_p11, %p9146_p8 }
  0x67   : > { %p8537_p13 = pneg %p8536_p12 }
  0x69   : > { %p8542_p2 = pnand %p8540_p0, %p8537_p13 }
  0x6b   : > { %8545 = shalt.err (!%p8542_p2)
}
  0x6c   : > { %s8546_s30 = scalar_lea.vmem %s9136_s18, 128  ;;  %p8554_p3 = scmp.lt.s32.totalorder %s9136_s18, %s9136_s18 }
  0x6d   : > { %p8547_p5 = scmp.ne.s32.totalorder %s9136_s18, %s8546_s30  ;;  %p8555_p10 = scmp.lt.s32.totalorder %s8546_s30, %s8546_s30 }
  0x6f   : > { %p8549_p7 = pnand %p8547_p5, %p9146_p8  ;;  %p8556_p11 = por %p8555_p10, %p8554_p3 }
  0x71   : > { %p8550_p9 = pneg %p8549_p7 }
  0x73   : > { %p8557_p12 = pnand %p8556_p11, %p8550_p9 }
  0x75   : > { %8560 = shalt.err (!%p8557_p12)
}
  0x76   : > { %7952 = dma.hbm_to_vmem [thread:$0]  (!%p9130_p6), %s10636_s13, 128, %s9136_s18, [#allocation23]  }
  0x77   : > { %s9217_s6 = sadd.s32 1, %s8981_s24   ;;  %s94_s9 = sadd.s32 1, %s8977_s23 }
  0x78   : > { %s91_s8 = ssub.s32 %s8981_s24, %s9217_s6  ;;  %p101_p0 = scmp.ne.s32.totalorder %s8977_s23, %s8973_s22 }
  0x79   : > { %p92_p13 = scmp.eq.s32.totalorder %s91_s8, 0  ;;  %p102_p2 = scmp.eq.s32.totalorder %s8981_s24, 0 }
  0x7a   : > { %p107_p5 = scmp.ne.s32.totalorder %s8973_s22, %s8969_s21  ;;  %p7990_p3 = scmp.lt.s32.totalorder %s8981_s24, 2 }
  0x7b   : > { %s9228_s19 = scalar_select %p92_p13, %s8977_s23, %s94_s9  }
  0x7c   : > { %p103_p7 = por %p102_p2, %p101_p0  ;;  %p9232_p9 = por %p10598_p1, %p107_p5 }
  0x7d   : > { %10637 = sst [smem:[#allocation40_spill]] %s9228_s19  ;;  %s9238_s18 = sand.u32 1, %s8977_s23  }
  0x7e   : > { %s10638_s20 = scalar_select %p9232_p9, 1, 0 }
  0x7f   : > { %s9241_s25 = sand.u32 1, %s8981_s24   ;;  %s7151_s17 = sshll.u32 %s9238_s18, 2 }
  0x80   : > { %p9244_p10 = pnand %p7990_p3, %p103_p7  ;;  %s7837_s21 = sshll.u32 %s8981_s24, 6 }
  0x81   : > { %s10640_s3 = sld [smem:[#allocation43_spill]]  ;;  %s559_s8 = scalar_lea.vmem [#allocation7], %s7151_s17 }
  0x82   : > { %s10639_s1 = scalar_select %p9244_p10, 1, 0 }
  0x83   : > { %s567_s9 = sshll.u32 %s559_s8, 4  ;;  %s9257_s16 = sshll.u32 %s9238_s18, 3  ;;  %s9254_s9 = int_to_ptr.vmem [resolvable:$true] %s567_s9 }
  0x84   : > { %p9264_p12 = pneg %p9244_p10 }
  0x86   : > { %s10641_s11 = scalar_select %p9264_p12, 1, 0 }
  0x87   : > { %s9252_s4 = scalar_lea.hbm %s10640_s3, %s7837_s21  ;;  %s8566_s17 = scalar_lea.hbm %s10640_s3, 128 }
  0x88   : > { %s8561_s10 = scalar_lea.hbm %s9252_s4, 64  ;;  %p8567_p2 = scmp.lt.u32.totalorder %s9252_s4, %s10640_s3 }
  0x89   : > { %p8562_p11 = scmp.ne.s32.totalorder %s9252_s4, %s8561_s10  ;;  %p8568_p5 = scmp.lt.u32.totalorder %s8566_s17, %s8561_s10 }
  0x8a   : > { %p8570_p3 = scmp.lt.u32.totalorder %s8561_s10, %s9252_s4 }
  0x8b   : > { %p8564_p13 = pnand %p9264_p12, %p8562_p11  ;;  %p8569_p7 = por %p8568_p5, %p8567_p2 }
  0x8d   : > { %p8565_p0 = pneg %p8564_p13  ;;  %p8571_p1 = por %p8570_p3, %p8569_p7 }
  0x8f   : > { %p8572_p9 = pnand %p8571_p1, %p8565_p0 }
  0x91   : > { %8575 = shalt.err (!%p8572_p9)
}
  0x92   : > { %s8576_s28 = scalar_lea.vmem %s9254_s9, 64  ;;  %s8988_s21 = smov [#allocation7]  }
  0x93   : > { %p8577_p11 = scmp.ne.s32.totalorder %s9254_s9, %s8576_s28  ;;  %s8581_s30 = sshll.u32 %s8988_s21, 4  ;;  %s8582_s30 = int_to_ptr.vmem [resolvable:$false] %s8581_s30 }
  0x94   : > { %s8583_s26 = scalar_lea.vmem %s8582_s30, 128  ;;  %p8584_p6 = scmp.lt.s32.totalorder %s9254_s9, %s8582_s30 }
  0x95   : > { %p8579_p13 = pnand %p8577_p11, %p9264_p12  ;;  %p8585_p8 = scmp.lt.s32.totalorder %s8583_s26, %s8576_s28 }
  0x97   : > { %p8580_p4 = pneg %p8579_p13  ;;  %p8586_p2 = por %p8585_p8, %p8584_p6 }
  0x99   : > { %p8587_p5 = pnand %p8586_p2, %p8580_p4 }
  0x9b   : > { %8590 = shalt.err (!%p8587_p5)
}
  0x9c   : > { %s10642_s10 = scalar_lea.sflag [#allocation8], %s9241_s25  ;;  %s9290_s17 = sshll.u32 %s8981_s24, 7 }
  0x9d   : > { %7965 = dma.hbm_to_vmem [thread:$0]  (!%p9244_p10), %s9252_s4, 64, %s9254_s9, %s10642_s10  }
  0x9e   : > { %s10643_s5 = sld [smem:[#allocation45_spill]]  ;;  %s599_s30 = scalar_lea.vmem [#allocation10], %s9257_s16 }
  0x9f   : > { %s607_s26 = sshll.u32 %s599_s30, 4  ;;  %s608_s26 = int_to_ptr.vmem [resolvable:$true] %s607_s26 }
  0xa4   : > { %s9296_s28 = scalar_lea.hbm %s10643_s5, %s9290_s17  ;;  %s8596_s10 = scalar_lea.hbm %s10643_s5, 256 }
  0xa5   : > { %s8591_s13 = scalar_lea.hbm %s9296_s28, 128  ;;  %p8597_p8 = scmp.lt.u32.totalorder %s9296_s28, %s10643_s5 }
  0xa6   : > { %p8592_p1 = scmp.ne.s32.totalorder %s9296_s28, %s8591_s13  ;;  %p8598_p9 = scmp.lt.u32.totalorder %s8596_s10, %s8591_s13 }
  0xa7   : > { %p8600_p7 = scmp.lt.u32.totalorder %s8591_s13, %s9296_s28 }
  0xa8   : > { %p8594_p4 = pnand %p8592_p1, %p9264_p12  ;;  %p8599_p0 = por %p8598_p9, %p8597_p8 }
  0xaa   : > { %p8595_p6 = pneg %p8594_p4  ;;  %p8601_p3 = por %p8600_p7, %p8599_p0 }
  0xac   : > { %p8602_p11 = pnand %p8601_p3, %p8595_p6 }
  0xae   : > { %8605 = shalt.err (!%p8602_p11)
}
  0xaf   : > { %s8606_s30 = scalar_lea.vmem %s608_s26, 128  ;;  %s8989_s3 = smov [#allocation10]  }
  0xb0   : > { %p8607_p13 = scmp.ne.s32.totalorder %s608_s26, %s8606_s30  ;;  %s8611_s19 = sshll.u32 %s8989_s3, 4  ;;  %s8612_s19 = int_to_ptr.vmem [resolvable:$false] %s8611_s19 }
  0xb1   : > { %s8613_s4 = scalar_lea.vmem %s8612_s19, 256  ;;  %p8614_p1 = scmp.lt.s32.totalorder %s608_s26, %s8612_s19 }
  0xb2   : > { %p8609_p2 = pnand %p8607_p13, %p9264_p12  ;;  %p8615_p4 = scmp.lt.s32.totalorder %s8613_s4, %s8606_s30 }
  0xb4   : > { %p8610_p5 = pneg %p8609_p2  ;;  %p8616_p10 = por %p8615_p4, %p8614_p1 }
  0xb6   : > { %p8617_p8 = pnand %p8616_p10, %p8610_p5 }
  0xb8   : > { %8620 = shalt.err (!%p8617_p8)
}
  0xb9   : > { %p10644_p9 = scmp.ne.s32.totalorder %s10639_s1, 0  ;;  %s10645_s13 = scalar_lea.sflag [#allocation11], %s9241_s25 }
  0xba   : > { %s10646_s7 = sld [smem:[#allocation47_spill]]  ;;  %s637_s19 = scalar_lea.vmem [#allocation13], %s9257_s16 }
  0xbb   : > { %7971 = dma.hbm_to_vmem [thread:$0]  (!%p10644_p9), %s9296_s28, 128, %s608_s26, %s10645_s13  }
  0xbc   : > { %s645_s8 = sshll.u32 %s637_s19, 4  ;;  %s8990_s21 = smov [#allocation21]   ;;  %s9326_s8 = int_to_ptr.vmem [resolvable:$true] %s645_s8 }
  0xbd   : > { %s9328_s30 = sshll.u32 %s8990_s21, 4  ;;  %s10608_s4 = scalar_lea.sflag [#allocation14], %s9241_s25  ;;  %s491_s30 = int_to_ptr.vmem [resolvable:$true] %s9328_s30 }
  0xc0   : > { %s9323_s3 = scalar_lea.hbm %s10646_s7, %s9290_s17  ;;  %s8626_s13 = scalar_lea.hbm %s10646_s7, 256 }
  0xc1   : > { %s8621_s5 = scalar_lea.hbm %s9323_s3, 128  ;;  %p8627_p7 = scmp.lt.u32.totalorder %s9323_s3, %s10646_s7 }
  0xc2   : > { %p8622_p10 = scmp.ne.s32.totalorder %s9323_s3, %s8621_s5  ;;  %p8628_p3 = scmp.lt.u32.totalorder %s8626_s13, %s8621_s5 }
  0xc3   : > { %p8630_p13 = scmp.lt.u32.totalorder %s8621_s5, %s9323_s3 }
  0xc4   : > { %p8624_p6 = pnand %p8622_p10, %p9264_p12  ;;  %p8629_p11 = por %p8628_p3, %p8627_p7 }
  0xc6   : > { %p8625_p0 = pneg %p8624_p6  ;;  %p8631_p2 = por %p8630_p13, %p8629_p11 }
  0xc8   : > { %p8632_p5 = pnand %p8631_p2, %p8625_p0 }
  0xca   : > { %8635 = shalt.err (!%p8632_p5)
}
  0xcb   : > { %s8636_s19 = scalar_lea.vmem %s9326_s8, 128  ;;  %s8991_s21 = smov [#allocation13]  }
  0xcc   : > { %p8637_p1 = scmp.ne.s32.totalorder %s9326_s8, %s8636_s19  ;;  %s8641_s28 = sshll.u32 %s8991_s21, 4  ;;  %s8642_s28 = int_to_ptr.vmem [resolvable:$false] %s8641_s28 }
  0xcd   : > { %s8643_s26 = scalar_lea.vmem %s8642_s28, 256  ;;  %p8644_p10 = scmp.lt.s32.totalorder %s9326_s8, %s8642_s28 }
  0xce   : > { %p8639_p4 = pnand %p8637_p1, %p9264_p12  ;;  %p8645_p6 = scmp.lt.s32.totalorder %s8643_s26, %s8636_s19 }
  0xd0   : > { %p8640_p8 = pneg %p8639_p4  ;;  %p8646_p7 = por %p8645_p6, %p8644_p10 }
  0xd2   : > { %p8647_p3 = pnand %p8646_p7, %p8640_p8 }
  0xd4   : > { %8650 = shalt.err (!%p8647_p3)
}
  0xd5   : > { %7977 = dma.hbm_to_vmem [thread:$0]  (!%p10644_p9), %s9323_s3, 128, %s9326_s8, %s10608_s4  }
  0xd6   : > { %s10647_s12 = sld [smem:[#allocation52_spill]]  ;;  %p10648_p11 = scmp.ne.s32.totalorder %s10634_s29, 0 }
  0xdc   : > { %s8651_s9 = scalar_lea.hbm %s10647_s12, 128 }
  0xdd   : > { %p8652_p0 = scmp.ne.s32.totalorder %s10647_s12, %s8651_s9  ;;  %p8658_p5 = scmp.lt.u32.totalorder %s8651_s9, %s10647_s12 }
  0xdf   : > { %p8654_p13 = pnand %p8652_p0, %p10648_p11 }
  0xe1   : > { %p8655_p2 = pneg %p8654_p13 }
  0xe3   : > { %p8660_p1 = pnand %p8658_p5, %p8655_p2 }
  0xe5   : > { %8663 = shalt.err (!%p8660_p1)
}
  0xe6   : > { %s8664_s26 = scalar_lea.vmem %s491_s30, 128  ;;  %p8672_p6 = scmp.lt.s32.totalorder %s491_s30, %s491_s30 }
  0xe7   : > { %p8665_p4 = scmp.ne.s32.totalorder %s491_s30, %s8664_s26  ;;  %p8673_p7 = scmp.lt.s32.totalorder %s8664_s26, %s8664_s26 }
  0xe9   : > { %p8667_p8 = pnand %p8665_p4, %p10648_p11  ;;  %p8674_p3 = por %p8673_p7, %p8672_p6 }
  0xeb   : > { %p8668_p10 = pneg %p8667_p8 }
  0xed   : > { %p8675_p9 = pnand %p8674_p3, %p8668_p10 }
  0xef   : > { %8678 = shalt.err (!%p8675_p9)
}
  0xf0   : > { %p10649_p0 = scmp.ne.s32.totalorder %s10632_s0, 0  ;;  %s8992_s5 = smov [#allocation24]  }
  0xf1   : > { %s511_s13 = sshll.u32 %s8992_s5, 4  ;;  %s8679_s21 = scalar_lea.hbm %s10585_s14, 16384  ;;  %s512_s13 = int_to_ptr.vmem [resolvable:$true] %s511_s13 }
  0xf2   : > { %7949 = dma.hbm_to_vmem [thread:$0]  (!%p10649_p0), %s10647_s12, 128, %s491_s30, [#allocation20]  }
  0xf3   : > { %p8680_p13 = scmp.ne.s32.totalorder %s10585_s14, %s8679_s21  ;;  %p8686_p5 = scmp.lt.u32.totalorder %s8679_s21, %s10585_s14 }
  0xf5   : > { %p8682_p9 = pnand %p8680_p13, %p10648_p11 }
  0xf7   : > { %p8683_p2 = pneg %p8682_p9 }
  0xf9   : > { %p8688_p1 = pnand %p8686_p5, %p8683_p2 }
  0xfb   : > { %8691 = shalt.err (!%p8688_p1)
}
  0xfc   : > { %s8692_s30 = scalar_lea.vmem %s512_s13, 16384  ;;  %p8700_p6 = scmp.lt.s32.totalorder %s512_s13, %s512_s13 }
  0xfd   : > { %p8693_p4 = scmp.ne.s32.totalorder %s512_s13, %s8692_s30  ;;  %p8701_p7 = scmp.lt.s32.totalorder %s8692_s30, %s8692_s30 }
  0xff   : > { %p8695_p8 = pnand %p8693_p4, %p10648_p11  ;;  %p8702_p3 = por %p8701_p7, %p8700_p6 }
 0x101   : > { %p8696_p10 = pneg %p8695_p8 }
 0x103   : > { %p8703_p12 = pnand %p8702_p3, %p8696_p10 }
 0x105   : > { %8706 = shalt.err (!%p8703_p12)
}
 0x106   : > { %s10612_s3 = smov 128   ;;  %s8994_s8 = smov 8  }
 0x107   : > { %7955 = dma.hbm_to_vmem [thread:$0]  (!%p10649_p0), %s10585_s14, 16384, %s512_s13, [#allocation23], %s10612_s3, %s10612_s3, %s8994_s8  }
 0x108   : > { %s8995_s9 = smov [#allocation25]   ;;  %s7148_s21 = sshll.u32 %s9238_s18, 4 }
 0x109   : > { %s525_s10 = sshll.u32 %s8995_s9, 4  ;;  %s8707_s26 = scalar_lea.hbm %s10586_s15, 32  ;;  %s526_s10 = int_to_ptr.vmem [resolvable:$true] %s525_s10 }
 0x10a   : > { %p8708_p12 = scmp.ne.s32.totalorder %s10586_s15, %s8707_s26  ;;  %p8714_p2 = scmp.lt.u32.totalorder %s8707_s26, %s10586_s15 }
 0x10c   : > { %p8710_p13 = pnand %p8708_p12, %p10648_p11 }
 0x10e   : > { %p8711_p9 = pneg %p8710_p13 }
 0x110   : > { %p8716_p5 = pnand %p8714_p2, %p8711_p9 }
 0x112   : > { %8719 = shalt.err (!%p8716_p5)
}
 0x113   : > { %s8720_s13 = scalar_lea.vmem %s526_s10, 32  ;;  %p8728_p10 = scmp.lt.s32.totalorder %s526_s10, %s526_s10 }
 0x114   : > { %p8721_p1 = scmp.ne.s32.totalorder %s526_s10, %s8720_s13  ;;  %p8729_p6 = scmp.lt.s32.totalorder %s8720_s13, %s8720_s13 }
 0x116   : > { %p8723_p4 = pnand %p8721_p1, %p10648_p11  ;;  %p8730_p7 = por %p8729_p6, %p8728_p10 }
 0x118   : > { %p8724_p8 = pneg %p8723_p4 }
 0x11a   : > { %p8731_p3 = pnand %p8730_p7, %p8724_p8 }
 0x11c   : > { %8734 = shalt.err (!%p8731_p3)
}
 0x11d   : > { %7958 = dma.hbm_to_vmem [thread:$0]  (!%p10649_p0), %s10586_s15, 32, %s526_s10, [#allocation26]  }
 0x11e   : > { %s7836_s12 = sshll.u32 %s8981_s24, 8  ;;  %s540_s23 = scalar_lea.vmem [#allocation4], %s7148_s21 }
 0x11f   : > { %s548_s5 = sshll.u32 %s540_s23, 4  ;;  %s9417_s19 = scalar_lea.hbm %s10573_s2, %s7836_s12  ;;  %s549_s5 = int_to_ptr.vmem [resolvable:$true] %s548_s5 }
 0x120   : > { %s537_s0 = scalar_lea.sflag [#allocation5], %s9238_s18  ;;  %s8735_s28 = scalar_lea.hbm %s9417_s19, 256 }
 0x121   : > { %p8736_p11 = scmp.ne.s32.totalorder %s9417_s19, %s8735_s28  ;;  %p10650_p12 = scmp.ne.s32.totalorder %s10641_s11, 0 }
 0x122   : > { %s8740_s21 = scalar_lea.hbm %s10573_s2, 512  ;;  %p8741_p0 = scmp.lt.u32.totalorder %s9417_s19, %s10573_s2 }
 0x123   : > { %p8738_p13 = pnand %p8736_p11, %p10650_p12  ;;  %p8742_p2 = scmp.lt.u32.totalorder %s8740_s21, %s8735_s28 }
 0x124   : > { %p8744_p1 = scmp.lt.u32.totalorder %s8735_s28, %s9417_s19 }
 0x125   : > { %p8739_p9 = pneg %p8738_p13  ;;  %p8743_p5 = por %p8742_p2, %p8741_p0 }
 0x127   : > { %p8745_p4 = por %p8744_p1, %p8743_p5 }
 0x129   : > { %p8746_p8 = pnand %p8745_p4, %p8739_p9 }
 0x12b   : > { %8749 = shalt.err (!%p8746_p8)
}
 0x12c   : > { %s8750_s7 = scalar_lea.vmem %s549_s5, 256  ;;  %s8996_s4 = smov [#allocation4]  }
 0x12d   : > { %p8751_p10 = scmp.ne.s32.totalorder %s549_s5, %s8750_s7  ;;  %s8755_s12 = sshll.u32 %s8996_s4, 4  ;;  %s8756_s12 = int_to_ptr.vmem [resolvable:$false] %s8755_s12 }
 0x12e   : > { %s8757_s23 = scalar_lea.vmem %s8756_s12, 512  ;;  %p8758_p3 = scmp.lt.s32.totalorder %s549_s5, %s8756_s12 }
 0x12f   : > { %p8753_p6 = pnand %p8751_p10, %p10650_p12  ;;  %p8759_p11 = scmp.lt.s32.totalorder %s8757_s23, %s8750_s7 }
 0x131   : > { %p8754_p7 = pneg %p8753_p6  ;;  %p8760_p13 = por %p8759_p11, %p8758_p3 }
 0x133   : > { %p8761_p0 = pnand %p8760_p13, %p8754_p7 }
 0x135   : > { %8764 = shalt.err (!%p8761_p0)
}
 0x136   : > { %p10651_p2 = scmp.ne.s32.totalorder %s10639_s1, 0  ;;  %s7154_s29 = sshll.u32 %s9238_s18, 11 }
 0x137   : > { %s7838_s9 = sshll.u32 %s8981_s24, 15  ;;  %s10652_s26 = sld [smem:[#allocation44_spill]] }
 0x138   : > { %7962 = dma.hbm_to_vmem [thread:$0]  (!%p10651_p2), %s9417_s19, 256, %s549_s5, %s537_s0  }
 0x139   : > { %s578_s30 = scalar_lea.vmem [#allocation9], %s7154_s29  ;;  %s10653_s12 = sld [smem:[#allocation46_spill]] }
 0x13a   : > { %s585_s13 = sshll.u32 %s578_s30, 4  ;;  %s9444_s13 = int_to_ptr.vmem [resolvable:$true] %s585_s13 }
 0x13d   : > { %s9442_s21 = scalar_lea.hbm %s10652_s26, %s7838_s9  ;;  %s8770_s9 = scalar_lea.hbm %s10652_s26, 65536 }
 0x13e   : > { %s8765_s5 = scalar_lea.hbm %s9442_s21, 32768  ;;  %p8771_p4 = scmp.lt.u32.totalorder %s9442_s21, %s10652_s26 }
 0x13f   : > { %s9450_s23 = scalar_lea.hbm %s10653_s12, %s9290_s17  ;;  %p8766_p9 = scmp.ne.s32.totalorder %s9442_s21, %s8765_s5 }
 0x140   : > { %p8772_p8 = scmp.lt.u32.totalorder %s8770_s9, %s8765_s5  ;;  %p8774_p6 = scmp.lt.u32.totalorder %s8765_s5, %s9442_s21 }
 0x141   : > { %p8768_p5 = pnand %p8766_p9, %p10650_p12 }
 0x142   : > { %p8773_p10 = por %p8772_p8, %p8771_p4 }
 0x143   : > { %p8769_p1 = pneg %p8768_p5 }
 0x144   : > { %p8775_p7 = por %p8774_p6, %p8773_p10 }
 0x146   : > { %p8776_p3 = pnand %p8775_p7, %p8769_p1 }
 0x148   : > { %8779 = shalt.err (!%p8776_p3)
}
 0x149   : > { %s8780_s17 = scalar_lea.vmem %s9444_s13, 32768  ;;  %s8997_s29 = smov [#allocation9]  }
 0x14a   : > { %p8781_p11 = scmp.ne.s32.totalorder %s9444_s13, %s8780_s17  ;;  %s8785_s30 = sshll.u32 %s8997_s29, 4  ;;  %s8786_s30 = int_to_ptr.vmem [resolvable:$false] %s8785_s30 }
 0x14b   : > { %s8787_s7 = scalar_lea.vmem %s8786_s30, 65536  ;;  %p8788_p9 = scmp.lt.s32.totalorder %s9444_s13, %s8786_s30 }
 0x14c   : > { %p8783_p13 = pnand %p8781_p11, %p10650_p12  ;;  %p8789_p5 = scmp.lt.s32.totalorder %s8787_s7, %s8780_s17 }
 0x14e   : > { %p8784_p0 = pneg %p8783_p13  ;;  %p8790_p4 = por %p8789_p5, %p8788_p9 }
 0x150   : > { %p8791_p8 = pnand %p8790_p4, %p8784_p0 }
 0x152   : > { %8794 = shalt.err (!%p8791_p8)
}
 0x153   : > { %s10654_s4 = smov 32   ;;  %s10655_s5 = smov 512  }
 0x154   : > { %s10656_s19 = scalar_lea.sflag [#allocation8], %s9241_s25  ;;  %s618_s0 = scalar_lea.vmem [#allocation12], %s9257_s16 }
 0x155   : > { %7968 = dma.hbm_to_vmem [thread:$0]  (!%p10651_p2), %s9442_s21, 32768, %s9444_s13, %s10656_s19, %s10655_s5, %s10655_s5, %s10654_s4  }
 0x156   : > { %s626_s9 = sshll.u32 %s618_s0, 4  ;;  %s7166_s28 = sshll.u32 %s9238_s18, 10  ;;  %s627_s9 = int_to_ptr.vmem [resolvable:$true] %s626_s9 }
 0x157   : > { %s8795_s10 = scalar_lea.hbm %s9450_s23, 128  ;;  %s8800_s30 = scalar_lea.hbm %s10653_s12, 256 }
 0x158   : > { %p8796_p1 = scmp.ne.s32.totalorder %s9450_s23, %s8795_s10  ;;  %p8801_p7 = scmp.lt.u32.totalorder %s9450_s23, %s10653_s12 }
 0x159   : > { %p8802_p3 = scmp.lt.u32.totalorder %s8800_s30, %s8795_s10  ;;  %p8804_p13 = scmp.lt.u32.totalorder %s8795_s10, %s9450_s23 }
 0x15a   : > { %p8798_p10 = pnand %p8796_p1, %p10650_p12 }
 0x15b   : > { %p8803_p11 = por %p8802_p3, %p8801_p7 }
 0x15c   : > { %p8799_p6 = pneg %p8798_p10 }
 0x15d   : > { %p8805_p0 = por %p8804_p13, %p8803_p11 }
 0x15f   : > { %p8806_p9 = pnand %p8805_p0, %p8799_p6 }
 0x161   : > { %8809 = shalt.err (!%p8806_p9)
}
 0x162   : > { %s8810_s16 = scalar_lea.vmem %s627_s9, 128  ;;  %s8998_s21 = smov [#allocation12]  }
 0x163   : > { %p8811_p5 = scmp.ne.s32.totalorder %s627_s9, %s8810_s16  ;;  %s8815_s13 = sshll.u32 %s8998_s21, 4  ;;  %s8816_s13 = int_to_ptr.vmem [resolvable:$false] %s8815_s13 }
 0x164   : > { %s8817_s4 = scalar_lea.vmem %s8816_s13, 256  ;;  %p8818_p1 = scmp.lt.s32.totalorder %s627_s9, %s8816_s13 }
 0x165   : > { %p8813_p4 = pnand %p8811_p5, %p10650_p12  ;;  %p8819_p10 = scmp.lt.s32.totalorder %s8817_s4, %s8810_s16 }
 0x167   : > { %p8814_p8 = pneg %p8813_p4  ;;  %p8820_p2 = por %p8819_p10, %p8818_p1 }
 0x169   : > { %p8821_p3 = pnand %p8820_p2, %p8814_p8 }
 0x16b   : > { %8824 = shalt.err (!%p8821_p3)
}
 0x16c   : > { %p10657_p7 = scmp.ne.s32.totalorder %s10639_s1, 0  ;;  %s10658_s3 = scalar_lea.sflag [#allocation11], %s9241_s25 }
 0x16d   : > { %s7842_s5 = sshll.u32 %s8981_s24, 14  ;;  %s656_s19 = scalar_lea.vmem [#allocation15], %s7166_s28 }
 0x16e   : > { %7974 = dma.hbm_to_vmem [thread:$0]  (!%p10657_p7), %s9450_s23, 128, %s627_s9, %s10658_s3  }
 0x16f   : > { %s663_s0 = sshll.u32 %s656_s19, 4  ;;  %s10659_s29 = sld [smem:[#allocation48_spill]]  ;;  %s9507_s0 = int_to_ptr.vmem [resolvable:$true] %s663_s0 }
 0x175   : > { %s9505_s30 = scalar_lea.hbm %s10659_s29, %s7842_s5  ;;  %s8830_s28 = scalar_lea.hbm %s10659_s29, 32768 }
 0x176   : > { %s8825_s7 = scalar_lea.hbm %s9505_s30, 16384  ;;  %p8831_p13 = scmp.lt.u32.totalorder %s9505_s30, %s10659_s29 }
 0x177   : > { %p8826_p2 = scmp.ne.s32.totalorder %s9505_s30, %s8825_s7  ;;  %p8832_p0 = scmp.lt.u32.totalorder %s8830_s28, %s8825_s7 }
 0x178   : > { %p8834_p5 = scmp.lt.u32.totalorder %s8825_s7, %s9505_s30 }
 0x179   : > { %p8828_p6 = pnand %p8826_p2, %p10650_p12  ;;  %p8833_p9 = por %p8832_p0, %p8831_p13 }
 0x17b   : > { %p8829_p11 = pneg %p8828_p6  ;;  %p8835_p4 = por %p8834_p5, %p8833_p9 }
 0x17d   : > { %p8836_p8 = pnand %p8835_p4, %p8829_p11 }
 0x17f   : > { %8839 = shalt.err (!%p8836_p8)
}
 0x180   : > { %s8840_s13 = scalar_lea.vmem %s9507_s0, 16384  ;;  %s8999_s4 = smov [#allocation15]  }
 0x181   : > { %p8841_p1 = scmp.ne.s32.totalorder %s9507_s0, %s8840_s13  ;;  %s8845_s3 = sshll.u32 %s8999_s4, 4  ;;  %s8846_s3 = int_to_ptr.vmem [resolvable:$false] %s8845_s3 }
 0x182   : > { %s8847_s5 = scalar_lea.vmem %s8846_s3, 32768  ;;  %p8848_p2 = scmp.lt.s32.totalorder %s9507_s0, %s8846_s3 }
 0x183   : > { %p8843_p10 = pnand %p8841_p1, %p10650_p12  ;;  %p8849_p6 = scmp.lt.s32.totalorder %s8847_s5, %s8840_s13 }
 0x185   : > { %p8844_p3 = pneg %p8843_p10  ;;  %p8850_p13 = por %p8849_p6, %p8848_p2 }
 0x187   : > { %p8851_p0 = pnand %p8850_p13, %p8844_p3 }
 0x189   : > { %8854 = shalt.err (!%p8851_p0)
}
 0x18a   : > { %s10660_s19 = smov 128   ;;  %s10661_s10 = scalar_lea.sflag [#allocation14], %s9241_s25 }
 0x18b   : > { %7980 = dma.hbm_to_vmem [thread:$0]  (!%p10657_p7), %s9505_s30, 16384, %s9507_s0, %s10661_s10, %s10660_s19, %s10660_s19, %s8994_s8  }
 0x18c   : > { %s7169_s17 = sshll.u32 %s9238_s18, 1  ;;  %s7843_s7 = sshll.u32 %s8981_s24, 5 }
 0x18d   : > { %s10662_s28 = sld [smem:[#allocation49_spill]]  ;;  %s677_s21 = scalar_lea.vmem [#allocation16], %s7169_s17 }
 0x18e   : > { %s685_s13 = sshll.u32 %s677_s21, 4  ;;  %s674_s4 = scalar_lea.sflag [#allocation17], %s9241_s25  ;;  %s686_s13 = int_to_ptr.vmem [resolvable:$true] %s685_s13 }
 0x193   : > { %s9540_s16 = scalar_lea.hbm %s10662_s28, %s7843_s7  ;;  %s8860_s8 = scalar_lea.hbm %s10662_s28, 64 }
 0x194   : > { %s8855_s3 = scalar_lea.hbm %s9540_s16, 32  ;;  %p8861_p4 = scmp.lt.u32.totalorder %s9540_s16, %s10662_s28 }
 0x195   : > { %p8856_p11 = scmp.ne.s32.totalorder %s9540_s16, %s8855_s3  ;;  %p8862_p8 = scmp.lt.u32.totalorder %s8860_s8, %s8855_s3 }
 0x196   : > { %p8864_p10 = scmp.lt.u32.totalorder %s8855_s3, %s9540_s16 }
 0x197   : > { %p8858_p9 = pnand %p8856_p11, %p10650_p12  ;;  %p8863_p1 = por %p8862_p8, %p8861_p4 }
 0x199   : > { %p8859_p5 = pneg %p8858_p9  ;;  %p8865_p3 = por %p8864_p10, %p8863_p1 }
 0x19b   : > { %p8866_p2 = pnand %p8865_p3, %p8859_p5 }
 0x19d   : > { %8869 = shalt.err (!%p8866_p2)
}
 0x19e   : > { %s8870_s25 = scalar_lea.vmem %s686_s13, 32  ;;  %s9000_s5 = smov [#allocation16]  }
 0x19f   : > { %p8871_p6 = scmp.ne.s32.totalorder %s686_s13, %s8870_s25  ;;  %s8875_s19 = sshll.u32 %s9000_s5, 4  ;;  %s8876_s19 = int_to_ptr.vmem [resolvable:$false] %s8875_s19 }
 0x1a0   : > { %s8877_s10 = scalar_lea.vmem %s8876_s19, 64  ;;  %p8878_p11 = scmp.lt.s32.totalorder %s686_s13, %s8876_s19 }
 0x1a1   : > { %p8873_p13 = pnand %p8871_p6, %p10650_p12  ;;  %p8879_p9 = scmp.lt.s32.totalorder %s8877_s10, %s8870_s25 }
 0x1a3   : > { %p8874_p0 = pneg %p8873_p13  ;;  %p8880_p7 = por %p8879_p9, %p8878_p11 }
 0x1a5   : > { %p8881_p4 = pnand %p8880_p7, %p8874_p0 }
 0x1a7   : > { %8884 = shalt.err (!%p8881_p4)
}
 0x1a8   : > { %p10663_p8 = scmp.ne.s32.totalorder %s10639_s1, 0  ;;  %s10664_s17 = sld [smem:[#allocation39_spill]] }
 0x1aa   : > { %7983 = dma.hbm_to_vmem [thread:$0]  (!%p10663_p8), %s9540_s16, 32, %s686_s13, %s674_s4  }
 0x1ae   : > { %p10665_p5 = scmp.ne.s32.totalorder %s10664_s17, 0 }
 0x1af   : > { %s696_s11 = sand.u32 (!%p10665_p5), 1, %s8973_s22   ;;  %p10666_p12 = scmp.ne.s32.totalorder (!%p10665_p5), %s10638_s20, 0 }
 0x1b0   : > { %694 = sbr.rel (%p10665_p5) target bundleno = 3103 (0xc1f), region = 84  ;;  %s7173_s7 = sshll.u32 (!%p10665_p5), %s696_s11, 4 }
 0x1b1   : > { %s697_s23 = scalar_lea.sflag (!%p10665_p5), [#allocation5], %s696_s11  ;;  %s9563_s9 = scalar_lea.vmem (!%p10665_p5), [#allocation4], %s7173_s7 }
 0x1b7   : > { %8928 = dma.done.wait (%p10666_p12), %s697_s23, 256  }
 0x1b8   : > { %8930 = vsyncadd (%p10666_p12), %s697_s23, 4294967040  ;;  %s705_s1 = sand.u32 1, %s9114_s27   ;;  %s7174_s21 = sshll.u32 %s696_s11, 2 }
 0x1b9   : > { %s706_s16 = scalar_lea.sflag [#allocation8], %s705_s1  ;;  %s9570_s13 = scalar_lea.vmem [#allocation7], %s7174_s21 }
 0x1ba   : > { %8932 = dma.done.wait (%p10666_p12), %s706_s16, 32832  }
 0x1bb   : > { %8934 = vsyncadd (%p10666_p12), %s706_s16, 4294934464  ;;  %s7175_s4 = sshll.u32 %s696_s11, 11  ;;  %s9576_s3 = sshll.u32 %s696_s11, 3 }
 0x1bc   : > { %s9578_s18 = scalar_lea.vmem [#allocation9], %s7175_s4  ;;  %s724_s24 = scalar_lea.sflag [#allocation11], %s705_s1 }
 0x1bd   : > { %s727_s8 = scalar_lea.vmem [#allocation10], %s9576_s3 }
 0x1be   : > { %8936 = dma.done.wait (%p10666_p12), %s724_s24, 256  }
 0x1bf   : > { %8938 = vsyncadd (%p10666_p12), %s724_s24, 4294967040  ;;  %s736_s0 = scalar_lea.vmem [#allocation12], %s9576_s3  ;;  %s742_s30 = scalar_lea.sflag [#allocation14], %s705_s1 }
 0x1c0   : > { %s745_s25 = scalar_lea.vmem [#allocation13], %s9576_s3 }
 0x1c1   : > { %8940 = dma.done.wait (%p10666_p12), %s742_s30, 16512  }
 0x1c2   : > { %8942 = vsyncadd (%p10666_p12), %s742_s30, 4294950784  ;;  %s7179_s5 = sshll.u32 %s696_s11, 10  ;;  %s7180_s19 = sshll.u32 %s696_s11, 1 }
 0x1c3   : > { %s9591_s10 = scalar_lea.vmem [#allocation15], %s7179_s5  ;;  %s760_s17 = scalar_lea.sflag [#allocation17], %s705_s1 }
 0x1c4   : > { %s9593_s7 = scalar_lea.vmem [#allocation16], %s7180_s19 }
 0x1c5   : > { %8944 = dma.done.wait (%p10666_p12), %s760_s17, 32  }
 0x1c6   : > { %8946 = vsyncadd (%p10666_p12), %s760_s17, 4294967264  ;;  %p10667_p7 = scmp.eq.s32.totalorder %s9114_s27, 0 }
 0x1c8   : > { %8948 = dma.done.wait (%p10667_p7), [#allocation17], 16384   ;;  %p10668_p1 = pmov %p10667_p7 }
 0x1ca   : > { %8950 = vsyncadd (%p10668_p1), [#allocation17], 4294950912  ;;  %p10669_p10 = pmov %p10668_p1 }
 0x1cb   : > { %p10670_p3 = pmov %p10668_p1 }
 0x1cc   : > { %8952 = dma.done.wait (%p10669_p10), [#allocation20], 256  }
 0x1cd   : > { %8954 = vsyncadd (%p10670_p3), [#allocation20], 4294967040  ;;  %p10671_p2 = pmov %p10668_p1 }
 0x1ce   : > { %p10672_p6 = pmov %p10668_p1 }
 0x1cf   : > { %8956 = dma.done.wait (%p10671_p2), [#allocation23], 16512  }
 0x1d0   : > { %8958 = vsyncadd (%p10672_p6), [#allocation23], 4294950784  ;;  %p10673_p13 = pmov %p10668_p1 }
 0x1d1   : > { %p10674_p0 = pmov %p10668_p1 }
 0x1d2   : > { %8960 = dma.done.wait (%p10673_p13), [#allocation26], 32  }
 0x1d3   : > { %8962 = vsyncadd (%p10674_p0), [#allocation26], 4294967264  ;;  %p10675_p11 = scmp.ne.s32.totalorder %s9114_s27, 0 }
 0x1d4   : > { %s10676_s23 = sld [smem:[#allocation41_spill]] (!%p10675_p11)  ;;  %vm878_vm0 = vcmask (!%p10675_p11), 1043456   ;;  %v894_v10 = vlaneseq (!%p10675_p11)  ;;  %vm904_vm1 = vcmask (!%p10675_p11), 1041409   ;;  %vm907_vm2 = vcmask (!%p10675_p11), 25600  }
 0x1d5   : > { %869 = sbr.rel (%p10675_p11) target bundleno = 632 (0x278), region = 144 }
 0x1d6   : > { %v895_v11 = vand.u32 (!%p10675_p11), 127, %v894_v10  ;;  %v897_v12 = vshrl.u32 (!%p10675_p11), %v894_v10, 7 }
 0x1d8   : > { %v898_v14 = vsub.s32 (!%p10675_p11), %v895_v11, %v897_v12 }
 0x1da   : > { %s10677_s1 = smov (!%p10675_p11), %s10676_s23  ;;  %v870_v0 = vld [vmem:[%s10676_s23] sm:$0xff] (!%p10675_p11) }
 0x1db   : > { %v871_v1 = vld [vmem:[%s10677_s1 + $0x8] sm:$0xff] (!%p10675_p11)  ;;  %v874_v2 = vcombine.high (!%p10675_p11), %v870_v0, %v870_v0  ;;  %v879_v3 = vsel (!%p10675_p11), %vm878_vm0, %v870_v0, 0.0 }
 0x1dc   : > { %v875_v4 = vcombine.high %v871_v1, %v871_v1  ;;  %v884_v6 = vsel %vm878_vm0, %v871_v1, 0.0 }
 0x1dd   : > { %v880_v5 = vsel %vm878_vm0, %v874_v2, 0.0 }
 0x1de   : > { %v885_v7 = vsel %vm878_vm0, %v875_v4, 0.0  ;;  %v881_v8 = vadd.f32 %v880_v5, %v879_v3 }
 0x1df   : > { %v886_v9 = vadd.f32 %v885_v7, %v884_v6 }
 0x1e0   : > { %882 = vadd.xlane.f32.xlu0 %v881_v8 }
 0x1e4   : > { %887 = vadd.xlane.f32.xlu0 %v886_v9 }
 0x26d   : > { %v883_v13 = vpop.xlane.xlu0 %882 }
 0x26e   : > { %v890_v15 = vmul.f32 0.00390625, %v883_v13 }
 0x270   : > { %v899_v18 = vrot.slane %v890_v15, %v898_v14 }
 0x271   : > { %v888_v16 = vpop.xlane.xlu0 %887 }
 0x272   : > { %v891_v17 = vmul.f32 0.00390625, %v888_v16 }
 0x274   : > { %v903_v19 = vrot.slane %v891_v17, %v898_v14 }
 0x276   : > { %v905_v20 = vsel %vm904_vm1, %v903_v19, %v899_v18 }
 0x277   : > { %908 = vst.msk [vmem:[#allocation2] sm:$0x3] %vm907_vm2, %v905_v20 }
 0x278 PF: > { %p7188_p9 = scmp.ne.s32.totalorder %s9114_s27, 1 }
 0x279   : > { %s10678_s30 = sld [smem:[#allocation42_spill]] (!%p7188_p9)  ;;  %vm921_vm3 = vcmask (!%p7188_p9), 1043456   ;;  %v937_v31 = vlaneseq (!%p7188_p9)  ;;  %vm947_vm4 = vcmask (!%p7188_p9), 1041409   ;;  %vm950_vm5 = vcmask (!%p7188_p9), 25600  }
 0x27a   : > { %912 = sbr.rel (%p7188_p9) target bundleno = 797 (0x31d), region = 148 }
 0x27b   : > { %v938_v32 = vand.u32 (!%p7188_p9), 127, %v937_v31  ;;  %v940_v33 = vshrl.u32 (!%p7188_p9), %v937_v31, 7 }
 0x27d   : > { %v941_v35 = vsub.s32 (!%p7188_p9), %v938_v32, %v940_v33 }
 0x27f   : > { %v913_v21 = vld [vmem:[%s10678_s30] sm:$0xff] (!%p7188_p9)  ;;  %v914_v22 = vld [vmem:[%s10678_s30 + $0x8] sm:$0xff] (!%p7188_p9) }
 0x280   : > { %v917_v23 = vcombine.high (!%p7188_p9), %v913_v21, %v913_v21  ;;  %v922_v24 = vsel (!%p7188_p9), %vm921_vm3, %v913_v21, 0.0  ;;  %v918_v25 = vcombine.high (!%p7188_p9), %v914_v22, %v914_v22  ;;  %v927_v27 = vsel (!%p7188_p9), %vm921_vm3, %v914_v22, 0.0 }
 0x282   : > { %v923_v26 = vsel %vm921_vm3, %v917_v23, 0.0  ;;  %v928_v28 = vsel %vm921_vm3, %v918_v25, 0.0 }
 0x283   : > { %v924_v29 = vadd.f32 %v923_v26, %v922_v24  ;;  %v929_v30 = vadd.f32 %v928_v28, %v927_v27 }
 0x285   : > { %925 = vadd.xlane.f32.xlu0 %v924_v29 }
 0x289   : > { %930 = vadd.xlane.f32.xlu0 %v929_v30 }
 0x312   : > { %v926_v34 = vpop.xlane.xlu0 %925 }
 0x313   : > { %v933_v36 = vmul.f32 0.00390625, %v926_v34 }
 0x315   : > { %v942_v39 = vrot.slane %v933_v36, %v941_v35 }
 0x316   : > { %v931_v37 = vpop.xlane.xlu0 %930 }
 0x317   : > { %v934_v38 = vmul.f32 0.00390625, %v931_v37 }
 0x319   : > { %v946_v40 = vrot.slane %v934_v38, %v941_v35 }
 0x31b   : > { %v948_v41 = vsel %vm947_vm4, %v946_v40, %v942_v39 }
 0x31c   : > { %951 = vst.msk [vmem:[#allocation2] sm:$0x3] %vm950_vm5, %v948_v41 }
 0x31d PF: > { %v9001_v43 = vmov 0   ;;  %v9002_v44 = vmov 2   ;;  %v1172_v45 = vld [vmem:[%s9578_s18] sm:$0xff]  ;;  %v1174_v47 = vld [vmem:[%s9578_s18 + $0x10] sm:$0xff]  ;;  %v9003_v62 = vmov 1   ;;  %v9004_v63 = vmov 3  }
 0x31e   : > { %8052 = vset.pattern.permute.xlu0 %v9001_v43  ;;  %8054 = vset.pattern.permute.xlu1 %v9002_v44  ;;  %v1176_v46 = vld [vmem:[%s9578_s18 + $0x20] sm:$0xff]  ;;  %v1178_v49 = vld [vmem:[%s9578_s18 + $0x30] sm:$0xff]  ;;  %vm3213_vm6 = vcmask 1041408   ;;  %p10679_p4 = scmp.ne.s32.totalorder %s9114_s27, 0 }
 0x31f   : > { %v7190_v48 = vcombine.high %v1172_v45, %v1176_v46  ;;  %v7189_v50 = vcombine.low %v1172_v45, %v1176_v46  ;;  %v1180_v51 = vld [vmem:[%s9578_s18 + $0x40] sm:$0xff]  ;;  %v7194_v53 = vcombine.high %v1174_v47, %v1178_v49  ;;  %v1182_v54 = vld [vmem:[%s9578_s18 + $0x50] sm:$0xff]  ;;  %v7193_v57 = vcombine.low %v1174_v47, %v1178_v49 }
 0x320   : > { %v1184_v52 = vld [vmem:[%s9578_s18 + $0x60] sm:$0xff]  ;;  %v1186_v55 = vld [vmem:[%s9578_s18 + $0x70] sm:$0xff] }
 0x321   : > { %v1188_v56 = vld [vmem:[%s9578_s18 + $0x80] sm:$0xff]  ;;  %2885 = vmatprep.subr.bf16.mxu1 %v7190_v48  ;;  %v7198_v58 = vcombine.high %v1180_v51, %v1184_v52  ;;  %3049 = vmatprep.subr.bf16.mxu0 %v7194_v53  ;;  %v7202_v60 = vcombine.high %v1182_v54, %v1186_v55  ;;  %v7197_v61 = vcombine.low %v1180_v51, %v1184_v52  ;;  %v1190_v1 = vld [vmem:[%s9578_s18 + $0x90] sm:$0xff] }
 0x322   : > { %v1192_v59 = vld [vmem:[%s9578_s18 + $0xa0] sm:$0xff]  ;;  %2886 = vmatpush1.bf16.msra.mxu1 %v7189_v50  ;;  %v1194_v2 = vld [vmem:[%s9578_s18 + $0xb0] sm:$0xff]  ;;  %3050 = vmatpush1.bf16.msra.mxu0 %v7193_v57  ;;  %v7201_v5 = vcombine.low %v1182_v54, %v1186_v55 }
 0x323   : > { %v952_v42 = vld [vmem:[#allocation2] sm:$0x3]  ;;  %v7206_v0 = vcombine.high %v1188_v56, %v1192_v59  ;;  %v1196_v3 = vld [vmem:[%s9578_s18 + $0xc0] sm:$0xff]  ;;  %2887 = vmatprep.subr.bf16.mxu1 %v7198_v58  ;;  %3051 = vmatprep.subr.bf16.mxu0 %v7202_v60  ;;  %v7210_v6 = vcombine.high %v1190_v1, %v1194_v2  ;;  %v7205_v7 = vcombine.low %v1188_v56, %v1192_v59 }
 0x324   : > { %958 = vperm.xlu0 %8052, %v952_v42   ;;  %1077 = vperm.xlu1 %8054, %v952_v42   ;;  %v1200_v4 = vld [vmem:[%s9578_s18 + $0xe0] sm:$0xff]  ;;  %v1198_v9 = vld [vmem:[%s9578_s18 + $0xd0] sm:$0xff]  ;;  %v7209_v13 = vcombine.low %v1190_v1, %v1194_v2 }
 0x325   : > { %v7214_v8 = vcombine.high %v1196_v3, %v1200_v4  ;;  %v1202_v10 = vld [vmem:[%s9578_s18 + $0xf0] sm:$0xff]  ;;  %v1204_v11 = vld [vmem:[%s9578_s18 + $0x100] sm:$0xff]  ;;  %v7213_v15 = vcombine.low %v1196_v3, %v1200_v4 }
 0x326   : > { %2888 = vmatpush1.bf16.msra.mxu1 %v7197_v61  ;;  %v1208_v12 = vld [vmem:[%s9578_s18 + $0x120] sm:$0xff]  ;;  %3052 = vmatpush1.bf16.msra.mxu0 %v7201_v5  ;;  %v7218_v14 = vcombine.high %v1198_v9, %v1202_v10  ;;  %v1206_v17 = vld [vmem:[%s9578_s18 + $0x110] sm:$0xff]  ;;  %v7217_v21 = vcombine.low %v1198_v9, %v1202_v10 }
 0x327   : > { %2889 = vmatprep.subr.bf16.mxu1 %v7206_v0  ;;  %3053 = vmatprep.subr.bf16.mxu0 %v7210_v6  ;;  %v7222_v16 = vcombine.high %v1204_v11, %v1208_v12  ;;  %v1210_v18 = vld [vmem:[%s9578_s18 + $0x130] sm:$0xff]  ;;  %v1212_v19 = vld [vmem:[%s9578_s18 + $0x140] sm:$0xff]  ;;  %v7221_v23 = vcombine.low %v1204_v11, %v1208_v12 }
 0x328   : > { %8053 = vset.pattern.permute.xlu0 %v9003_v62  ;;  %8055 = vset.pattern.permute.xlu1 %v9004_v63  ;;  %v1216_v20 = vld [vmem:[%s9578_s18 + $0x160] sm:$0xff]  ;;  %v7226_v22 = vcombine.high %v1206_v17, %v1210_v18  ;;  %v1214_v25 = vld [vmem:[%s9578_s18 + $0x150] sm:$0xff]  ;;  %v7225_v29 = vcombine.low %v1206_v17, %v1210_v18 }
 0x329   : > { %1029 = vperm.xlu0 %8053, %v952_v42   ;;  %1125 = vperm.xlu1 %8055, %v952_v42   ;;  %v7230_v24 = vcombine.high %v1212_v19, %v1216_v20  ;;  %v1218_v26 = vld [vmem:[%s9578_s18 + $0x170] sm:$0xff]  ;;  %v1220_v27 = vld [vmem:[%s9578_s18 + $0x180] sm:$0xff]  ;;  %v7229_v31 = vcombine.low %v1212_v19, %v1216_v20 }
 0x32a   : > { %2890 = vmatpush1.bf16.msra.mxu1 %v7205_v7  ;;  %3054 = vmatpush1.bf16.msra.mxu0 %v7209_v13  ;;  %v1224_v28 = vld [vmem:[%s9578_s18 + $0x1a0] sm:$0xff]  ;;  %v7234_v30 = vcombine.high %v1214_v25, %v1218_v26  ;;  %v1222_v33 = vld [vmem:[%s9578_s18 + $0x190] sm:$0xff]  ;;  %v7233_v37 = vcombine.low %v1214_v25, %v1218_v26 }
 0x32b   : > { %2891 = vmatprep.subr.bf16.mxu1 %v7214_v8  ;;  %3055 = vmatprep.subr.bf16.mxu0 %v7218_v14  ;;  %v7238_v32 = vcombine.high %v1220_v27, %v1224_v28  ;;  %v1226_v34 = vld [vmem:[%s9578_s18 + $0x1b0] sm:$0xff]  ;;  %v1228_v35 = vld [vmem:[%s9578_s18 + $0x1c0] sm:$0xff]  ;;  %v7237_v39 = vcombine.low %v1220_v27, %v1224_v28 }
 0x32c   : > { %v1232_v36 = vld [vmem:[%s9578_s18 + $0x1e0] sm:$0xff]  ;;  %v7242_v38 = vcombine.high %v1222_v33, %v1226_v34  ;;  %v1230_v41 = vld [vmem:[%s9578_s18 + $0x1d0] sm:$0xff]  ;;  %v7241_v47 = vcombine.low %v1222_v33, %v1226_v34 }
 0x32d   : > { %8056 = vset.pattern.permute.xlu0 %v9004_v63  ;;  %v7246_v40 = vcombine.high %v1228_v35, %v1232_v36  ;;  %v1234_v42 = vld [vmem:[%s9578_s18 + $0x1f0] sm:$0xff]  ;;  %v1236_v43 = vld [vmem:[%s9578_s18 + $0x200] sm:$0xff]  ;;  %v7245_v53 = vcombine.low %v1228_v35, %v1232_v36 }
 0x32e   : > { %2892 = vmatpush1.bf16.msra.mxu1 %v7213_v15  ;;  %3056 = vmatpush1.bf16.msra.mxu0 %v7217_v21  ;;  %v1240_v44 = vld [vmem:[%s9578_s18 + $0x220] sm:$0xff]  ;;  %v1238_v48 = vld [vmem:[%s9578_s18 + $0x210] sm:$0xff]  ;;  %v7250_v52 = vcombine.high %v1230_v41, %v1234_v42  ;;  %v7249_v57 = vcombine.low %v1230_v41, %v1234_v42 }
 0x32f   : > { %2893 = vmatprep.subr.bf16.mxu1 %v7222_v16  ;;  %3057 = vmatprep.subr.bf16.mxu0 %v7226_v22  ;;  %v9667_v45 = vld [vmem:[%s9578_s18 + $0x400] sm:$0xff]  ;;  %v1242_v49 = vld [vmem:[%s9578_s18 + $0x230] sm:$0xff]  ;;  %v7254_v54 = vcombine.high %v1236_v43, %v1240_v44  ;;  %v7253_v63 = vcombine.low %v1236_v43, %v1240_v44 }
 0x330   : > { %v9670_v46 = vld [vmem:[%s9578_s18 + $0x420] sm:$0xff]  ;;  %v9675_v50 = vld [vmem:[%s9578_s18 + $0x410] sm:$0xff]  ;;  %v7258_v62 = vcombine.high %v1238_v48, %v1242_v49  ;;  %v7257_v3 = vcombine.low %v1238_v48, %v1242_v49 }
 0x331   : > { %v9678_v51 = vld [vmem:[%s9578_s18 + $0x430] sm:$0xff]  ;;  %v1244_v55 = vld [vmem:[%s9578_s18 + $0x240] sm:$0xff]  ;;  %v7317_v60 = vcombine.low %v9667_v45, %v9670_v46 }
 0x332   : > { %2894 = vmatpush1.bf16.msra.mxu1 %v7221_v23  ;;  %3058 = vmatpush1.bf16.msra.mxu0 %v7225_v29  ;;  %v1248_v56 = vld [vmem:[%s9578_s18 + $0x260] sm:$0xff]  ;;  %v1246_v58 = vld [vmem:[%s9578_s18 + $0x250] sm:$0xff]  ;;  %v7321_v61 = vcombine.low %v9675_v50, %v9678_v51 }
 0x333   : > { %2895 = vmatprep.subr.bf16.mxu1 %v7230_v24  ;;  %3059 = vmatprep.subr.bf16.mxu0 %v7234_v30  ;;  %v1250_v59 = vld [vmem:[%s9578_s18 + $0x270] sm:$0xff]  ;;  %v7262_v0 = vcombine.high %v1244_v55, %v1248_v56  ;;  %v1252_v1 = vld [vmem:[%s9578_s18 + $0x280] sm:$0xff]  ;;  %v7261_v7 = vcombine.low %v1244_v55, %v1248_v56  ;;  %v7318_v56 = vcombine.high %v9667_v45, %v9670_v46 }
 0x334   : > { %v1256_v2 = vld [vmem:[%s9578_s18 + $0x2a0] sm:$0xff]  ;;  %v1254_v4 = vld [vmem:[%s9578_s18 + $0x290] sm:$0xff]  ;;  %v7266_v6 = vcombine.high %v1246_v58, %v1250_v59  ;;  %v7265_v11 = vcombine.low %v1246_v58, %v1250_v59  ;;  %v7322_v58 = vcombine.high %v9675_v50, %v9678_v51  ;;  %v963_v59 = vlaneseq }
 0x335   : > { %v1258_v5 = vld [vmem:[%s9578_s18 + $0x2b0] sm:$0xff]  ;;  %v7270_v8 = vcombine.high %v1252_v1, %v1256_v2  ;;  %v1260_v9 = vld [vmem:[%s9578_s18 + $0x2c0] sm:$0xff]  ;;  %v7269_v15 = vcombine.low %v1252_v1, %v1256_v2  ;;  %v953_v1 = vld [vmem:[%s9563_s9] sm:$0xff] }
 0x336   : > { %2896 = vmatpush1.bf16.msra.mxu1 %v7229_v31  ;;  %3060 = vmatpush1.bf16.msra.mxu0 %v7233_v37  ;;  %v1264_v10 = vld [vmem:[%s9578_s18 + $0x2e0] sm:$0xff]  ;;  %v1262_v12 = vld [vmem:[%s9578_s18 + $0x2d0] sm:$0xff]  ;;  %v7274_v14 = vcombine.high %v1254_v4, %v1258_v5  ;;  %v7273_v19 = vcombine.low %v1254_v4, %v1258_v5 }
 0x337   : > { %2897 = vmatprep.subr.bf16.mxu1 %v7238_v32  ;;  %3061 = vmatprep.subr.bf16.mxu0 %v7242_v38  ;;  %v1266_v13 = vld [vmem:[%s9578_s18 + $0x2f0] sm:$0xff]  ;;  %v7278_v16 = vcombine.high %v1260_v9, %v1264_v10  ;;  %v1268_v17 = vld [vmem:[%s9578_s18 + $0x300] sm:$0xff]  ;;  %v7277_v23 = vcombine.low %v1260_v9, %v1264_v10 }
 0x338   : > { %v1272_v18 = vld [vmem:[%s9578_s18 + $0x320] sm:$0xff]  ;;  %v1270_v20 = vld [vmem:[%s9578_s18 + $0x310] sm:$0xff]  ;;  %v7282_v22 = vcombine.high %v1262_v12, %v1266_v13  ;;  %v7281_v27 = vcombine.low %v1262_v12, %v1266_v13  ;;  %v955_v13 = vld [vmem:[%s9570_s13] sm:$0xf] }
 0x339   : > { %v1274_v21 = vld [vmem:[%s9578_s18 + $0x330] sm:$0xff]  ;;  %v7286_v24 = vcombine.high %v1268_v17, %v1272_v18  ;;  %v1276_v25 = vld [vmem:[%s9578_s18 + $0x340] sm:$0xff]  ;;  %v7285_v31 = vcombine.low %v1268_v17, %v1272_v18 }
 0x33a   : > { %2898 = vmatpush1.bf16.msra.mxu1 %v7237_v39  ;;  %3062 = vmatpush1.bf16.msra.mxu0 %v7241_v47  ;;  %v1280_v26 = vld [vmem:[%s9578_s18 + $0x360] sm:$0xff]  ;;  %v1278_v28 = vld [vmem:[%s9578_s18 + $0x350] sm:$0xff]  ;;  %v7290_v30 = vcombine.high %v1270_v20, %v1274_v21  ;;  %v7289_v35 = vcombine.low %v1270_v20, %v1274_v21 }
 0x33b   : > { %2899 = vmatprep.subr.bf16.mxu1 %v7246_v40  ;;  %3063 = vmatprep.subr.bf16.mxu0 %v7250_v52  ;;  %v1282_v29 = vld [vmem:[%s9578_s18 + $0x370] sm:$0xff]  ;;  %v7294_v32 = vcombine.high %v1276_v25, %v1280_v26  ;;  %v1284_v33 = vld [vmem:[%s9578_s18 + $0x380] sm:$0xff]  ;;  %v7293_v39 = vcombine.low %v1276_v25, %v1280_v26 }
 0x33c   : > { %v1288_v34 = vld [vmem:[%s9578_s18 + $0x3a0] sm:$0xff]  ;;  %v1286_v36 = vld [vmem:[%s9578_s18 + $0x390] sm:$0xff]  ;;  %v7298_v38 = vcombine.high %v1278_v28, %v1282_v29  ;;  %v7297_v43 = vcombine.low %v1278_v28, %v1282_v29 }
 0x33d   : > { %v1290_v37 = vld [vmem:[%s9578_s18 + $0x3b0] sm:$0xff]  ;;  %v7302_v40 = vcombine.high %v1284_v33, %v1288_v34  ;;  %v1292_v41 = vld [vmem:[%s9578_s18 + $0x3c0] sm:$0xff]  ;;  %v7301_v49 = vcombine.low %v1284_v33, %v1288_v34 }
 0x33e   : > { %2900 = vmatpush1.bf16.msra.mxu1 %v7245_v53  ;;  %3064 = vmatpush1.bf16.msra.mxu0 %v7249_v57  ;;  %v1296_v42 = vld [vmem:[%s9578_s18 + $0x3e0] sm:$0xff]  ;;  %v1294_v44 = vld [vmem:[%s9578_s18 + $0x3d0] sm:$0xff]  ;;  %v7306_v48 = vcombine.high %v1286_v36, %v1290_v37  ;;  %v7305_v53 = vcombine.low %v1286_v36, %v1290_v37 }
 0x33f   : > { %2901 = vmatprep.subr.bf16.mxu1 %v7254_v54  ;;  %3065 = vmatprep.subr.bf16.mxu0 %v7258_v62  ;;  %v1298_v47 = vld [vmem:[%s9578_s18 + $0x3f0] sm:$0xff]  ;;  %v7310_v52 = vcombine.high %v1292_v41, %v1296_v42  ;;  %v7309_v55 = vcombine.low %v1292_v41, %v1296_v42  ;;  %v9716_v62 = vshrl.u32 %v963_v59, 7  ;;  %v1328_v45 = vld [vmem:[%s9578_s18 + $0x4e0] sm:$0xff] }
 0x340   : > { %v7314_v54 = vcombine.high %v1294_v44, %v1298_v47  ;;  %v7313_v57 = vcombine.low %v1294_v44, %v1298_v47  ;;  %v954_v2 = vld [vmem:[%s9563_s9 + $0x8] sm:$0xff] }
 0x341   : > { %v9730_v4 = vsub.s32 6, %v9716_v62  ;;  %v9737_v9 = vsub.s32 1, %v9716_v62  ;;  %v9749_v17 = vsub.s32 3, %v9716_v62  ;;  %v9752_v18 = vsub.s32 7, %v9716_v62  ;;  %v1326_v46 = vld [vmem:[%s9578_s18 + $0x4d0] sm:$0xff] }
 0x342   : > { %2902 = vmatpush1.bf16.msra.mxu1 %v7253_v63  ;;  %3066 = vmatpush1.bf16.msra.mxu0 %v7257_v3  ;;  %v9719_v63 = vsub.s32 0, %v9716_v62  ;;  %v9727_v3 = vsub.s32 2, %v9716_v62 }
 0x343   : > { %2903 = vmatprep.subr.bf16.mxu1 %v7262_v0  ;;  %3067 = vmatprep.subr.bf16.mxu0 %v7266_v6  ;;  %v9722_v0 = vsub.s32 4, %v9716_v62  ;;  %v1095_v21 = vrot.slane %v954_v2, %v9730_v4  ;;  %v1043_v29 = vrot.slane %v954_v2, %v9737_v9  ;;  %v1135_v33 = vrot.slane %v953_v1, %v9752_v18 }
 0x344   : > { %v966_v5 = vrot.slane %v953_v1, %v9719_v63  ;;  %v1083_v10 = vrot.slane %v953_v1, %v9727_v3  ;;  %v1091_v12 = vrot.slane %v954_v2, %v9727_v3  ;;  %v1007_v26 = vrot.slane %v955_v13, %v9719_v63 }
 0x345   : > { %v970_v6 = vrot.slane %v953_v1, %v9722_v0  ;;  %v1139_v34 = vrot.slane %v954_v2, %v9749_v17  ;;  %v1115_v36 = vrot.slane %v1095_v21, %v9727_v3 }
 0x346   : > { %2904 = vmatpush1.bf16.msra.mxu1 %v7261_v7  ;;  %3068 = vmatpush1.bf16.msra.mxu0 %v7265_v11  ;;  %v974_v7 = vrot.slane %v954_v2, %v9719_v63  ;;  %v1087_v11 = vrot.slane %v953_v1, %v9730_v4  ;;  %v1111_v25 = vrot.slane %v1091_v12, %v9727_v3 }
 0x347   : > { %2905 = vmatprep.subr.bf16.mxu1 %v7270_v8  ;;  %3069 = vmatprep.subr.bf16.mxu0 %v7274_v14  ;;  %v978_v8 = vrot.slane %v954_v2, %v9722_v0  ;;  %v9744_v14 = vsub.s32 5, %v9716_v62 }
 0x349   : > { %v998_v20 = vrot.slane %v978_v8, %v9719_v63  ;;  %v1039_v28 = vrot.slane %v953_v1, %v9744_v14 }
 0x34a   : > { %2906 = vmatpush1.bf16.msra.mxu1 %v7269_v15  ;;  %3070 = vmatpush1.bf16.msra.mxu0 %v7273_v19  ;;  %v986_v15 = vrot.slane %v966_v5, %v9719_v63  ;;  %v994_v19 = vrot.slane %v974_v7, %v9719_v63 }
 0x34b   : > { %2907 = vmatprep.subr.bf16.mxu1 %v7278_v16  ;;  %3071 = vmatprep.subr.bf16.mxu0 %v7282_v22  ;;  %v990_v16 = vrot.slane %v970_v6, %v9719_v63  ;;  %v1035_v22 = vrot.slane %v953_v1, %v9737_v9 }
 0x34e   : > { %2908 = vmatpush1.bf16.msra.mxu1 %v7277_v23  ;;  %3072 = vmatpush1.bf16.msra.mxu0 %v7281_v27  ;;  %v1103_v23 = vrot.slane %v1083_v10, %v9727_v3  ;;  %v1011_v27 = vrot.slane %v955_v13, %v9737_v9 }
 0x34f   : > { %2909 = vmatprep.subr.bf16.mxu1 %v7286_v24  ;;  %3073 = vmatprep.subr.bf16.mxu0 %v7290_v30  ;;  %v1107_v24 = vrot.slane %v1087_v11, %v9727_v3  ;;  %v1047_v30 = vrot.slane %v954_v2, %v9744_v14 }
 0x352   : > { %2910 = vmatpush1.bf16.msra.mxu1 %v7285_v31  ;;  %3074 = vmatpush1.bf16.msra.mxu0 %v7289_v35  ;;  %v1015_v31 = vrot.slane %v955_v13, %v9727_v3 }
 0x353   : > { %2911 = vmatprep.subr.bf16.mxu1 %v7294_v32  ;;  %3075 = vmatprep.subr.bf16.mxu0 %v7298_v38  ;;  %v1131_v32 = vrot.slane %v953_v1, %v9749_v17  ;;  %v1019_v38 = vrot.slane %v955_v13, %v9749_v17 }
 0x356   : > { %2912 = vmatpush1.bf16.msra.mxu1 %v7293_v39  ;;  %3076 = vmatpush1.bf16.msra.mxu0 %v7297_v43  ;;  %v1055_v39 = vrot.slane %v1035_v22, %v9737_v9 }
 0x357   : > { %2913 = vmatprep.subr.bf16.mxu1 %v7302_v40  ;;  %3077 = vmatprep.subr.bf16.mxu0 %v7306_v48  ;;  %v1143_v40 = vrot.slane %v954_v2, %v9752_v18  ;;  %v1059_v48 = vrot.slane %v1039_v28, %v9737_v9 }
 0x35a   : > { %2914 = vmatpush1.bf16.msra.mxu1 %v7301_v49  ;;  %3078 = vmatpush1.bf16.msra.mxu0 %v7305_v53  ;;  %v1063_v49 = vrot.slane %v1043_v29, %v9737_v9 }
 0x35b   : > { %2915 = vmatprep.subr.bf16.mxu1 %v7310_v52  ;;  %3079 = vmatprep.subr.bf16.mxu0 %v7314_v54  ;;  %v1067_v52 = vrot.slane %v1047_v30, %v9737_v9  ;;  %v1151_v54 = vrot.slane %v1131_v32, %v9749_v17  ;;  %v1308_v32 = vld [vmem:[%s9578_s18 + $0x440] sm:$0xff] }
 0x35e   : > { %2916 = vmatpush1.bf16.msra.mxu1 %v7309_v55  ;;  %3080 = vmatpush1.bf16.msra.mxu0 %v7313_v57  ;;  %v1155_v55 = vrot.slane %v1135_v33, %v9749_v17 }
 0x35f   : > { %2926 = vmatprep.subr.bf16.mxu1 %v7318_v56  ;;  %3090 = vmatprep.subr.bf16.mxu0 %v7322_v58  ;;  %v1159_v56 = vrot.slane %v1139_v34, %v9749_v17  ;;  %v1163_v58 = vrot.slane %v1143_v40, %v9749_v17  ;;  %v1312_v34 = vld [vmem:[%s9578_s18 + $0x460] sm:$0xff] }
 0x360   : > { %v7326_v40 = vcombine.high %v1308_v32, %v1312_v34 }
 0x3a3   : > { %v959_v35 = vpop.permute.xlu0 %958  ;;  %v1078_v37 = vpop.permute.xlu1 %1077 }
 0x3a4   : > { %v999_v41 = vmul.f32 %v986_v15, %v959_v35  ;;  %v1000_v42 = vmul.f32 %v990_v16, %v959_v35  ;;  %v1001_v43 = vmul.f32 %v994_v19, %v959_v35  ;;  %v1002_v44 = vmul.f32 %v998_v20, %v959_v35  ;;  %v1310_v35 = vld [vmem:[%s9578_s18 + $0x450] sm:$0xff] }
 0x3a5   : > { %v1118_v47 = vmul.f32 %v1111_v25, %v1078_v37  ;;  %v1116_v57 = vmul.f32 %v1103_v23, %v1078_v37  ;;  %v1117_v59 = vmul.f32 %v1107_v24, %v1078_v37  ;;  %v1119_v13 = vmul.f32 %v1115_v36, %v1078_v37  ;;  %v1314_v36 = vld [vmem:[%s9578_s18 + $0x470] sm:$0xff] }
 0x3a6   : > { %v1026_v53 = vadd.f32 %v1015_v31, %v1001_v43  ;;  %v1024_v1 = vadd.f32 %v1007_v26, %v999_v41  ;;  %v1025_v2 = vadd.f32 %v1011_v27, %v1000_v42  ;;  %v1027_v5 = vadd.f32 %v1019_v38, %v1002_v44  ;;  %v1320_v42 = vld [vmem:[%s9578_s18 + $0x4a0] sm:$0xff]  ;;  %v1318_v43 = vld [vmem:[%s9578_s18 + $0x490] sm:$0xff] }
 0x3a7   : > { %v7330_v41 = vcombine.high %v1310_v35, %v1314_v36  ;;  %v1322_v44 = vld [vmem:[%s9578_s18 + $0x4b0] sm:$0xff] }
 0x3a8   : > { %v1030_v6 = vpop.permute.xlu0 %1029  ;;  %v1126_v7 = vpop.permute.xlu1 %1125  ;;  %v7337_v51 = vcombine.low %v1318_v43, %v1322_v44 }
 0x3a9   : > { %v1068_v8 = vmul.f32 %v1055_v39, %v1030_v6  ;;  %v1069_v10 = vmul.f32 %v1059_v48, %v1030_v6  ;;  %v1070_v11 = vmul.f32 %v1063_v49, %v1030_v6  ;;  %v1071_v12 = vmul.f32 %v1067_v52, %v1030_v6  ;;  %v1316_v39 = vld [vmem:[%s9578_s18 + $0x480] sm:$0xff] }
 0x3aa   : > { %v1164_v15 = vmul.f32 %v1151_v54, %v1126_v7  ;;  %v1165_v16 = vmul.f32 %v1155_v55, %v1126_v7  ;;  %v1166_v19 = vmul.f32 %v1159_v56, %v1126_v7  ;;  %v1167_v24 = vmul.f32 %v1163_v58, %v1126_v7  ;;  %v1324_v54 = vld [vmem:[%s9578_s18 + $0x4c0] sm:$0xff]  ;;  %v1334_v58 = vld [vmem:[%s9578_s18 + $0x510] sm:$0xff] }
 0x3ab   : > { %v1072_v20 = vadd.f32 %v1068_v8, %v1024_v1  ;;  %v1073_v21 = vadd.f32 %v1069_v10, %v1025_v2  ;;  %v1074_v22 = vadd.f32 %v1070_v11, %v1026_v53  ;;  %v1075_v23 = vadd.f32 %v1071_v12, %v1027_v5  ;;  %v1332_v56 = vld [vmem:[%s9578_s18 + $0x500] sm:$0xff]  ;;  %v1342_v10 = vld [vmem:[%s9578_s18 + $0x550] sm:$0xff] }
 0x3ac   : > { %v7325_v48 = vcombine.low %v1308_v32, %v1312_v34  ;;  %v7329_v49 = vcombine.low %v1310_v35, %v1314_v36  ;;  %v7334_v52 = vcombine.high %v1316_v39, %v1320_v42  ;;  %v7338_v53 = vcombine.high %v1318_v43, %v1322_v44  ;;  %v1340_v7 = vld [vmem:[%s9578_s18 + $0x540] sm:$0xff]  ;;  %v1346_v11 = vld [vmem:[%s9578_s18 + $0x570] sm:$0xff] }
 0x3ad   : > { %v1120_v25 = vadd.f32 %v1116_v57, %v1072_v20  ;;  %v1121_v26 = vadd.f32 %v1117_v59, %v1073_v21  ;;  %v1122_v27 = vadd.f32 %v1118_v47, %v1074_v22  ;;  %v1123_v28 = vadd.f32 %v1119_v13, %v1075_v23  ;;  %v1336_v57 = vld [vmem:[%s9578_s18 + $0x520] sm:$0xff]  ;;  %v1338_v59 = vld [vmem:[%s9578_s18 + $0x530] sm:$0xff] }
 0x3ae   : > { %v7333_v50 = vcombine.low %v1316_v39, %v1320_v42  ;;  %v7341_v1 = vcombine.low %v1324_v54, %v1328_v45  ;;  %v7350_v5 = vcombine.high %v1332_v56, %v1336_v57  ;;  %v7354_v6 = vcombine.high %v1334_v58, %v1338_v59  ;;  %v1344_v8 = vld [vmem:[%s9578_s18 + $0x560] sm:$0xff]  ;;  %v1350_v21 = vld [vmem:[%s9578_s18 + $0x590] sm:$0xff] }
 0x3af   : > { %v1168_v29 = vadd.f32 %v1164_v15, %v1120_v25  ;;  %v1169_v30 = vadd.f32 %v1165_v16, %v1121_v26  ;;  %v9781_v31 = vadd.f32 %v1166_v19, %v1122_v27  ;;  %v1171_v33 = vadd.f32 %v1167_v24, %v1123_v28  ;;  %v1348_v19 = vld [vmem:[%s9578_s18 + $0x580] sm:$0xff]  ;;  %v1354_v22 = vld [vmem:[%s9578_s18 + $0x5b0] sm:$0xff] }
 0x3b0   : > { %v7349_v12 = vcombine.low %v1332_v56, %v1336_v57  ;;  %v7353_v13 = vcombine.low %v1334_v58, %v1338_v59  ;;  %v7358_v15 = vcombine.high %v1340_v7, %v1344_v8  ;;  %v7362_v16 = vcombine.high %v1342_v10, %v1346_v11  ;;  %v1352_v20 = vld [vmem:[%s9578_s18 + $0x5a0] sm:$0xff]  ;;  %v1386_v56 = vld [vmem:[%s9578_s18 + $0x6b0] sm:$0xff] }
 0x3b1   : > { %v9787_v37 = vpack.c.bf16 %v1168_v29, %v1168_v29  ;;  %v9789_v38 = vpack.c.bf16 %v1169_v30, %v1169_v30  ;;  %v9797_v47 = vpack.c.bf16 %v1171_v33, %v1171_v33  ;;  %v7357_v23 = vcombine.low %v1340_v7, %v1344_v8  ;;  %v1356_v27 = vld [vmem:[%s9578_s18 + $0x5c0] sm:$0xff]  ;;  %v1358_v29 = vld [vmem:[%s9578_s18 + $0x5d0] sm:$0xff] }
 0x3b2   : > { %v7361_v24 = vcombine.low %v1342_v10, %v1346_v11  ;;  %v7366_v25 = vcombine.high %v1348_v19, %v1352_v20  ;;  %v7370_v26 = vcombine.high %v1350_v21, %v1354_v22  ;;  %v1360_v28 = vld [vmem:[%s9578_s18 + $0x5e0] sm:$0xff]  ;;  %v1362_v30 = vld [vmem:[%s9578_s18 + $0x5f0] sm:$0xff]  ;;  %v7365_v32 = vcombine.low %v1348_v19, %v1352_v20 }
 0x3b3   : > { %2917 = vmatprep.mubr.bf16.mxu1 %v9789_v38  ;;  %3081 = vmatprep.mubr.bf16.mxu0 %v9789_v38  ;;  %v7369_v33 = vcombine.low %v1350_v21, %v1354_v22  ;;  %v7374_v34 = vcombine.high %v1356_v27, %v1360_v28  ;;  %v7378_v35 = vcombine.high %v1358_v29, %v1362_v30  ;;  %v1364_v36 = vld [vmem:[%s9578_s18 + $0x600] sm:$0xff]  ;;  %v1394_v7 = vld [vmem:[%s9578_s18 + $0x6f0] sm:$0xff] }
 0x3b4   : > { %2918 = vmatmul.mubr.bf16.vlgmr.msra.gmra.mrb[0].mxu1 %v9787_v37  ;;  %3082 = vmatmul.mubr.bf16.vlgmr.msra.gmra.mrb[0].mxu0 %v9787_v37  ;;  %v1368_v39 = vld [vmem:[%s9578_s18 + $0x620] sm:$0xff]  ;;  %v7373_v42 = vcombine.low %v1356_v27, %v1360_v28  ;;  %v7377_v43 = vcombine.low %v1358_v29, %v1362_v30  ;;  %v1402_v19 = vld [vmem:[%s9578_s18 + $0x730] sm:$0xff] }
 0x3b5   : > { %2927 = vmatpush1.bf16.msra.mxu1 %v7317_v60  ;;  %3091 = vmatpush1.bf16.msra.mxu0 %v7321_v61  ;;  %v1330_v60 = vld [vmem:[%s9578_s18 + $0x4f0] sm:$0xff]  ;;  %v7342_v61 = vcombine.high %v1324_v54, %v1328_v45  ;;  %v7382_v44 = vcombine.high %v1364_v36, %v1368_v39  ;;  %v7381_v45 = vcombine.low %v1364_v36, %v1368_v39 }
 0x3b6   : > { %2958 = vmatprep.mubr.bf16.mxu1 %v9797_v47  ;;  %3122 = vmatprep.mubr.bf16.mxu0 %v9797_v47  ;;  %v7346_v55 = vcombine.high %v1326_v46, %v1330_v60  ;;  %v7345_v2 = vcombine.low %v1326_v46, %v1330_v60  ;;  %v1378_v54 = vld [vmem:[%s9578_s18 + $0x670] sm:$0xff] }
 0x3b7   : > { %2928 = vmatprep.subr.bf16.mxu1 %v7326_v40  ;;  %3092 = vmatprep.subr.bf16.mxu0 %v7330_v41  ;;  %v1366_v40 = vld [vmem:[%s9578_s18 + $0x610] sm:$0xff] }
 0x3b8   : > { %v1370_v41 = vld [vmem:[%s9578_s18 + $0x630] sm:$0xff] }
 0x3b9   : > { %2929 = vmatpush1.bf16.msra.mxu1 %v7325_v48  ;;  %3093 = vmatpush1.bf16.msra.mxu0 %v7329_v49  ;;  %v7386_v48 = vcombine.high %v1366_v40, %v1370_v41  ;;  %v1372_v49 = vld [vmem:[%s9578_s18 + $0x640] sm:$0xff]  ;;  %v7385_v46 = vcombine.low %v1366_v40, %v1370_v41  ;;  %v1410_v27 = vld [vmem:[%s9578_s18 + $0x770] sm:$0xff] }
 0x3ba   : > { %2930 = vmatprep.subr.bf16.mxu1 %v7334_v52  ;;  %3094 = vmatprep.subr.bf16.mxu0 %v7338_v53  ;;  %v1376_v52 = vld [vmem:[%s9578_s18 + $0x660] sm:$0xff]  ;;  %v1374_v53 = vld [vmem:[%s9578_s18 + $0x650] sm:$0xff] }
 0x3bb   : > { %v7390_v60 = vcombine.high %v1372_v49, %v1376_v52  ;;  %v7389_v57 = vcombine.low %v1372_v49, %v1376_v52  ;;  %v7393_v58 = vcombine.low %v1374_v53, %v1378_v54  ;;  %v1418_v36 = vld [vmem:[%s9578_s18 + $0x7b0] sm:$0xff] }
 0x3bc   : > { %v1426_v49 = vld [vmem:[%s9578_s18 + $0x7f0] sm:$0xff] }
 0x3bd   : > { %2931 = vmatpush1.bf16.msra.mxu1 %v7333_v50  ;;  %3095 = vmatpush1.bf16.msra.mxu0 %v7337_v51  ;;  %v7394_v50 = vcombine.high %v1374_v53, %v1378_v54  ;;  %v1380_v51 = vld [vmem:[%s9578_s18 + $0x680] sm:$0xff] }
 0x3be   : > { %2932 = vmatprep.subr.bf16.mxu1 %v7342_v61  ;;  %3096 = vmatprep.subr.bf16.mxu0 %v7346_v55  ;;  %v1384_v61 = vld [vmem:[%s9578_s18 + $0x6a0] sm:$0xff]  ;;  %v1382_v55 = vld [vmem:[%s9578_s18 + $0x690] sm:$0xff] }
 0x3bf   : > { %v7398_v59 = vcombine.high %v1380_v51, %v1384_v61  ;;  %v7397_v8 = vcombine.low %v1380_v51, %v1384_v61  ;;  %v7401_v10 = vcombine.low %v1382_v55, %v1386_v56 }
 0x3c1   : > { %2933 = vmatpush1.bf16.msra.mxu1 %v7341_v1  ;;  %3097 = vmatpush1.bf16.msra.mxu0 %v7345_v2  ;;  %v7402_v1 = vcombine.high %v1382_v55, %v1386_v56  ;;  %v1388_v2 = vld [vmem:[%s9578_s18 + $0x6c0] sm:$0xff]  ;;  %v1181_v55 = vld [vmem:[%s9578_s18 + $0x48] sm:$0xff] }
 0x3c2   : > { %2934 = vmatprep.subr.bf16.mxu1 %v7350_v5  ;;  %3098 = vmatprep.subr.bf16.mxu0 %v7354_v6  ;;  %v1392_v5 = vld [vmem:[%s9578_s18 + $0x6e0] sm:$0xff]  ;;  %v1390_v6 = vld [vmem:[%s9578_s18 + $0x6d0] sm:$0xff]  ;;  %v1185_v56 = vld [vmem:[%s9578_s18 + $0x68] sm:$0xff] }
 0x3c3   : > { %v7406_v11 = vcombine.high %v1388_v2, %v1392_v5  ;;  %v7405_v20 = vcombine.low %v1388_v2, %v1392_v5  ;;  %v7409_v21 = vcombine.low %v1390_v6, %v1394_v7  ;;  %v1193_v2 = vld [vmem:[%s9578_s18 + $0xa8] sm:$0xff]  ;;  %v7199_v5 = vcombine.low %v1181_v55, %v1185_v56 }
 0x3c5   : > { %2935 = vmatpush1.bf16.msra.mxu1 %v7349_v12  ;;  %3099 = vmatpush1.bf16.msra.mxu0 %v7353_v13  ;;  %v7410_v12 = vcombine.high %v1390_v6, %v1394_v7  ;;  %v1396_v13 = vld [vmem:[%s9578_s18 + $0x700] sm:$0xff]  ;;  %v1201_v7 = vld [vmem:[%s9578_s18 + $0xe8] sm:$0xff] }
 0x3c6   : > { %2936 = vmatprep.subr.bf16.mxu1 %v7358_v15  ;;  %3100 = vmatprep.subr.bf16.mxu0 %v7362_v16  ;;  %v1400_v15 = vld [vmem:[%s9578_s18 + $0x720] sm:$0xff]  ;;  %v1398_v16 = vld [vmem:[%s9578_s18 + $0x710] sm:$0xff] }
 0x3c7   : > { %v7414_v22 = vcombine.high %v1396_v13, %v1400_v15  ;;  %v7413_v28 = vcombine.low %v1396_v13, %v1400_v15  ;;  %v7417_v29 = vcombine.low %v1398_v16, %v1402_v19 }
 0x3c9   : > { %2937 = vmatpush1.bf16.msra.mxu1 %v7357_v23  ;;  %3101 = vmatpush1.bf16.msra.mxu0 %v7361_v24  ;;  %v7418_v23 = vcombine.high %v1398_v16, %v1402_v19  ;;  %v1404_v24 = vld [vmem:[%s9578_s18 + $0x740] sm:$0xff]  ;;  %v1213_v16 = vld [vmem:[%s9578_s18 + $0x148] sm:$0xff] }
 0x3ca   : > { %2938 = vmatprep.subr.bf16.mxu1 %v7366_v25  ;;  %3102 = vmatprep.subr.bf16.mxu0 %v7370_v26  ;;  %v1408_v25 = vld [vmem:[%s9578_s18 + $0x760] sm:$0xff]  ;;  %v1406_v26 = vld [vmem:[%s9578_s18 + $0x750] sm:$0xff]  ;;  %v1217_v19 = vld [vmem:[%s9578_s18 + $0x168] sm:$0xff] }
 0x3cb   : > { %v7422_v30 = vcombine.high %v1404_v24, %v1408_v25  ;;  %v7421_v39 = vcombine.low %v1404_v24, %v1408_v25  ;;  %v7425_v40 = vcombine.low %v1406_v26, %v1410_v27  ;;  %v7231_v24 = vcombine.low %v1213_v16, %v1217_v19 }
 0x3cd   : > { %2939 = vmatpush1.bf16.msra.mxu1 %v7365_v32  ;;  %3103 = vmatpush1.bf16.msra.mxu0 %v7369_v33  ;;  %v7426_v32 = vcombine.high %v1406_v26, %v1410_v27  ;;  %v1412_v33 = vld [vmem:[%s9578_s18 + $0x780] sm:$0xff]  ;;  %v1229_v26 = vld [vmem:[%s9578_s18 + $0x1c8] sm:$0xff] }
 0x3ce   : > { %2940 = vmatprep.subr.bf16.mxu1 %v7374_v34  ;;  %3104 = vmatprep.subr.bf16.mxu0 %v7378_v35  ;;  %v1416_v34 = vld [vmem:[%s9578_s18 + $0x7a0] sm:$0xff]  ;;  %v1414_v35 = vld [vmem:[%s9578_s18 + $0x790] sm:$0xff]  ;;  %v1233_v27 = vld [vmem:[%s9578_s18 + $0x1e8] sm:$0xff] }
 0x3cf   : > { %v7430_v41 = vcombine.high %v1412_v33, %v1416_v34  ;;  %v7429_v52 = vcombine.low %v1412_v33, %v1416_v34  ;;  %v7433_v53 = vcombine.low %v1414_v35, %v1418_v36  ;;  %v7247_v33 = vcombine.low %v1229_v26, %v1233_v27 }
 0x3d1   : > { %2941 = vmatpush1.bf16.msra.mxu1 %v7373_v42  ;;  %3105 = vmatpush1.bf16.msra.mxu0 %v7377_v43  ;;  %v7434_v42 = vcombine.high %v1414_v35, %v1418_v36  ;;  %v1420_v43 = vld [vmem:[%s9578_s18 + $0x7c0] sm:$0xff]  ;;  %v1245_v35 = vld [vmem:[%s9578_s18 + $0x248] sm:$0xff] }
 0x3d2   : > { %2942 = vmatprep.subr.bf16.mxu1 %v7382_v44  ;;  %3106 = vmatprep.subr.bf16.mxu0 %v7386_v48  ;;  %v1424_v44 = vld [vmem:[%s9578_s18 + $0x7e0] sm:$0xff]  ;;  %v1422_v48 = vld [vmem:[%s9578_s18 + $0x7d0] sm:$0xff]  ;;  %v1249_v36 = vld [vmem:[%s9578_s18 + $0x268] sm:$0xff] }
 0x3d3   : > { %v7438_v54 = vcombine.high %v1420_v43, %v1424_v44  ;;  %v7441_v51 = vcombine.low %v1422_v48, %v1426_v49 }
 0x3d5   : > { %2943 = vmatpush1.bf16.msra.mxu1 %v7381_v45  ;;  %3107 = vmatpush1.bf16.msra.mxu0 %v7385_v46  ;;  %v7442_v45 = vcombine.high %v1422_v48, %v1426_v49  ;;  %v1173_v46 = vld [vmem:[%s9578_s18 + $0x8] sm:$0xff] }
 0x3d6   : > { %2944 = vmatprep.subr.bf16.mxu1 %v7390_v60  ;;  %3108 = vmatprep.subr.bf16.mxu0 %v7394_v50  ;;  %v1177_v60 = vld [vmem:[%s9578_s18 + $0x28] sm:$0xff]  ;;  %v7437_v50 = vcombine.low %v1420_v43, %v1424_v44  ;;  %v7263_v43 = vcombine.low %v1245_v35, %v1249_v36 }
 0x3d7   : > { %v7192_v61 = vcombine.high %v1173_v46, %v1177_v60  ;;  %v1261_v48 = vld [vmem:[%s9578_s18 + $0x2c8] sm:$0xff] }
 0x3d8   : > { %v1265_v49 = vld [vmem:[%s9578_s18 + $0x2e8] sm:$0xff] }
 0x3d9   : > { %2945 = vmatpush1.bf16.msra.mxu1 %v7389_v57  ;;  %3109 = vmatpush1.bf16.msra.mxu0 %v7393_v58  ;;  %v7191_v57 = vcombine.low %v1173_v46, %v1177_v60  ;;  %v9867_v58 = vpack.c.bf16 %v9781_v31, %v9781_v31  ;;  %v1197_v31 = vld [vmem:[%s9578_s18 + $0xc8] sm:$0xff]  ;;  %v7279_v46 = vcombine.low %v1261_v48, %v1265_v49 }
 0x3da   : > { %2946 = vmatprep.subr.bf16.mxu1 %v7398_v59  ;;  %3110 = vmatprep.subr.bf16.mxu0 %v7402_v1  ;;  %v7200_v59 = vcombine.high %v1181_v55, %v1185_v56  ;;  %v1189_v1 = vld [vmem:[%s9578_s18 + $0x88] sm:$0xff]  ;;  %v7215_v13 = vcombine.low %v1197_v31, %v1201_v7 }
 0x3db   : > { %v7208_v6 = vcombine.high %v1189_v1, %v1193_v2  ;;  %v1285_v56 = vld [vmem:[%s9578_s18 + $0x388] sm:$0xff] }
 0x3dd   : > { %2947 = vmatpush1.bf16.msra.mxu1 %v7397_v8  ;;  %3111 = vmatpush1.bf16.msra.mxu0 %v7401_v10  ;;  %v7207_v8 = vcombine.low %v1189_v1, %v1193_v2  ;;  %v7216_v10 = vcombine.high %v1197_v31, %v1201_v7  ;;  %v1293_v2 = vld [vmem:[%s9578_s18 + $0x3c8] sm:$0xff] }
 0x3de   : > { %2948 = vmatprep.subr.bf16.mxu1 %v7406_v11  ;;  %3112 = vmatprep.subr.bf16.mxu0 %v7410_v12  ;;  %v1205_v11 = vld [vmem:[%s9578_s18 + $0x108] sm:$0xff] }
 0x3df   : > { %v1209_v12 = vld [vmem:[%s9578_s18 + $0x128] sm:$0xff] }
 0x3e0   : > { %v7224_v15 = vcombine.high %v1205_v11, %v1209_v12  ;;  %v1301_v7 = vld [vmem:[%s9578_s18 + $0x408] sm:$0xff] }
 0x3e1   : > { %2949 = vmatpush1.bf16.msra.mxu1 %v7405_v20  ;;  %3113 = vmatpush1.bf16.msra.mxu0 %v7409_v21  ;;  %v7223_v20 = vcombine.low %v1205_v11, %v1209_v12  ;;  %v7232_v21 = vcombine.high %v1213_v16, %v1217_v19  ;;  %v1309_v12 = vld [vmem:[%s9578_s18 + $0x448] sm:$0xff] }
 0x3e2   : > { %2950 = vmatprep.subr.bf16.mxu1 %v7414_v22  ;;  %3114 = vmatprep.subr.bf16.mxu0 %v7418_v23  ;;  %v1221_v22 = vld [vmem:[%s9578_s18 + $0x188] sm:$0xff] }
 0x3e3   : > { %v1225_v23 = vld [vmem:[%s9578_s18 + $0x1a8] sm:$0xff] }
 0x3e4   : > { %v7240_v25 = vcombine.high %v1221_v22, %v1225_v23  ;;  %v1317_v19 = vld [vmem:[%s9578_s18 + $0x488] sm:$0xff] }
 0x3e5   : > { %2951 = vmatpush1.bf16.msra.mxu1 %v7413_v28  ;;  %3115 = vmatpush1.bf16.msra.mxu0 %v7417_v29  ;;  %v7239_v28 = vcombine.low %v1221_v22, %v1225_v23  ;;  %v7248_v29 = vcombine.high %v1229_v26, %v1233_v27  ;;  %v1325_v23 = vld [vmem:[%s9578_s18 + $0x4c8] sm:$0xff] }
 0x3e6   : > { %2952 = vmatprep.subr.bf16.mxu1 %v7422_v30  ;;  %3116 = vmatprep.subr.bf16.mxu0 %v7426_v32  ;;  %v1237_v30 = vld [vmem:[%s9578_s18 + $0x208] sm:$0xff] }
 0x3e7   : > { %v1241_v32 = vld [vmem:[%s9578_s18 + $0x228] sm:$0xff] }
 0x3e8   : > { %v7256_v34 = vcombine.high %v1237_v30, %v1241_v32  ;;  %v1333_v27 = vld [vmem:[%s9578_s18 + $0x508] sm:$0xff] }
 0x3e9   : > { %2953 = vmatpush1.bf16.msra.mxu1 %v7421_v39  ;;  %3117 = vmatpush1.bf16.msra.mxu0 %v7425_v40  ;;  %v7255_v39 = vcombine.low %v1237_v30, %v1241_v32  ;;  %v7264_v40 = vcombine.high %v1245_v35, %v1249_v36  ;;  %v1341_v32 = vld [vmem:[%s9578_s18 + $0x548] sm:$0xff] }
 0x3ea   : > { %2954 = vmatprep.subr.bf16.mxu1 %v7430_v41  ;;  %3118 = vmatprep.subr.bf16.mxu0 %v7434_v42  ;;  %v1253_v41 = vld [vmem:[%s9578_s18 + $0x288] sm:$0xff] }
 0x3eb   : > { %v1257_v42 = vld [vmem:[%s9578_s18 + $0x2a8] sm:$0xff] }
 0x3ec   : > { %v7272_v44 = vcombine.high %v1253_v41, %v1257_v42  ;;  %v1349_v36 = vld [vmem:[%s9578_s18 + $0x588] sm:$0xff] }
 0x3ed   : > { %2955 = vmatpush1.bf16.msra.mxu1 %v7429_v52  ;;  %3119 = vmatpush1.bf16.msra.mxu0 %v7433_v53  ;;  %v7271_v52 = vcombine.low %v1253_v41, %v1257_v42  ;;  %v7280_v53 = vcombine.high %v1261_v48, %v1265_v49  ;;  %v1357_v42 = vld [vmem:[%s9578_s18 + $0x5c8] sm:$0xff] }
 0x3ee   : > { %2956 = vmatprep.subr.bf16.mxu1 %v7438_v54  ;;  %3120 = vmatprep.subr.bf16.mxu0 %v7442_v45  ;;  %v1269_v54 = vld [vmem:[%s9578_s18 + $0x308] sm:$0xff] }
 0x3ef   : > { %v1273_v45 = vld [vmem:[%s9578_s18 + $0x328] sm:$0xff] }
 0x3f0   : > { %v7288_v60 = vcombine.high %v1269_v54, %v1273_v45  ;;  %v1365_v49 = vld [vmem:[%s9578_s18 + $0x608] sm:$0xff] }
 0x3f1   : > { %2957 = vmatpush1.bf16.msra.mxu1 %v7437_v50  ;;  %3121 = vmatpush1.bf16.msra.mxu0 %v7441_v51  ;;  %v1277_v50 = vld [vmem:[%s9578_s18 + $0x348] sm:$0xff] }
 0x3f2   : > { %2967 = vmatprep.subr.bf16.mxu1 %v7192_v61  ;;  %v1281_v51 = vld [vmem:[%s9578_s18 + $0x368] sm:$0xff]  ;;  %v7287_v61 = vcombine.low %v1269_v54, %v1273_v45 }
 0x3f3   : > { %v7296_v55 = vcombine.high %v1277_v50, %v1281_v51  ;;  %v1373_v45 = vld [vmem:[%s9578_s18 + $0x648] sm:$0xff] }
 0x3f4   : > { %2959 = vmatmul.mubr.bf16.vlgmr.msra.gmra.mrb[0].mxu1 %v9867_v58  ;;  %3123 = vmatmul.mubr.bf16.vlgmr.msra.gmra.mrb[0].mxu0 %v9867_v58 }
 0x3f5   : > { %2968 = vmatpush1.bf16.msra.mxu1 %v7191_v57  ;;  %2999 = vmatprep.mubr.bf16.mxu1 %v9789_v38  ;;  %v1289_v57 = vld [vmem:[%s9578_s18 + $0x3a8] sm:$0xff] }
 0x3f6   : > { %2969 = vmatprep.subr.bf16.mxu1 %v7200_v59  ;;  %v7295_v59 = vcombine.low %v1277_v50, %v1281_v51  ;;  %v7304_v1 = vcombine.high %v1285_v56, %v1289_v57  ;;  %v1381_v51 = vld [vmem:[%s9578_s18 + $0x688] sm:$0xff] }
 0x3f9   : > { %2970 = vmatpush1.bf16.msra.mxu1 %v7199_v5  ;;  %v1297_v5 = vld [vmem:[%s9578_s18 + $0x3e8] sm:$0xff] }
 0x3fa   : > { %2971 = vmatprep.subr.bf16.mxu1 %v7208_v6  ;;  %v7303_v6 = vcombine.low %v1285_v56, %v1289_v57  ;;  %v7312_v31 = vcombine.high %v1293_v2, %v1297_v5  ;;  %v1389_v57 = vld [vmem:[%s9578_s18 + $0x6c8] sm:$0xff] }
 0x3fd   : > { %2972 = vmatpush1.bf16.msra.mxu1 %v7207_v8  ;;  %v1305_v8 = vld [vmem:[%s9578_s18 + $0x428] sm:$0xff] }
 0x3fe   : > { %2973 = vmatprep.subr.bf16.mxu1 %v7216_v10  ;;  %v7311_v10 = vcombine.low %v1293_v2, %v1297_v5  ;;  %v7320_v11 = vcombine.high %v1301_v7, %v1305_v8  ;;  %v1397_v5 = vld [vmem:[%s9578_s18 + $0x708] sm:$0xff] }
 0x401   : > { %2974 = vmatpush1.bf16.msra.mxu1 %v7215_v13  ;;  %v1313_v13 = vld [vmem:[%s9578_s18 + $0x468] sm:$0xff] }
 0x402   : > { %2975 = vmatprep.subr.bf16.mxu1 %v7224_v15  ;;  %v7319_v15 = vcombine.low %v1301_v7, %v1305_v8  ;;  %v7328_v16 = vcombine.high %v1309_v12, %v1313_v13  ;;  %v1405_v8 = vld [vmem:[%s9578_s18 + $0x748] sm:$0xff] }
 0x405   : > { %2976 = vmatpush1.bf16.msra.mxu1 %v7223_v20  ;;  %v1321_v20 = vld [vmem:[%s9578_s18 + $0x4a8] sm:$0xff] }
 0x406   : > { %2977 = vmatprep.subr.bf16.mxu1 %v7232_v21  ;;  %v7327_v21 = vcombine.low %v1309_v12, %v1313_v13  ;;  %v7336_v22 = vcombine.high %v1317_v19, %v1321_v20  ;;  %v1413_v13 = vld [vmem:[%s9578_s18 + $0x788] sm:$0xff] }
 0x409   : > { %2978 = vmatpush1.bf16.msra.mxu1 %v7231_v24  ;;  %v1329_v24 = vld [vmem:[%s9578_s18 + $0x4e8] sm:$0xff] }
 0x40a   : > { %2979 = vmatprep.subr.bf16.mxu1 %v7240_v25  ;;  %v7335_v25 = vcombine.low %v1317_v19, %v1321_v20  ;;  %v7344_v26 = vcombine.high %v1325_v23, %v1329_v24  ;;  %v1421_v20 = vld [vmem:[%s9578_s18 + $0x7c8] sm:$0xff] }
 0x40d   : > { %2980 = vmatpush1.bf16.msra.mxu1 %v7239_v28  ;;  %v1337_v28 = vld [vmem:[%s9578_s18 + $0x528] sm:$0xff] }
 0x40e   : > { %2981 = vmatprep.subr.bf16.mxu1 %v7248_v29  ;;  %v7343_v29 = vcombine.low %v1325_v23, %v1329_v24  ;;  %v7352_v30 = vcombine.high %v1333_v27, %v1337_v28  ;;  %v1175_v24 = vld [vmem:[%s9578_s18 + $0x18] sm:$0xff] }
 0x411   : > { %2982 = vmatpush1.bf16.msra.mxu1 %v7247_v33  ;;  %v1345_v33 = vld [vmem:[%s9578_s18 + $0x568] sm:$0xff] }
 0x412   : > { %2983 = vmatprep.subr.bf16.mxu1 %v7256_v34  ;;  %v7351_v34 = vcombine.low %v1333_v27, %v1337_v28  ;;  %v7360_v35 = vcombine.high %v1341_v32, %v1345_v33  ;;  %v1183_v28 = vld [vmem:[%s9578_s18 + $0x58] sm:$0xff] }
 0x415   : > { %2984 = vmatpush1.bf16.msra.mxu1 %v7255_v39  ;;  %v1353_v39 = vld [vmem:[%s9578_s18 + $0x5a8] sm:$0xff] }
 0x416   : > { %2985 = vmatprep.subr.bf16.mxu1 %v7264_v40  ;;  %v7359_v40 = vcombine.low %v1341_v32, %v1345_v33  ;;  %v7368_v41 = vcombine.high %v1349_v36, %v1353_v39  ;;  %v1191_v33 = vld [vmem:[%s9578_s18 + $0x98] sm:$0xff] }
 0x419   : > { %2986 = vmatpush1.bf16.msra.mxu1 %v7263_v43  ;;  %v1361_v43 = vld [vmem:[%s9578_s18 + $0x5e8] sm:$0xff] }
 0x41a   : > { %2987 = vmatprep.subr.bf16.mxu1 %v7272_v44  ;;  %v7367_v44 = vcombine.low %v1349_v36, %v1353_v39  ;;  %v7376_v48 = vcombine.high %v1357_v42, %v1361_v43  ;;  %v1199_v39 = vld [vmem:[%s9578_s18 + $0xd8] sm:$0xff] }
 0x41d   : > { %2988 = vmatpush1.bf16.msra.mxu1 %v7271_v52  ;;  %v1369_v52 = vld [vmem:[%s9578_s18 + $0x628] sm:$0xff] }
 0x41e   : > { %2989 = vmatprep.subr.bf16.mxu1 %v7280_v53  ;;  %v7375_v53 = vcombine.low %v1357_v42, %v1361_v43  ;;  %v7384_v54 = vcombine.high %v1365_v49, %v1369_v52  ;;  %v1207_v43 = vld [vmem:[%s9578_s18 + $0x118] sm:$0xff] }
 0x421   : > { %2990 = vmatpush1.bf16.msra.mxu1 %v7279_v46  ;;  %v1377_v46 = vld [vmem:[%s9578_s18 + $0x668] sm:$0xff] }
 0x422   : > { %2991 = vmatprep.subr.bf16.mxu1 %v7288_v60  ;;  %v7383_v60 = vcombine.low %v1365_v49, %v1369_v52  ;;  %v7392_v50 = vcombine.high %v1373_v45, %v1377_v46  ;;  %v1215_v49 = vld [vmem:[%s9578_s18 + $0x158] sm:$0xff] }
 0x423   : > { %v1219_v52 = vld [vmem:[%s9578_s18 + $0x178] sm:$0xff] }
 0x425   : > { %2992 = vmatpush1.bf16.msra.mxu1 %v7287_v61  ;;  %v1385_v61 = vld [vmem:[%s9578_s18 + $0x6a8] sm:$0xff] }
 0x426   : > { %2993 = vmatprep.subr.bf16.mxu1 %v7296_v55  ;;  %v7391_v55 = vcombine.low %v1373_v45, %v1377_v46  ;;  %v7400_v56 = vcombine.high %v1381_v51, %v1385_v61  ;;  %v1223_v45 = vld [vmem:[%s9578_s18 + $0x198] sm:$0xff] }
 0x427   : > { %v1227_v46 = vld [vmem:[%s9578_s18 + $0x1b8] sm:$0xff] }
 0x429   : > { %2994 = vmatpush1.bf16.msra.mxu1 %v7295_v59  ;;  %v1393_v59 = vld [vmem:[%s9578_s18 + $0x6e8] sm:$0xff] }
 0x42a   : > { %2995 = vmatprep.subr.bf16.mxu1 %v7304_v1  ;;  %v7399_v1 = vcombine.low %v1381_v51, %v1385_v61  ;;  %v7408_v2 = vcombine.high %v1389_v57, %v1393_v59  ;;  %v1231_v51 = vld [vmem:[%s9578_s18 + $0x1d8] sm:$0xff] }
 0x42b   : > { %v1235_v61 = vld [vmem:[%s9578_s18 + $0x1f8] sm:$0xff] }
 0x42d   : > { %2996 = vmatpush1.bf16.msra.mxu1 %v7303_v6  ;;  %v1401_v6 = vld [vmem:[%s9578_s18 + $0x728] sm:$0xff] }
 0x42e   : > { %2997 = vmatprep.subr.bf16.mxu1 %v7312_v31  ;;  %v7407_v31 = vcombine.low %v1389_v57, %v1393_v59  ;;  %v7416_v7 = vcombine.high %v1397_v5, %v1401_v6  ;;  %v1239_v57 = vld [vmem:[%s9578_s18 + $0x218] sm:$0xff] }
 0x42f   : > { %v1243_v59 = vld [vmem:[%s9578_s18 + $0x238] sm:$0xff] }
 0x431   : > { %2998 = vmatpush1.bf16.msra.mxu1 %v7311_v10  ;;  %v1409_v10 = vld [vmem:[%s9578_s18 + $0x768] sm:$0xff] }
 0x432   : > { %3008 = vmatprep.subr.bf16.mxu1 %v7320_v11  ;;  %v7415_v11 = vcombine.low %v1397_v5, %v1401_v6  ;;  %v7424_v12 = vcombine.high %v1405_v8, %v1409_v10  ;;  %v1247_v5 = vld [vmem:[%s9578_s18 + $0x258] sm:$0xff] }
 0x433   : > { %v1251_v6 = vld [vmem:[%s9578_s18 + $0x278] sm:$0xff] }
 0x434   : > { %3000 = vmatmul.mubr.bf16.vlgmr.msra.gmra.mrb[4].mxu1 %v9787_v37 }
 0x435   : > { %3009 = vmatpush1.bf16.msra.mxu1 %v7319_v15  ;;  %3040 = vmatprep.mubr.bf16.mxu1 %v9797_v47  ;;  %v1417_v15 = vld [vmem:[%s9578_s18 + $0x7a8] sm:$0xff] }
 0x436   : > { %3010 = vmatprep.subr.bf16.mxu1 %v7328_v16  ;;  %v7423_v16 = vcombine.low %v1405_v8, %v1409_v10  ;;  %v7432_v19 = vcombine.high %v1413_v13, %v1417_v15  ;;  %v1255_v8 = vld [vmem:[%s9578_s18 + $0x298] sm:$0xff] }
 0x437   : > { %v1259_v10 = vld [vmem:[%s9578_s18 + $0x2b8] sm:$0xff] }
 0x439   : > { %3011 = vmatpush1.bf16.msra.mxu1 %v7327_v21  ;;  %v1425_v21 = vld [vmem:[%s9578_s18 + $0x7e8] sm:$0xff] }
 0x43a   : > { %3012 = vmatprep.subr.bf16.mxu1 %v7336_v22  ;;  %v7431_v22 = vcombine.low %v1413_v13, %v1417_v15  ;;  %v7440_v23 = vcombine.high %v1421_v20, %v1425_v21  ;;  %v1263_v13 = vld [vmem:[%s9578_s18 + $0x2d8] sm:$0xff] }
 0x43b   : > { %v1267_v15 = vld [vmem:[%s9578_s18 + $0x2f8] sm:$0xff] }
 0x43d   : > { %3013 = vmatpush1.bf16.msra.mxu1 %v7335_v25  ;;  %v1179_v25 = vld [vmem:[%s9578_s18 + $0x38] sm:$0xff] }
 0x43e   : > { %3014 = vmatprep.subr.bf16.mxu1 %v7344_v26  ;;  %v7439_v26 = vcombine.low %v1421_v20, %v1425_v21  ;;  %v7196_v27 = vcombine.high %v1175_v24, %v1179_v25  ;;  %v1271_v20 = vld [vmem:[%s9578_s18 + $0x318] sm:$0xff] }
 0x43f   : > { %v1275_v21 = vld [vmem:[%s9578_s18 + $0x338] sm:$0xff] }
 0x441   : > { %3015 = vmatpush1.bf16.msra.mxu1 %v7343_v29  ;;  %v1187_v29 = vld [vmem:[%s9578_s18 + $0x78] sm:$0xff] }
 0x442   : > { %3016 = vmatprep.subr.bf16.mxu1 %v7352_v30  ;;  %v7195_v30 = vcombine.low %v1175_v24, %v1179_v25  ;;  %v7204_v32 = vcombine.high %v1183_v28, %v1187_v29  ;;  %v1279_v24 = vld [vmem:[%s9578_s18 + $0x358] sm:$0xff] }
 0x443   : > { %v1283_v25 = vld [vmem:[%s9578_s18 + $0x378] sm:$0xff] }
 0x445   : > { %3017 = vmatpush1.bf16.msra.mxu1 %v7351_v34  ;;  %v1195_v34 = vld [vmem:[%s9578_s18 + $0xb8] sm:$0xff] }
 0x446   : > { %3018 = vmatprep.subr.bf16.mxu1 %v7360_v35  ;;  %v7203_v35 = vcombine.low %v1183_v28, %v1187_v29  ;;  %v7212_v36 = vcombine.high %v1191_v33, %v1195_v34  ;;  %v1287_v28 = vld [vmem:[%s9578_s18 + $0x398] sm:$0xff] }
 0x447   : > { %v1291_v29 = vld [vmem:[%s9578_s18 + $0x3b8] sm:$0xff] }
 0x449   : > { %3019 = vmatpush1.bf16.msra.mxu1 %v7359_v40  ;;  %v1203_v40 = vld [vmem:[%s9578_s18 + $0xf8] sm:$0xff] }
 0x44a   : > { %3020 = vmatprep.subr.bf16.mxu1 %v7368_v41  ;;  %v7211_v41 = vcombine.low %v1191_v33, %v1195_v34  ;;  %v7220_v42 = vcombine.high %v1199_v39, %v1203_v40  ;;  %v1295_v33 = vld [vmem:[%s9578_s18 + $0x3d8] sm:$0xff] }
 0x44b   : > { %v1299_v34 = vld [vmem:[%s9578_s18 + $0x3f8] sm:$0xff] }
 0x44d   : > { %3021 = vmatpush1.bf16.msra.mxu1 %v7367_v44  ;;  %v1211_v44 = vld [vmem:[%s9578_s18 + $0x138] sm:$0xff] }
 0x44e   : > { %3022 = vmatprep.subr.bf16.mxu1 %v7376_v48  ;;  %v7219_v48 = vcombine.low %v1199_v39, %v1203_v40  ;;  %v1303_v39 = vld [vmem:[%s9578_s18 + $0x418] sm:$0xff] }
 0x44f   : > { %v1307_v40 = vld [vmem:[%s9578_s18 + $0x438] sm:$0xff] }
 0x451   : > { %3023 = vmatpush1.bf16.msra.mxu1 %v7375_v53  ;;  %v7227_v53 = vcombine.low %v1207_v43, %v1211_v44 }
 0x452   : > { %3024 = vmatprep.subr.bf16.mxu1 %v7384_v54  ;;  %v7236_v54 = vcombine.high %v1215_v49, %v1219_v52 }
 0x455   : > { %3025 = vmatpush1.bf16.msra.mxu1 %v7383_v60  ;;  %v7235_v60 = vcombine.low %v1215_v49, %v1219_v52  ;;  %v1319_v49 = vld [vmem:[%s9578_s18 + $0x498] sm:$0xff] }
 0x456   : > { %3026 = vmatprep.subr.bf16.mxu1 %v7392_v50  ;;  %v7244_v50 = vcombine.high %v1223_v45, %v1227_v46  ;;  %v1323_v52 = vld [vmem:[%s9578_s18 + $0x4b8] sm:$0xff] }
 0x459   : > { %3027 = vmatpush1.bf16.msra.mxu1 %v7391_v55  ;;  %v7243_v55 = vcombine.low %v1223_v45, %v1227_v46  ;;  %v1327_v45 = vld [vmem:[%s9578_s18 + $0x4d8] sm:$0xff] }
 0x45a   : > { %3028 = vmatprep.subr.bf16.mxu1 %v7400_v56  ;;  %v7252_v56 = vcombine.high %v1231_v51, %v1235_v61  ;;  %v1331_v46 = vld [vmem:[%s9578_s18 + $0x4f8] sm:$0xff] }
 0x45d   : > { %3029 = vmatpush1.bf16.msra.mxu1 %v7399_v1  ;;  %v7251_v1 = vcombine.low %v1231_v51, %v1235_v61  ;;  %v1335_v51 = vld [vmem:[%s9578_s18 + $0x518] sm:$0xff] }
 0x45e   : > { %3030 = vmatprep.subr.bf16.mxu1 %v7408_v2  ;;  %v7260_v2 = vcombine.high %v1239_v57, %v1243_v59  ;;  %v1339_v61 = vld [vmem:[%s9578_s18 + $0x538] sm:$0xff] }
 0x461   : > { %3031 = vmatpush1.bf16.msra.mxu1 %v7407_v31  ;;  %v7259_v31 = vcombine.low %v1239_v57, %v1243_v59  ;;  %v7355_v57 = vcombine.low %v1335_v51, %v1339_v61  ;;  %v9984_v59 = vld [vmem:[%s727_s8] sm:$0xff] }
 0x462   : > { %3032 = vmatprep.subr.bf16.mxu1 %v7416_v7  ;;  %v7268_v7 = vcombine.high %v1247_v5, %v1251_v6 }
 0x465   : > { %3033 = vmatpush1.bf16.msra.mxu1 %v7415_v11  ;;  %v7267_v11 = vcombine.low %v1247_v5, %v1251_v6  ;;  %v1355_v5 = vld [vmem:[%s9578_s18 + $0x5b8] sm:$0xff]  ;;  %v1568_v6 = vrot.slane %v9984_v59, %v9719_v63 }
 0x466   : > { %3034 = vmatprep.subr.bf16.mxu1 %v7424_v12  ;;  %v7276_v12 = vcombine.high %v1255_v8, %v1259_v10 }
 0x469   : > { %3035 = vmatpush1.bf16.msra.mxu1 %v7423_v16  ;;  %v7275_v16 = vcombine.low %v1255_v8, %v1259_v10 }
 0x46a   : > { %3036 = vmatprep.subr.bf16.mxu1 %v7432_v19  ;;  %v7284_v19 = vcombine.high %v1263_v13, %v1267_v15 }
 0x46d   : > { %3037 = vmatpush1.bf16.msra.mxu1 %v7431_v22  ;;  %v7283_v22 = vcombine.low %v1263_v13, %v1267_v15  ;;  %v1363_v13 = vld [vmem:[%s9578_s18 + $0x5f8] sm:$0xff] }
 0x46e   : > { %3038 = vmatprep.subr.bf16.mxu1 %v7440_v23  ;;  %v7292_v23 = vcombine.high %v1271_v20, %v1275_v21 }
 0x471   : > { %3039 = vmatpush1.bf16.msra.mxu1 %v7439_v26  ;;  %v7291_v26 = vcombine.low %v1271_v20, %v1275_v21 }
 0x472   : > { %3131 = vmatprep.subr.bf16.mxu1 %v7196_v27  ;;  %v7300_v27 = vcombine.high %v1279_v24, %v1283_v25 }
 0x474   : > { %3041 = vmatmul.mubr.bf16.vlgmr.msra.gmra.mrb[4].mxu1 %v9867_v58 }
 0x475   : > { %3132 = vmatpush1.bf16.msra.mxu1 %v7195_v30  ;;  %3163 = vmatprep.mubr.bf16.mxu1 %v9789_v38  ;;  %v7228_v38 = vcombine.high %v1207_v43, %v1211_v44  ;;  %v7299_v30 = vcombine.low %v1279_v24, %v1283_v25  ;;  %v1311_v43 = vld [vmem:[%s9578_s18 + $0x458] sm:$0xff] }
 0x476   : > { %3133 = vmatprep.subr.bf16.mxu1 %v7204_v32  ;;  %v7308_v32 = vcombine.high %v1287_v28, %v1291_v29  ;;  %v1315_v44 = vld [vmem:[%s9578_s18 + $0x478] sm:$0xff] }
 0x479   : > { %3134 = vmatpush1.bf16.msra.mxu1 %v7203_v35  ;;  %v7307_v35 = vcombine.low %v1287_v28, %v1291_v29 }
 0x47a   : > { %3135 = vmatprep.subr.bf16.mxu1 %v7212_v36  ;;  %v7316_v36 = vcombine.high %v1295_v33, %v1299_v34 }
 0x47d   : > { %3136 = vmatpush1.bf16.msra.mxu1 %v7211_v41  ;;  %v7315_v41 = vcombine.low %v1295_v33, %v1299_v34  ;;  %v1367_v33 = vld [vmem:[%s9578_s18 + $0x618] sm:$0xff] }
 0x47e   : > { %3137 = vmatprep.subr.bf16.mxu1 %v7220_v42  ;;  %v7324_v42 = vcombine.high %v1303_v39, %v1307_v40  ;;  %v1371_v34 = vld [vmem:[%s9578_s18 + $0x638] sm:$0xff] }
 0x481   : > { %3138 = vmatpush1.bf16.msra.mxu1 %v7219_v48  ;;  %v7323_v48 = vcombine.low %v1303_v39, %v1307_v40 }
 0x482   : > { %3139 = vmatprep.subr.bf16.mxu1 %v7228_v38  ;;  %v7332_v38 = vcombine.high %v1311_v43, %v1315_v44 }
 0x485   : > { %3140 = vmatpush1.bf16.msra.mxu1 %v7227_v53  ;;  %v7331_v53 = vcombine.low %v1311_v43, %v1315_v44  ;;  %v7388_v44 = vcombine.high %v1367_v33, %v1371_v34 }
 0x486   : > { %3141 = vmatprep.subr.bf16.mxu1 %v7236_v54  ;;  %v7340_v54 = vcombine.high %v1319_v49, %v1323_v52 }
 0x489   : > { %3142 = vmatpush1.bf16.msra.mxu1 %v7235_v60  ;;  %v7339_v60 = vcombine.low %v1319_v49, %v1323_v52  ;;  %v1375_v49 = vld [vmem:[%s9578_s18 + $0x658] sm:$0xff] }
 0x48a   : > { %3143 = vmatprep.subr.bf16.mxu1 %v7244_v50  ;;  %v7348_v50 = vcombine.high %v1327_v45, %v1331_v46  ;;  %v1379_v52 = vld [vmem:[%s9578_s18 + $0x678] sm:$0xff] }
 0x48d   : > { %3144 = vmatpush1.bf16.msra.mxu1 %v7243_v55  ;;  %v1343_v55 = vld [vmem:[%s9578_s18 + $0x558] sm:$0xff] }
 0x48e   : > { %3145 = vmatprep.subr.bf16.mxu1 %v7252_v56  ;;  %v1347_v56 = vld [vmem:[%s9578_s18 + $0x578] sm:$0xff] }
 0x491   : > { %3146 = vmatpush1.bf16.msra.mxu1 %v7251_v1  ;;  %v7364_v1 = vcombine.high %v1343_v55, %v1347_v56 }
 0x492   : > { %3147 = vmatprep.subr.bf16.mxu1 %v7260_v2  ;;  %v1351_v2 = vld [vmem:[%s9578_s18 + $0x598] sm:$0xff] }
 0x493   : > { %v7372_v8 = vcombine.high %v1351_v2, %v1355_v5 }
 0x495   : > { %3148 = vmatpush1.bf16.msra.mxu1 %v7259_v31  ;;  %v1572_v31 = vrot.slane %v9984_v59, %v9737_v9 }
 0x496   : > { %3149 = vmatprep.subr.bf16.mxu1 %v7268_v7  ;;  %v7363_v7 = vcombine.low %v1343_v55, %v1347_v56  ;;  %v1383_v55 = vld [vmem:[%s9578_s18 + $0x698] sm:$0xff] }
 0x497   : > { %v1387_v56 = vld [vmem:[%s9578_s18 + $0x6b8] sm:$0xff] }
 0x499   : > { %3150 = vmatpush1.bf16.msra.mxu1 %v7267_v11 }
 0x49a   : > { %3151 = vmatprep.subr.bf16.mxu1 %v7276_v12  ;;  %v1359_v12 = vld [vmem:[%s9578_s18 + $0x5d8] sm:$0xff] }
 0x49b   : > { %v7380_v28 = vcombine.high %v1359_v12, %v1363_v13 }
 0x49d   : > { %3152 = vmatpush1.bf16.msra.mxu1 %v7275_v16 }
 0x49e   : > { %3153 = vmatprep.subr.bf16.mxu1 %v7284_v19 }
 0x4a1   : > { %3154 = vmatpush1.bf16.msra.mxu1 %v7283_v22 }
 0x4a2   : > { %3155 = vmatprep.subr.bf16.mxu1 %v7292_v23  ;;  %v7371_v23 = vcombine.low %v1351_v2, %v1355_v5 }
 0x4a5   : > { %3156 = vmatpush1.bf16.msra.mxu1 %v7291_v26 }
 0x4a6   : > { %3157 = vmatprep.subr.bf16.mxu1 %v7300_v27 }
 0x4a9   : > { %3158 = vmatpush1.bf16.msra.mxu1 %v7299_v30 }
 0x4aa   : > { %3159 = vmatprep.subr.bf16.mxu1 %v7308_v32 }
 0x4ad   : > { %3160 = vmatpush1.bf16.msra.mxu1 %v7307_v35 }
 0x4ae   : > { %3161 = vmatprep.subr.bf16.mxu1 %v7316_v36 }
 0x4b1   : > { %3162 = vmatpush1.bf16.msra.mxu1 %v7315_v41  ;;  %v7379_v41 = vcombine.low %v1359_v12, %v1363_v13  ;;  %v1391_v13 = vld [vmem:[%s9578_s18 + $0x6d8] sm:$0xff] }
 0x4b2   : > { %3172 = vmatprep.subr.bf16.mxu1 %v7324_v42 }
 0x4b4   : > { %3164 = vmatmul.mubr.bf16.vlgmr.msra.gmra.mrb[8].mxu1 %v9787_v37  ;;  %v7347_v37 = vcombine.low %v1327_v45, %v1331_v46 }
 0x4b5   : > { %3173 = vmatpush1.bf16.msra.mxu1 %v7323_v48  ;;  %3204 = vmatprep.mubr.bf16.mxu1 %v9797_v47  ;;  %v7356_v47 = vcombine.high %v1335_v51, %v1339_v61  ;;  %v7396_v61 = vcombine.high %v1375_v49, %v1379_v52 }
 0x4b6   : > { %3174 = vmatprep.subr.bf16.mxu1 %v7332_v38 }
 0x4b9   : > { %3175 = vmatpush1.bf16.msra.mxu1 %v7331_v53 }
 0x4ba   : > { %3176 = vmatprep.subr.bf16.mxu1 %v7340_v54 }
 0x4bd   : > { %3177 = vmatpush1.bf16.msra.mxu1 %v7339_v60  ;;  %v7387_v60 = vcombine.low %v1367_v33, %v1371_v34 }
 0x4be   : > { %3178 = vmatprep.subr.bf16.mxu1 %v7348_v50 }
 0x4c1   : > { %3179 = vmatpush1.bf16.msra.mxu1 %v7347_v37 }
 0x4c2   : > { %3180 = vmatprep.subr.bf16.mxu1 %v7356_v47 }
 0x4c5   : > { %3181 = vmatpush1.bf16.msra.mxu1 %v7355_v57 }
 0x4c6   : > { %3182 = vmatprep.subr.bf16.mxu1 %v7364_v1 }
 0x4c7   : > { %v2960_v10 = vpop.f32.mrb[0].mxu1  ;;  %v9992_v11 = vpop.f32.mrb[0].mxu0 }
 0x4c8   : > { %v9996_v15 = vadd.f32 %v2960_v10, %v1568_v6  ;;  %v2962_v16 = vpop.f32.mrb[1].mxu1  ;;  %v9998_v19 = vpop.f32.mrb[1].mxu0  ;;  %v7395_v6 = vcombine.low %v1375_v49, %v1379_v52  ;;  %v1415_v49 = vld [vmem:[%s9578_s18 + $0x798] sm:$0xff] }
 0x4c9   : > { %v10000_v20 = vadd.f32 %v2962_v16, %v1572_v31  ;;  %v2964_v21 = vpop.f32.mrb[2].mxu1  ;;  %v3128_v22 = vpop.f32.mrb[2].mxu0  ;;  %3183 = vmatpush1.bf16.msra.mxu1 %v7363_v7  ;;  %v1395_v16 = vld [vmem:[%s9578_s18 + $0x6f8] sm:$0xff] }
 0x4ca   : > { %v3214_v24 = vsel %vm3213_vm6, %v9996_v15, 0.0  ;;  %v3279_v25 = vmul.f32 %v9996_v15, %v9996_v15  ;;  %v2965_v26 = vpop.f32.mrb[3].mxu1  ;;  %v3129_v27 = vpop.f32.mrb[3].mxu0  ;;  %3184 = vmatprep.subr.bf16.mxu1 %v7372_v8  ;;  %v7404_v8 = vcombine.high %v1383_v55, %v1387_v56  ;;  %v1419_v52 = vld [vmem:[%s9578_s18 + $0x7b8] sm:$0xff] }
 0x4cb   : > { %v3215_v29 = vrot.slane %v3214_v24, 4  ;;  %v3221_v30 = vsel %vm3213_vm6, %v10000_v20, 0.0  ;;  %v3280_v32 = vmul.f32 %v10000_v20, %v10000_v20 }
 0x4cc   : > { %v3287_v35 = vsel %vm3213_vm6, %v3279_v25, 0.0  ;;  %v3222_v36 = vrot.slane %v3221_v30, 4  ;;  %v7403_v25 = vcombine.low %v1383_v55, %v1387_v56  ;;  %v1576_v55 = vrot.slane %v9984_v59, %v9727_v3 }
 0x4cd   : > { %v3216_v39 = vadd.f32 %v3215_v29, %v3214_v24  ;;  %v3288_v40 = vrot.slane %v3287_v35, 4  ;;  %3185 = vmatpush1.bf16.msra.mxu1 %v7371_v23  ;;  %v3294_v43 = vsel %vm3213_vm6, %v3280_v32, 0.0  ;;  %v1403_v32 = vld [vmem:[%s9578_s18 + $0x738] sm:$0xff]  ;;  %v1580_v56 = vrot.slane %v9984_v59, %v9749_v17 }
 0x4ce   : > { %v3223_v42 = vadd.f32 %v3222_v36, %v3221_v30  ;;  %3186 = vmatprep.subr.bf16.mxu1 %v7380_v28  ;;  %v3295_v54 = vrot.slane %v3294_v43, 4  ;;  %v7412_v28 = vcombine.high %v1391_v13, %v1395_v16  ;;  %v1399_v30 = vld [vmem:[%s9578_s18 + $0x718] sm:$0xff] }
 0x4cf   : > { %v3217_v48 = vrot.slane %v3216_v39, 2  ;;  %v3289_v38 = vadd.f32 %v3288_v40, %v3287_v35  ;;  %v7411_v35 = vcombine.low %v1391_v13, %v1395_v16 }
 0x4d0   : > { %v3224_v53 = vrot.slane %v3223_v42, 2  ;;  %v3296_v51 = vadd.f32 %v3295_v54, %v3294_v43  ;;  %v7436_v54 = vcombine.high %v1415_v49, %v1419_v52 }
 0x4d1   : > { %v3218_v45 = vadd.f32 %v3217_v48, %v3216_v39  ;;  %v3290_v46 = vrot.slane %v3289_v38, 2  ;;  %3187 = vmatpush1.bf16.msra.mxu1 %v7379_v41  ;;  %v7420_v39 = vcombine.high %v1399_v30, %v1403_v32  ;;  %v1407_v41 = vld [vmem:[%s9578_s18 + $0x758] sm:$0xff] }
 0x4d2   : > { %v3225_v50 = vadd.f32 %v3224_v53, %v3223_v42  ;;  %3188 = vmatprep.subr.bf16.mxu1 %v7388_v44  ;;  %v3297_v1 = vrot.slane %v3296_v51, 2  ;;  %v1411_v42 = vld [vmem:[%s9578_s18 + $0x778] sm:$0xff]  ;;  %v7419_v44 = vcombine.low %v1399_v30, %v1403_v32 }
 0x4d3   : > { %v3219_v37 = vrot.slane %v3218_v45, 1  ;;  %v3291_v47 = vadd.f32 %v3290_v46, %v3289_v38  ;;  %v7428_v38 = vcombine.high %v1407_v41, %v1411_v42  ;;  %v7427_v53 = vcombine.low %v1407_v41, %v1411_v42  ;;  %v1427_v46 = vld [vmem:[%s9578_s18 + $0x7f8] sm:$0xff] }
 0x4d4   : > { %v3226_v57 = vrot.slane %v3225_v50, 1  ;;  %v3298_v7 = vadd.f32 %v3297_v1, %v3296_v51  ;;  %v8059_v41 = vld [vmem:[%s9591_s10 + $0x4] ss:$8 sps:$4 sm:$0xff]  }
 0x4d5   : > { %v3220_v2 = vadd.f32 %v3219_v37, %v3218_v45  ;;  %v3292_v5 = vrot.slane %v3291_v47, 1  ;;  %3189 = vmatpush1.bf16.msra.mxu1 %v7387_v60  ;;  %v1423_v45 = vld [vmem:[%s9578_s18 + $0x7d8] sm:$0xff]  ;;  %v7435_v60 = vcombine.low %v1415_v49, %v1419_v52  ;;  %4282 = vmatprep.subr.bf16.mxu0 %v8059_v41  ;;  %v8080_v41 = vld [vmem:[%s9591_s10 + $0x74] ss:$8 sps:$4 sm:$0xff]  }
 0x4d6   : > { %v3227_v31 = vadd.f32 %v3226_v57, %v3225_v50  ;;  %3190 = vmatprep.subr.bf16.mxu1 %v7396_v61  ;;  %v3299_v22 = vrot.slane %v3298_v7, 1  ;;  %v7444_v50 = vcombine.high %v1423_v45, %v1427_v46  ;;  %v7443_v61 = vcombine.low %v1423_v45, %v1427_v46  ;;  %v8062_v45 = vld [vmem:[%s9591_s10 + $0x14] ss:$8 sps:$4 sm:$0xff]  }
 0x4d7   : > { %v10018_v10 = vmul.f32 0.5, %v3220_v2  ;;  %v3293_v12 = vadd.f32 %v3292_v5, %v3291_v47 }
 0x4d8   : > { %v10022_v21 = vmul.f32 0.5, %v3227_v31  ;;  %v3300_v26 = vadd.f32 %v3299_v22, %v3298_v7 }
 0x4d9   : > { %v3343_v23 = vmul.f32 0.5, %v3293_v12  ;;  %v3351_v24 = vmul.f32 %v10018_v10, %v10018_v10  ;;  %3191 = vmatpush1.bf16.msra.mxu1 %v7395_v6 }
 0x4da   : > { %v3352_v27 = vmul.f32 %v10022_v21, %v10022_v21  ;;  %3192 = vmatprep.subr.bf16.mxu1 %v7404_v8  ;;  %v3344_v33 = vmul.f32 0.5, %v3300_v26 }
 0x4db   : > { %v3359_v29 = vsub.f32 %v3343_v23, %v3351_v24 }
 0x4dc   : > { %v3360_v36 = vsub.f32 %v3344_v33, %v3352_v27 }
 0x4dd   : > { %v3367_v34 = vmax.f32 %v3359_v29, 0.0  ;;  %3193 = vmatpush1.bf16.msra.mxu1 %v7403_v25 }
 0x4de   : > { %3194 = vmatprep.subr.bf16.mxu1 %v7412_v28  ;;  %v3368_v43 = vmax.f32 %v3360_v36, 0.0 }
 0x4df   : > { %v3375_v40 = vadd.f32 1e-05, %v3367_v34 }
 0x4e0   : > { %v3376_v48 = vadd.f32 1e-05, %v3368_v43 }
 0x4e1   : > { %3195 = vmatpush1.bf16.msra.mxu1 %v7411_v35  ;;  %8249 = vrsqrt.f32 %v3375_v40 }
 0x4e2   : > { %3196 = vmatprep.subr.bf16.mxu1 %v7420_v39  ;;  %8251 = vrsqrt.f32 %v3376_v48 }
 0x4e5   : > { %3197 = vmatpush1.bf16.msra.mxu1 %v7419_v44  ;;  %v8057_v44 = vld [vmem:[%s9591_s10] ss:$8 sps:$4 sm:$0xff]  }
 0x4e6   : > { %3198 = vmatprep.subr.bf16.mxu1 %v7428_v38  ;;  %4283 = vmatpush1.bf16.msra.mxu0 %v8057_v44  ;;  %v8083_v44 = vld [vmem:[%s9591_s10 + $0x84] ss:$8 sps:$4 sm:$0xff]  }
 0x4e7   : > { %4284 = vmatprep.subr.bf16.mxu0 %v8062_v45  ;;  %v8095_v45 = vld [vmem:[%s9591_s10 + $0xc4] ss:$8 sps:$4 sm:$0xff]  }
 0x4e9   : > { %3199 = vmatpush1.bf16.msra.mxu1 %v7427_v53 }
 0x4ea   : > { %3200 = vmatprep.subr.bf16.mxu1 %v7436_v54 }
 0x4eb   : > { %v10036_v51 = vpop.eup %8249 }
 0x4ec   : > { %v10038_v37 = vpop.eup %8251 }
 0x4ed   : > { %3201 = vmatpush1.bf16.msra.mxu1 %v7435_v60  ;;  %v3399_v47 = vcombine.low %v10036_v51, %v10038_v37  ;;  %v8086_v51 = vld [vmem:[%s9591_s10 + $0x94] ss:$8 sps:$4 sm:$0xff]   ;;  %v8084_v37 = vld [vmem:[%s9591_s10 + $0x90] ss:$8 sps:$4 sm:$0xff]  }
 0x4ee   : > { %3202 = vmatprep.subr.bf16.mxu1 %v7444_v50  ;;  %v8060_v50 = vld [vmem:[%s9591_s10 + $0x10] ss:$8 sps:$4 sm:$0xff]  }
 0x4ef   : > { %4285 = vmatpush1.bf16.msra.mxu0 %v8060_v50  ;;  %v8096_v50 = vld [vmem:[%s9591_s10 + $0xd0] ss:$8 sps:$4 sm:$0xff]  }
 0x4f1   : > { %3203 = vmatpush1.bf16.msra.mxu1 %v7443_v61 }
 0x4f4   : > { %3205 = vmatmul.mubr.bf16.vlgmr.msra.gmra.mrb[8].mxu1 %v9867_v58 }
 0x547   : > { %v3042_v57 = vpop.f32.mrb[4].mxu1 }
 0x548   : > { %v10047_v1 = vadd.f32 %v3042_v57, %v1576_v55  ;;  %v3044_v2 = vpop.f32.mrb[5].mxu1 }
 0x549   : > { %v10049_v5 = vadd.f32 %v3044_v2, %v1580_v56  ;;  %v3046_v6 = vpop.f32.mrb[6].mxu1 }
 0x54a   : > { %v3228_v31 = vsel %vm3213_vm6, %v10047_v1, 0.0  ;;  %v3281_v7 = vmul.f32 %v10047_v1, %v10047_v1  ;;  %v3047_v58 = vpop.f32.mrb[7].mxu1  ;;  %v8065_v6 = vld [vmem:[%s9591_s10 + $0x24] ss:$8 sps:$4 sm:$0xff]  }
 0x54b   : > { %v3229_v8 = vrot.slane %v3228_v31, 4  ;;  %v3235_v12 = vsel %vm3213_vm6, %v10049_v5, 0.0  ;;  %v3282_v13 = vmul.f32 %v10049_v5, %v10049_v5  ;;  %4286 = vmatprep.subr.bf16.mxu0 %v8065_v6  ;;  %v1584_v6 = vrot.slane %v9984_v59, %v9722_v0 }
 0x54c   : > { %v3301_v16 = vsel %vm3213_vm6, %v3281_v7, 0.0  ;;  %v3236_v22 = vrot.slane %v3235_v12, 4  ;;  %v8063_v7 = vld [vmem:[%s9591_s10 + $0x20] ss:$8 sps:$4 sm:$0xff]  }
 0x54d   : > { %v3230_v23 = vadd.f32 %v3229_v8, %v3228_v31  ;;  %v3302_v24 = vrot.slane %v3301_v16, 4  ;;  %v3308_v25 = vsel %vm3213_vm6, %v3282_v13, 0.0  ;;  %4287 = vmatpush1.bf16.msra.mxu0 %v8063_v7  ;;  %v8068_v13 = vld [vmem:[%s9591_s10 + $0x34] ss:$8 sps:$4 sm:$0xff]   ;;  %v10121_v7 = vadd.f32 %v9992_v11, %v1584_v6 }
 0x54e   : > { %v3237_v26 = vadd.f32 %v3236_v22, %v3235_v12  ;;  %v3309_v27 = vrot.slane %v3308_v25, 4  ;;  %v8066_v22 = vld [vmem:[%s9591_s10 + $0x30] ss:$8 sps:$4 sm:$0xff]   ;;  %4288 = vmatprep.subr.bf16.mxu0 %v8068_v13 }
 0x54f   : > { %v3231_v28 = vrot.slane %v3230_v23, 2  ;;  %v3303_v29 = vadd.f32 %v3302_v24, %v3301_v16 }
 0x550   : > { %v3238_v30 = vrot.slane %v3237_v26, 2  ;;  %v3310_v32 = vadd.f32 %v3309_v27, %v3308_v25  ;;  %v8071_v25 = vld [vmem:[%s9591_s10 + $0x44] ss:$8 sps:$4 sm:$0xff]  }
 0x551   : > { %v3232_v33 = vadd.f32 %v3231_v28, %v3230_v23  ;;  %v3304_v34 = vrot.slane %v3303_v29, 2  ;;  %4289 = vmatpush1.bf16.msra.mxu0 %v8066_v22  ;;  %v9005_v23 = vmov 1966171168   ;;  %v8074_v28 = vld [vmem:[%s9591_s10 + $0x54] ss:$8 sps:$4 sm:$0xff]  }
 0x552   : > { %v3239_v35 = vadd.f32 %v3238_v30, %v3237_v26  ;;  %v3311_v36 = vrot.slane %v3310_v32, 2  ;;  %v3404_v24 = vunpack.c.l.s4 %v9005_v23  ;;  %v8069_v26 = vld [vmem:[%s9591_s10 + $0x40] ss:$8 sps:$4 sm:$0xff]   ;;  %4290 = vmatprep.subr.bf16.mxu0 %v8071_v25 }
 0x553   : > { %v3233_v39 = vrot.slane %v3232_v33, 1  ;;  %v3305_v40 = vadd.f32 %v3304_v34, %v3303_v29  ;;  %v8072_v29 = vld [vmem:[%s9591_s10 + $0x50] ss:$8 sps:$4 sm:$0xff]  }
 0x554   : > { %v3240_v42 = vrot.slane %v3239_v35, 1  ;;  %v3312_v43 = vadd.f32 %v3311_v36, %v3310_v32  ;;  %v3405_v27 = vunpack.c.0.s8 %v3404_v24 }
 0x555   : > { %v3234_v48 = vadd.f32 %v3233_v39, %v3232_v33  ;;  %v3306_v38 = vrot.slane %v3305_v40, 1  ;;  %4291 = vmatpush1.bf16.msra.mxu0 %v8069_v26  ;;  %v8077_v33 = vld [vmem:[%s9591_s10 + $0x64] ss:$8 sps:$4 sm:$0xff]  }
 0x556   : > { %v3241_v49 = vadd.f32 %v3240_v42, %v3239_v35  ;;  %v3313_v52 = vrot.slane %v3312_v43, 1  ;;  %4292 = vmatprep.subr.bf16.mxu0 %v8074_v28  ;;  %v10082_v32 = vsub.s32 %v3405_v27, %v9716_v62  ;;  %v8075_v35 = vld [vmem:[%s9591_s10 + $0x60] ss:$8 sps:$4 sm:$0xff]   ;;  %v8078_v42 = vld [vmem:[%s9591_s10 + $0x70] ss:$8 sps:$4 sm:$0xff]  }
 0x557   : > { %v10063_v53 = vmul.f32 0.5, %v3234_v48  ;;  %v3307_v54 = vadd.f32 %v3306_v38, %v3305_v40  ;;  %v8081_v48 = vld [vmem:[%s9591_s10 + $0x80] ss:$8 sps:$4 sm:$0xff]  }
 0x558   : > { %v10066_v46 = vmul.f32 0.5, %v3241_v49  ;;  %v3314_v60 = vadd.f32 %v3313_v52, %v3312_v43  ;;  %v10090_v39 = vrot.slane %v3399_v47, %v10082_v32  ;;  %v8089_v47 = vld [vmem:[%s9591_s10 + $0xa4] ss:$8 sps:$4 sm:$0xff]   ;;  %v8087_v38 = vld [vmem:[%s9591_s10 + $0xa0] ss:$8 sps:$4 sm:$0xff]  }
 0x559   : > { %v3345_v61 = vmul.f32 0.5, %v3307_v54  ;;  %v3353_v55 = vmul.f32 %v10063_v53, %v10063_v53  ;;  %4293 = vmatpush1.bf16.msra.mxu0 %v8072_v29  ;;  %v8092_v49 = vld [vmem:[%s9591_s10 + $0xb4] ss:$8 sps:$4 sm:$0xff]   ;;  %v8090_v52 = vld [vmem:[%s9591_s10 + $0xb0] ss:$8 sps:$4 sm:$0xff]  }
 0x55a   : > { %v3346_v56 = vmul.f32 0.5, %v3314_v60  ;;  %v3354_v57 = vmul.f32 %v10066_v46, %v10066_v46  ;;  %4294 = vmatprep.subr.bf16.mxu0 %v8077_v33  ;;  %v8093_v54 = vld [vmem:[%s9591_s10 + $0xc0] ss:$8 sps:$4 sm:$0xff]   ;;  %v8098_v60 = vld [vmem:[%s9591_s10 + $0xd4] ss:$8 sps:$4 sm:$0xff]  }
 0x55b   : > { %v3361_v2 = vsub.f32 %v3345_v61, %v3353_v55  ;;  %v8101_v61 = vld [vmem:[%s9591_s10 + $0xe4] ss:$8 sps:$4 sm:$0xff]   ;;  %v8099_v55 = vld [vmem:[%s9591_s10 + $0xe0] ss:$8 sps:$4 sm:$0xff]  }
 0x55c   : > { %v3362_v31 = vsub.f32 %v3346_v56, %v3354_v57  ;;  %v8104_v56 = vld [vmem:[%s9591_s10 + $0xf4] ss:$8 sps:$4 sm:$0xff]   ;;  %v8102_v57 = vld [vmem:[%s9591_s10 + $0xf0] ss:$8 sps:$4 sm:$0xff]  }
 0x55d   : > { %v3369_v58 = vmax.f32 %v3361_v2, 0.0  ;;  %4295 = vmatpush1.bf16.msra.mxu0 %v8075_v35  ;;  %v8107_v2 = vld [vmem:[%s9591_s10 + $0x104] ss:$8 sps:$4 sm:$0xff]  }
 0x55e   : > { %v3370_v8 = vmax.f32 %v3362_v31, 0.0  ;;  %4296 = vmatprep.subr.bf16.mxu0 %v8080_v41  ;;  %v1588_v31 = vrot.slane %v9984_v59, %v9744_v14 }
 0x55f   : > { %v3377_v12 = vadd.f32 1e-05, %v3369_v58 }
 0x560   : > { %v3378_v16 = vadd.f32 1e-05, %v3370_v8  ;;  %v10124_v58 = vadd.f32 %v9998_v19, %v1588_v31  ;;  %v3283_v8 = vmul.f32 %v10121_v7, %v10121_v7 }
 0x561   : > { %8253 = vrsqrt.f32 %v3377_v12  ;;  %4297 = vmatpush1.bf16.msra.mxu0 %v8078_v42  ;;  %v3242_v12 = vsel %vm3213_vm6, %v10121_v7, 0.0 }
 0x562   : > { %8255 = vrsqrt.f32 %v3378_v16  ;;  %4298 = vmatprep.subr.bf16.mxu0 %v8083_v44  ;;  %v3249_v13 = vsel %vm3213_vm6, %v10124_v58, 0.0  ;;  %v3284_v16 = vmul.f32 %v10124_v58, %v10124_v58  ;;  %v3243_v22 = vrot.slane %v3242_v12, 4 }
 0x563   : > { %v3315_v23 = vsel %vm3213_vm6, %v3283_v8, 0.0  ;;  %v3250_v11 = vrot.slane %v3249_v13, 4 }
 0x564   : > { %v3322_v24 = vsel %vm3213_vm6, %v3284_v16, 0.0  ;;  %v3316_v19 = vrot.slane %v3315_v23, 4  ;;  %v3244_v25 = vadd.f32 %v3243_v22, %v3242_v12 }
 0x565   : > { %4299 = vmatpush1.bf16.msra.mxu0 %v8081_v48  ;;  %v3251_v26 = vadd.f32 %v3250_v11, %v3249_v13  ;;  %v3323_v27 = vrot.slane %v3322_v24, 4 }
 0x566   : > { %4300 = vmatprep.subr.bf16.mxu0 %v8086_v51  ;;  %v3317_v28 = vadd.f32 %v3316_v19, %v3315_v23  ;;  %v3245_v29 = vrot.slane %v3244_v25, 2 }
 0x567   : > { %v3324_v33 = vadd.f32 %v3323_v27, %v3322_v24 }
 0x568   : > { %v3246_v35 = vadd.f32 %v3245_v29, %v3244_v25 }
 0x569   : > { %4301 = vmatpush1.bf16.msra.mxu0 %v8084_v37  ;;  %v3325_v41 = vrot.slane %v3324_v33, 2 }
 0x56a   : > { %4302 = vmatprep.subr.bf16.mxu0 %v8089_v47  ;;  %v3247_v44 = vrot.slane %v3246_v35, 1  ;;  %v1592_v47 = vrot.slane %v9984_v59, %v9730_v4 }
 0x56b   : > { %v8254_v30 = vpop.eup %8253  ;;  %v3326_v51 = vadd.f32 %v3325_v41, %v3324_v33 }
 0x56c   : > { %v8256_v34 = vpop.eup %8255 }
 0x56d   : > { %v3400_v36 = vcombine.low %v8254_v30, %v8256_v34  ;;  %4303 = vmatpush1.bf16.msra.mxu0 %v8087_v38  ;;  %v3252_v30 = vrot.slane %v3251_v26, 2  ;;  %v3318_v34 = vrot.slane %v3317_v28, 2  ;;  %v3248_v38 = vadd.f32 %v3247_v44, %v3246_v35 }
 0x56e   : > { %4304 = vmatprep.subr.bf16.mxu0 %v8092_v49  ;;  %v1596_v49 = vrot.slane %v9984_v59, %v9752_v18 }
 0x56f   : > { %v10093_v40 = vrot.slane %v3400_v36, %v10082_v32  ;;  %v3253_v36 = vadd.f32 %v3252_v30, %v3251_v26  ;;  %v3319_v42 = vadd.f32 %v3318_v34, %v3317_v28 }
 0x571   : > { %v3431_v43 = vcombine.low %v10090_v39, %v10093_v40  ;;  %4305 = vmatpush1.bf16.msra.mxu0 %v8090_v52  ;;  %v3254_v48 = vrot.slane %v3253_v36, 1  ;;  %v3320_v37 = vrot.slane %v3319_v42, 1 }
 0x572   : > { %4306 = vmatprep.subr.bf16.mxu0 %v8095_v45 }
 0x573   : > { %v3255_v52 = vadd.f32 %v3254_v48, %v3253_v36 }
 0x575   : > { %4307 = vmatpush1.bf16.msra.mxu0 %v8093_v54  ;;  %v3327_v54 = vrot.slane %v3326_v51, 1 }
 0x576   : > { %4308 = vmatprep.subr.bf16.mxu0 %v8098_v60  ;;  %v3321_v60 = vadd.f32 %v3320_v37, %v3319_v42 }
 0x577   : > { %v3328_v6 = vadd.f32 %v3327_v54, %v3326_v51 }
 0x578   : > { %v3347_v22 = vmul.f32 0.5, %v3321_v60 }
 0x579   : > { %4309 = vmatpush1.bf16.msra.mxu0 %v8096_v50  ;;  %v3348_v27 = vmul.f32 0.5, %v3328_v6 }
 0x57a   : > { %4310 = vmatprep.subr.bf16.mxu0 %v8101_v61 }
 0x57d   : > { %4311 = vmatpush1.bf16.msra.mxu0 %v8099_v55  ;;  %v10142_v55 = vmul.f32 0.5, %v3248_v38 }
 0x57e   : > { %4312 = vmatprep.subr.bf16.mxu0 %v8104_v56 }
 0x57f   : > { %v3355_v24 = vmul.f32 %v10142_v55, %v10142_v55 }
 0x581   : > { %4313 = vmatpush1.bf16.msra.mxu0 %v8102_v57  ;;  %v3363_v41 = vsub.f32 %v3347_v22, %v3355_v24 }
 0x582   : > { %4323 = vmatprep.subr.bf16.mxu0 %v8107_v2  ;;  %v10146_v2 = vmul.f32 0.5, %v3255_v52 }
 0x583   : > { %v3371_v54 = vmax.f32 %v3363_v41, 0.0 }
 0x584   : > { %v3356_v28 = vmul.f32 %v10146_v2, %v10146_v2 }
 0x586   : > { %v3364_v48 = vsub.f32 %v3348_v27, %v3356_v28 }
 0x5c7   : > { %v3206_v45 = vpop.f32.mrb[8].mxu1 }
 0x5c8   : > { %v10140_v50 = vadd.f32 %v3206_v45, %v1592_v47  ;;  %v3208_v61 = vpop.f32.mrb[9].mxu1 }
 0x5c9   : > { %v10144_v56 = vadd.f32 %v3208_v61, %v1596_v49  ;;  %v3210_v57 = vpop.f32.mrb[10].mxu1  ;;  %v3372_v61 = vmax.f32 %v3364_v48, 0.0 }
 0x5ca   : > { %v3256_v31 = vsel %vm3213_vm6, %v10140_v50, 0.0  ;;  %v3285_v59 = vmul.f32 %v10140_v50, %v10140_v50  ;;  %v3211_v8 = vpop.f32.mrb[11].mxu1 }
 0x5cb   : > { %v3257_v12 = vrot.slane %v3256_v31, 4  ;;  %v3263_v13 = vsel %vm3213_vm6, %v10144_v56, 0.0  ;;  %v3286_v16 = vmul.f32 %v10144_v56, %v10144_v56 }
 0x5cc   : > { %v3329_v23 = vsel %vm3213_vm6, %v3285_v59, 0.0  ;;  %v3264_v11 = vrot.slane %v3263_v13, 4 }
 0x5cd   : > { %v3258_v19 = vadd.f32 %v3257_v12, %v3256_v31  ;;  %v3330_v25 = vrot.slane %v3329_v23, 4  ;;  %v3336_v26 = vsel %vm3213_vm6, %v3286_v16, 0.0 }
 0x5ce   : > { %v3265_v29 = vadd.f32 %v3264_v11, %v3263_v13  ;;  %v3337_v30 = vrot.slane %v3336_v26, 4  ;;  %v3379_v13 = vadd.f32 1e-05, %v3371_v54 }
 0x5cf   : > { %v3259_v33 = vrot.slane %v3258_v19, 2  ;;  %v3331_v34 = vadd.f32 %v3330_v25, %v3329_v23  ;;  %v3380_v23 = vadd.f32 1e-05, %v3372_v61 }
 0x5d0   : > { %v3266_v35 = vrot.slane %v3265_v29, 2  ;;  %v3338_v36 = vadd.f32 %v3337_v30, %v3336_v26  ;;  %8257 = vrsqrt.f32 %v3379_v13 }
 0x5d1   : > { %v3260_v42 = vadd.f32 %v3259_v33, %v3258_v19  ;;  %v3332_v44 = vrot.slane %v3331_v34, 2  ;;  %8259 = vrsqrt.f32 %v3380_v23 }
 0x5d2   : > { %v3267_v51 = vadd.f32 %v3266_v35, %v3265_v29  ;;  %v3339_v37 = vrot.slane %v3338_v36, 2 }
 0x5d3   : > { %v3261_v47 = vrot.slane %v3260_v42, 1  ;;  %v3333_v38 = vadd.f32 %v3332_v44, %v3331_v34 }
 0x5d4   : > { %v3268_v49 = vrot.slane %v3267_v51, 1  ;;  %v3340_v52 = vadd.f32 %v3339_v37, %v3338_v36 }
 0x5d5   : > { %v3262_v45 = vadd.f32 %v3261_v47, %v3260_v42  ;;  %v3334_v60 = vrot.slane %v3333_v38, 1  ;;  %v1429_v47 = vld [vmem:[%s736_s0] sm:$0xff] }
 0x5d6   : > { %v3269_v57 = vadd.f32 %v3268_v49, %v3267_v51  ;;  %v3341_v6 = vrot.slane %v3340_v52, 1  ;;  %v3439_v51 = vrot.slane %v3431_v43, %v10082_v32 }
 0x5d7   : > { %v3277_v31 = vmul.f32 0.5, %v3262_v45  ;;  %v3335_v59 = vadd.f32 %v3334_v60, %v3333_v38 }
 0x5d8   : > { %v3278_v8 = vmul.f32 0.5, %v3269_v57  ;;  %v3342_v12 = vadd.f32 %v3341_v6, %v3340_v52 }
 0x5d9   : > { %v3349_v16 = vmul.f32 0.5, %v3335_v59  ;;  %v3357_v22 = vmul.f32 %v3277_v31, %v3277_v31 }
 0x5da   : > { %v3350_v11 = vmul.f32 0.5, %v3342_v12  ;;  %v3358_v24 = vmul.f32 %v3278_v8, %v3278_v8  ;;  %v8258_v30 = vpop.eup %8257 }
 0x5db   : > { %v3365_v19 = vsub.f32 %v3349_v16, %v3357_v22  ;;  %v8260_v33 = vpop.eup %8259 }
 0x5dc   : > { %v3366_v25 = vsub.f32 %v3350_v11, %v3358_v24  ;;  %v3401_v35 = vcombine.low %v8258_v30, %v8260_v33 }
 0x5dd   : > { %v3373_v26 = vmax.f32 %v3365_v19, 0.0 }
 0x5de   : > { %v3374_v27 = vmax.f32 %v3366_v25, 0.0  ;;  %v3423_v42 = vrot.slane %v3401_v35, %v10082_v32 }
 0x5df   : > { %v3381_v28 = vadd.f32 1e-05, %v3373_v26 }
 0x5e0   : > { %v3382_v29 = vadd.f32 1e-05, %v3374_v27 }
 0x5e1   : > { %8261 = vrsqrt.f32 %v3381_v28 }
 0x5e2   : > { %8263 = vrsqrt.f32 %v3382_v29 }
 0x5eb   : > { %v8262_v34 = vpop.eup %8261 }
 0x5ec   : > { %v8264_v36 = vpop.eup %8263 }
 0x5ed   : > { %v3402_v41 = vcombine.low %v8262_v34, %v8264_v36 }
 0x5ef   : > { %v3430_v44 = vrot.slane %v3402_v41, %v10082_v32 }
 0x5f1   : > { %v3432_v48 = vcombine.low %v3423_v42, %v3430_v44 }
 0x5f3   : > { %v3446_v37 = vrot.slane %v3432_v48, %v10082_v32 }
 0x5f5   : > { %v3447_v38 = vcombine.low %v3439_v51, %v3446_v37 }
 0x5f7   : > { %v3449_v49 = vmul.f32 %v3447_v38, %v1429_v47 }
 0x5f9   : > { %v3470_v52 = vrot.slane %v3449_v49, %v9722_v0  ;;  %v3474_v54 = vrot.slane %v3449_v49, %v9744_v14  ;;  %v3478_v45 = vrot.slane %v3449_v49, %v9730_v4  ;;  %v3482_v60 = vrot.slane %v3449_v49, %v9752_v18 }
 0x5fa   : > { %v3454_v61 = vrot.slane %v3449_v49, %v9719_v63  ;;  %v3458_v57 = vrot.slane %v3449_v49, %v9737_v9  ;;  %v3462_v39 = vrot.slane %v3449_v49, %v9727_v3  ;;  %v3466_v40 = vrot.slane %v3449_v49, %v9749_v17 }
 0x5fb   : > { %v3495_v43 = vmul.f32 %v3470_v52, %v10142_v55  ;;  %v3496_v6 = vmul.f32 %v3474_v54, %v10146_v2  ;;  %v3497_v59 = vmul.f32 %v3478_v45, %v3277_v31  ;;  %v3498_v12 = vmul.f32 %v3482_v60, %v3278_v8 }
 0x5fc   : > { %v3565_v13 = vmul.f32 %v10144_v56, %v3482_v60  ;;  %v3491_v16 = vmul.f32 %v3454_v61, %v10018_v10  ;;  %v3492_v22 = vmul.f32 %v3458_v57, %v10022_v21  ;;  %v3493_v23 = vmul.f32 %v3462_v39, %v10063_v53 }
 0x5fd   : > { %v3509_v11 = vcombine.low %v3495_v43, %v3496_v6  ;;  %v3510_v24 = vcombine.low %v3497_v59, %v3498_v12  ;;  %v3494_v19 = vmul.f32 %v3466_v40, %v10066_v46  ;;  %v3559_v25 = vmul.f32 %v10000_v20, %v3458_v57  ;;  %v8105_v57 = vld [vmem:[%s9591_s10 + $0x100] ss:$8 sps:$4 sm:$0xff]   ;;  %v8108_v6 = vld [vmem:[%s9591_s10 + $0x110] ss:$8 sps:$4 sm:$0xff]   ;;  %v8113_v59 = vld [vmem:[%s9591_s10 + $0x124] ss:$8 sps:$4 sm:$0xff]  }
 0x5fe   : > { %v3507_v55 = vcombine.low %v3491_v16, %v3492_v22  ;;  %v3558_v2 = vmul.f32 %v9996_v15, %v3454_v61  ;;  %v3561_v31 = vmul.f32 %v10049_v5, %v3466_v40  ;;  %v3564_v53 = vmul.f32 %v10140_v50, %v3478_v45  ;;  %v1430_v15 = vld [vmem:[%s745_s25] sm:$0xff]  ;;  %v8111_v12 = vld [vmem:[%s9591_s10 + $0x120] ss:$8 sps:$4 sm:$0xff]   ;;  %v8119_v22 = vld [vmem:[%s9591_s10 + $0x144] ss:$8 sps:$4 sm:$0xff]  }
 0x5ff   : > { %v3531_v56 = vrot.slane %v3509_v11, %v10082_v32  ;;  %v3538_v10 = vrot.slane %v3510_v24, %v10082_v32  ;;  %v3508_v8 = vcombine.low %v3493_v23, %v3494_v19  ;;  %v3560_v30 = vmul.f32 %v10047_v1, %v3462_v39  ;;  %v8110_v40 = vld [vmem:[%s9591_s10 + $0x114] ss:$8 sps:$4 sm:$0xff]   ;;  %v8114_v16 = vld [vmem:[%s9591_s10 + $0x130] ss:$8 sps:$4 sm:$0xff]   ;;  %v8117_v23 = vld [vmem:[%s9591_s10 + $0x140] ss:$8 sps:$4 sm:$0xff]  }
 0x600   : > { %v3517_v21 = vrot.slane %v3507_v55, %v10082_v32  ;;  %v3563_v33 = vmul.f32 %v10124_v58, %v3474_v54  ;;  %v3562_v34 = vmul.f32 %v10121_v7, %v3470_v52  ;;  %v8122_v11 = vld [vmem:[%s9591_s10 + $0x154] ss:$8 sps:$4 sm:$0xff]   ;;  %v8120_v24 = vld [vmem:[%s9591_s10 + $0x150] ss:$8 sps:$4 sm:$0xff]   ;;  %v8125_v19 = vld [vmem:[%s9591_s10 + $0x164] ss:$8 sps:$4 sm:$0xff]  }
 0x601   : > { %v3540_v26 = vcombine.low %v3531_v56, %v3538_v10  ;;  %v3524_v27 = vrot.slane %v3508_v8, %v10082_v32  ;;  %v8128_v55 = vld [vmem:[%s9591_s10 + $0x174] ss:$8 sps:$4 sm:$0xff]   ;;  %v8129_v56 = vld [vmem:[%s9591_s10 + $0x180] ss:$8 sps:$4 sm:$0xff]   ;;  %v8132_v8 = vld [vmem:[%s9591_s10 + $0x190] ss:$8 sps:$4 sm:$0xff]  }
 0x602   : > { %v8134_v10 = vld [vmem:[%s9591_s10 + $0x194] ss:$8 sps:$4 sm:$0xff]  }
 0x603   : > { %v3554_v46 = vrot.slane %v3540_v26, %v10082_v32  ;;  %v3539_v20 = vcombine.low %v3517_v21, %v3524_v27  ;;  %v8137_v21 = vld [vmem:[%s9591_s10 + $0x1a4] ss:$8 sps:$4 sm:$0xff]   ;;  %v8140_v26 = vld [vmem:[%s9591_s10 + $0x1b4] ss:$8 sps:$4 sm:$0xff]   ;;  %v8138_v27 = vld [vmem:[%s9591_s10 + $0x1b0] ss:$8 sps:$4 sm:$0xff]  }
 0x605   : > { %v3547_v28 = vrot.slane %v3539_v20, %v10082_v32  ;;  %v8141_v20 = vld [vmem:[%s9591_s10 + $0x1c0] ss:$8 sps:$4 sm:$0xff]  }
 0x607   : > { %v3555_v5 = vcombine.low %v3547_v28, %v3554_v46  ;;  %v8143_v46 = vld [vmem:[%s9591_s10 + $0x1c4] ss:$8 sps:$4 sm:$0xff]   ;;  %v8146_v28 = vld [vmem:[%s9591_s10 + $0x1d4] ss:$8 sps:$4 sm:$0xff]  }
 0x609   : > { %v3557_v29 = vsub.f32 %v1430_v15, %v3555_v5  ;;  %v8144_v15 = vld [vmem:[%s9591_s10 + $0x1d0] ss:$8 sps:$4 sm:$0xff]   ;;  %v8149_v5 = vld [vmem:[%s9591_s10 + $0x1e4] ss:$8 sps:$4 sm:$0xff]  }
 0x60b   : > { %v3574_v50 = vrot.slane %v3557_v29, %v9737_v9  ;;  %v3570_v35 = vrot.slane %v3557_v29, %v9719_v63  ;;  %v3582_v36 = vrot.slane %v3557_v29, %v9749_v17  ;;  %v3578_v41 = vrot.slane %v3557_v29, %v9727_v3 }
 0x60c   : > { %v3590_v42 = vrot.slane %v3557_v29, %v9744_v14  ;;  %v3586_v44 = vrot.slane %v3557_v29, %v9722_v0  ;;  %v3598_v48 = vrot.slane %v3557_v29, %v9752_v18  ;;  %v3594_v1 = vrot.slane %v3557_v29, %v9730_v4  ;;  %v8147_v29 = vld [vmem:[%s9591_s10 + $0x1e0] ss:$8 sps:$4 sm:$0xff]  }
 0x60d   : > { %v3608_v58 = vadd.f32 %v3574_v50, %v3559_v25  ;;  %v3607_v7 = vadd.f32 %v3570_v35, %v3558_v2  ;;  %v3610_v51 = vadd.f32 %v3582_v36, %v3561_v31  ;;  %v10209_v37 = vadd.f32 %v3578_v41, %v3560_v30  ;;  %v8123_v25 = vld [vmem:[%s9591_s10 + $0x160] ss:$8 sps:$4 sm:$0xff]   ;;  %v8126_v2 = vld [vmem:[%s9591_s10 + $0x170] ss:$8 sps:$4 sm:$0xff]   ;;  %v8131_v31 = vld [vmem:[%s9591_s10 + $0x184] ss:$8 sps:$4 sm:$0xff]  }
 0x60e   : > { %v10211_v47 = vadd.f32 %v3590_v42, %v3563_v33  ;;  %v10213_v38 = vadd.f32 %v3586_v44, %v3562_v34  ;;  %v10215_v49 = vadd.f32 %v3598_v48, %v3565_v13  ;;  %v10217_v52 = vadd.f32 %v3594_v1, %v3564_v53  ;;  %v8116_v13 = vld [vmem:[%s9591_s10 + $0x134] ss:$8 sps:$4 sm:$0xff]   ;;  %v8135_v53 = vld [vmem:[%s9591_s10 + $0x1a0] ss:$8 sps:$4 sm:$0xff]   ;;  %v8150_v33 = vld [vmem:[%s9591_s10 + $0x1f0] ss:$8 sps:$4 sm:$0xff]  }
 0x60f   : > { %v3616_v54 = vmax.f32 %v3608_v58, 0.0  ;;  %v3615_v45 = vmax.f32 %v3607_v7, 0.0  ;;  %v3618_v60 = vmax.f32 %v3610_v51, 0.0  ;;  %v8152_v30 = vld [vmem:[%s9591_s10 + $0x1f4] ss:$8 sps:$4 sm:$0xff]   ;;  %v3617_v34 = vmax.f32 %v10209_v37, 0.0 }
 0x610   : > { %v8155_v50 = vld [vmem:[%s9591_s10 + $0x204] ss:$8 sps:$4 sm:$0xff]   ;;  %v3620_v35 = vmax.f32 %v10211_v47, 0.0  ;;  %v8153_v36 = vld [vmem:[%s9591_s10 + $0x200] ss:$8 sps:$4 sm:$0xff]  }
 0x611   : > { %v3624_v61 = vpack.c.bf16 %v3616_v54, %v3616_v54  ;;  %v3623_v39 = vpack.c.bf16 %v3615_v45, %v3615_v45  ;;  %v3626_v43 = vpack.c.bf16 %v3618_v60, %v3618_v60  ;;  %v3625_v41 = vpack.c.bf16 %v3617_v34, %v3617_v34  ;;  %v8158_v42 = vld [vmem:[%s9591_s10 + $0x214] ss:$8 sps:$4 sm:$0xff]   ;;  %v8156_v48 = vld [vmem:[%s9591_s10 + $0x210] ss:$8 sps:$4 sm:$0xff]   ;;  %v8161_v1 = vld [vmem:[%s9591_s10 + $0x224] ss:$8 sps:$4 sm:$0xff]  }
 0x612   : > { %v3628_v44 = vpack.c.bf16 %v3620_v35, %v3620_v35  ;;  %v8159_v58 = vld [vmem:[%s9591_s10 + $0x220] ss:$8 sps:$4 sm:$0xff]   ;;  %v8164_v7 = vld [vmem:[%s9591_s10 + $0x234] ss:$8 sps:$4 sm:$0xff]   ;;  %v8162_v51 = vld [vmem:[%s9591_s10 + $0x230] ss:$8 sps:$4 sm:$0xff]  }
 0x613   : > { %4314 = vmatprep.mubr.bf16.mxu0 %v3624_v61  ;;  %v8167_v37 = vld [vmem:[%s9591_s10 + $0x244] ss:$8 sps:$4 sm:$0xff]   ;;  %v8165_v47 = vld [vmem:[%s9591_s10 + $0x240] ss:$8 sps:$4 sm:$0xff]   ;;  %v8170_v54 = vld [vmem:[%s9591_s10 + $0x254] ss:$8 sps:$4 sm:$0xff]  }
 0x614   : > { %4315 = vmatmul.mubr.bf16.vlgmr.msra.gmra.mrb[4].mxu0 %v3623_v39  ;;  %v8168_v45 = vld [vmem:[%s9591_s10 + $0x250] ss:$8 sps:$4 sm:$0xff]   ;;  %v8173_v60 = vld [vmem:[%s9591_s10 + $0x264] ss:$8 sps:$4 sm:$0xff]   ;;  %v8171_v61 = vld [vmem:[%s9591_s10 + $0x260] ss:$8 sps:$4 sm:$0xff]  }
 0x615   : > { %4324 = vmatpush1.bf16.msra.mxu0 %v8105_v57  ;;  %4355 = vmatprep.mubr.bf16.mxu0 %v3626_v43  ;;  %v8176_v57 = vld [vmem:[%s9591_s10 + $0x274] ss:$8 sps:$4 sm:$0xff]   ;;  %v8174_v39 = vld [vmem:[%s9591_s10 + $0x270] ss:$8 sps:$4 sm:$0xff]   ;;  %v8177_v43 = vld [vmem:[%s9591_s10 + $0x280] ss:$8 sps:$4 sm:$0xff]  }
 0x616   : > { %4325 = vmatprep.subr.bf16.mxu0 %v8110_v40  ;;  %v8179_v40 = vld [vmem:[%s9591_s10 + $0x284] ss:$8 sps:$4 sm:$0xff]   ;;  %v8219_v34 = vld [vmem:[%s9591_s10 + $0x360] ss:$8 sps:$4 sm:$0xff]   ;;  %v8222_v35 = vld [vmem:[%s9591_s10 + $0x370] ss:$8 sps:$4 sm:$0xff]  }
 0x619   : > { %4326 = vmatpush1.bf16.msra.mxu0 %v8108_v6  ;;  %v8182_v6 = vld [vmem:[%s9591_s10 + $0x294] ss:$8 sps:$4 sm:$0xff]  }
 0x61a   : > { %4327 = vmatprep.subr.bf16.mxu0 %v8113_v59  ;;  %v8180_v59 = vld [vmem:[%s9591_s10 + $0x290] ss:$8 sps:$4 sm:$0xff]  }
 0x61d   : > { %4328 = vmatpush1.bf16.msra.mxu0 %v8111_v12  ;;  %v8185_v12 = vld [vmem:[%s9591_s10 + $0x2a4] ss:$8 sps:$4 sm:$0xff]  }
 0x61e   : > { %4329 = vmatprep.subr.bf16.mxu0 %v8116_v13  ;;  %v8183_v13 = vld [vmem:[%s9591_s10 + $0x2a0] ss:$8 sps:$4 sm:$0xff]  }
 0x621   : > { %4330 = vmatpush1.bf16.msra.mxu0 %v8114_v16  ;;  %v8188_v16 = vld [vmem:[%s9591_s10 + $0x2b4] ss:$8 sps:$4 sm:$0xff]  }
 0x622   : > { %4331 = vmatprep.subr.bf16.mxu0 %v8119_v22  ;;  %v8186_v22 = vld [vmem:[%s9591_s10 + $0x2b0] ss:$8 sps:$4 sm:$0xff]  }
 0x625   : > { %4332 = vmatpush1.bf16.msra.mxu0 %v8117_v23  ;;  %v8191_v23 = vld [vmem:[%s9591_s10 + $0x2c4] ss:$8 sps:$4 sm:$0xff]  }
 0x626   : > { %4333 = vmatprep.subr.bf16.mxu0 %v8122_v11  ;;  %v8189_v11 = vld [vmem:[%s9591_s10 + $0x2c0] ss:$8 sps:$4 sm:$0xff]  }
 0x629   : > { %4334 = vmatpush1.bf16.msra.mxu0 %v8120_v24  ;;  %v8194_v24 = vld [vmem:[%s9591_s10 + $0x2d4] ss:$8 sps:$4 sm:$0xff]  }
 0x62a   : > { %4335 = vmatprep.subr.bf16.mxu0 %v8125_v19  ;;  %v8192_v19 = vld [vmem:[%s9591_s10 + $0x2d0] ss:$8 sps:$4 sm:$0xff]  }
 0x62d   : > { %4336 = vmatpush1.bf16.msra.mxu0 %v8123_v25  ;;  %v8197_v25 = vld [vmem:[%s9591_s10 + $0x2e4] ss:$8 sps:$4 sm:$0xff]  }
 0x62e   : > { %4337 = vmatprep.subr.bf16.mxu0 %v8128_v55  ;;  %v8195_v55 = vld [vmem:[%s9591_s10 + $0x2e0] ss:$8 sps:$4 sm:$0xff]  }
 0x631   : > { %4338 = vmatpush1.bf16.msra.mxu0 %v8126_v2  ;;  %v8200_v2 = vld [vmem:[%s9591_s10 + $0x2f4] ss:$8 sps:$4 sm:$0xff]  }
 0x632   : > { %4339 = vmatprep.subr.bf16.mxu0 %v8131_v31  ;;  %v8198_v31 = vld [vmem:[%s9591_s10 + $0x2f0] ss:$8 sps:$4 sm:$0xff]  }
 0x635   : > { %4340 = vmatpush1.bf16.msra.mxu0 %v8129_v56  ;;  %v3619_v56 = vmax.f32 %v10213_v38, 0.0  ;;  %v8209_v38 = vld [vmem:[%s9591_s10 + $0x324] ss:$8 sps:$4 sm:$0xff]  }
 0x636   : > { %4341 = vmatprep.subr.bf16.mxu0 %v8134_v10  ;;  %v8203_v10 = vld [vmem:[%s9591_s10 + $0x304] ss:$8 sps:$4 sm:$0xff]  }
 0x639   : > { %4342 = vmatpush1.bf16.msra.mxu0 %v8132_v8  ;;  %v3622_v8 = vmax.f32 %v10215_v49, 0.0  ;;  %v8207_v49 = vld [vmem:[%s9591_s10 + $0x320] ss:$8 sps:$4 sm:$0xff]  }
 0x63a   : > { %4343 = vmatprep.subr.bf16.mxu0 %v8137_v21  ;;  %v8201_v21 = vld [vmem:[%s9591_s10 + $0x300] ss:$8 sps:$4 sm:$0xff]  }
 0x63d   : > { %4344 = vmatpush1.bf16.msra.mxu0 %v8135_v53  ;;  %v3627_v53 = vpack.c.bf16 %v3619_v56, %v3619_v56 }
 0x63e   : > { %4345 = vmatprep.subr.bf16.mxu0 %v8140_v26  ;;  %v8206_v26 = vld [vmem:[%s9591_s10 + $0x314] ss:$8 sps:$4 sm:$0xff]  }
 0x641   : > { %4346 = vmatpush1.bf16.msra.mxu0 %v8138_v27  ;;  %v3630_v27 = vpack.c.bf16 %v3622_v8, %v3622_v8  ;;  %v4469_v8 = vld [vmem:[#allocation18 + $0xa0] sm:$0xff] (!%p10679_p4) }
 0x642   : > { %4347 = vmatprep.subr.bf16.mxu0 %v8143_v46  ;;  %v8204_v46 = vld [vmem:[%s9591_s10 + $0x310] ss:$8 sps:$4 sm:$0xff]  }
 0x645   : > { %4348 = vmatpush1.bf16.msra.mxu0 %v8141_v20  ;;  %v8212_v20 = vld [vmem:[%s9591_s10 + $0x334] ss:$8 sps:$4 sm:$0xff]  }
 0x646   : > { %4349 = vmatprep.subr.bf16.mxu0 %v8146_v28  ;;  %v8210_v28 = vld [vmem:[%s9591_s10 + $0x330] ss:$8 sps:$4 sm:$0xff]  }
 0x649   : > { %4350 = vmatpush1.bf16.msra.mxu0 %v8144_v15  ;;  %v8215_v15 = vld [vmem:[%s9591_s10 + $0x344] ss:$8 sps:$4 sm:$0xff]  }
 0x64a   : > { %4351 = vmatprep.subr.bf16.mxu0 %v8149_v5  ;;  %v8213_v5 = vld [vmem:[%s9591_s10 + $0x340] ss:$8 sps:$4 sm:$0xff]  }
 0x64d   : > { %4352 = vmatpush1.bf16.msra.mxu0 %v8147_v29  ;;  %v8218_v29 = vld [vmem:[%s9591_s10 + $0x354] ss:$8 sps:$4 sm:$0xff]  }
 0x64e   : > { %4353 = vmatprep.subr.bf16.mxu0 %v8152_v30  ;;  %v8216_v30 = vld [vmem:[%s9591_s10 + $0x350] ss:$8 sps:$4 sm:$0xff]  }
 0x651   : > { %4354 = vmatpush1.bf16.msra.mxu0 %v8150_v33  ;;  %v8221_v33 = vld [vmem:[%s9591_s10 + $0x364] ss:$8 sps:$4 sm:$0xff]  }
 0x652   : > { %4364 = vmatprep.subr.bf16.mxu0 %v8155_v50  ;;  %v8224_v50 = vld [vmem:[%s9591_s10 + $0x374] ss:$8 sps:$4 sm:$0xff]  }
 0x654   : > { %4356 = vmatmul.mubr.bf16.vlgmr.msra.gmra.mrb[4].mxu0 %v3625_v41  ;;  %v8225_v41 = vld [vmem:[%s9591_s10 + $0x380] ss:$8 sps:$4 sm:$0xff]  }
 0x655   : > { %4365 = vmatpush1.bf16.msra.mxu0 %v8153_v36  ;;  %4396 = vmatprep.mubr.bf16.mxu0 %v3628_v44  ;;  %v8227_v36 = vld [vmem:[%s9591_s10 + $0x384] ss:$8 sps:$4 sm:$0xff]   ;;  %v8228_v44 = vld [vmem:[%s9591_s10 + $0x390] ss:$8 sps:$4 sm:$0xff]  }
 0x656   : > { %4366 = vmatprep.subr.bf16.mxu0 %v8158_v42  ;;  %v8230_v42 = vld [vmem:[%s9591_s10 + $0x394] ss:$8 sps:$4 sm:$0xff]  }
 0x659   : > { %4367 = vmatpush1.bf16.msra.mxu0 %v8156_v48  ;;  %v8233_v48 = vld [vmem:[%s9591_s10 + $0x3a4] ss:$8 sps:$4 sm:$0xff]  }
 0x65a   : > { %4368 = vmatprep.subr.bf16.mxu0 %v8161_v1  ;;  %v8231_v1 = vld [vmem:[%s9591_s10 + $0x3a0] ss:$8 sps:$4 sm:$0xff]  }
 0x65d   : > { %4369 = vmatpush1.bf16.msra.mxu0 %v8159_v58  ;;  %v8236_v58 = vld [vmem:[%s9591_s10 + $0x3b4] ss:$8 sps:$4 sm:$0xff]  }
 0x65e   : > { %4370 = vmatprep.subr.bf16.mxu0 %v8164_v7  ;;  %v8234_v7 = vld [vmem:[%s9591_s10 + $0x3b0] ss:$8 sps:$4 sm:$0xff]  }
 0x661   : > { %4371 = vmatpush1.bf16.msra.mxu0 %v8162_v51  ;;  %v8239_v51 = vld [vmem:[%s9591_s10 + $0x3c4] ss:$8 sps:$4 sm:$0xff]  }
 0x662   : > { %4372 = vmatprep.subr.bf16.mxu0 %v8167_v37  ;;  %v8237_v37 = vld [vmem:[%s9591_s10 + $0x3c0] ss:$8 sps:$4 sm:$0xff]  }
 0x665   : > { %4373 = vmatpush1.bf16.msra.mxu0 %v8165_v47  ;;  %v8242_v47 = vld [vmem:[%s9591_s10 + $0x3d4] ss:$8 sps:$4 sm:$0xff]  }
 0x666   : > { %4374 = vmatprep.subr.bf16.mxu0 %v8170_v54  ;;  %v8240_v54 = vld [vmem:[%s9591_s10 + $0x3d0] ss:$8 sps:$4 sm:$0xff]  }
 0x669   : > { %4375 = vmatpush1.bf16.msra.mxu0 %v8168_v45  ;;  %v8245_v45 = vld [vmem:[%s9591_s10 + $0x3e4] ss:$8 sps:$4 sm:$0xff]  }
 0x66a   : > { %4376 = vmatprep.subr.bf16.mxu0 %v8173_v60  ;;  %v8243_v60 = vld [vmem:[%s9591_s10 + $0x3e0] ss:$8 sps:$4 sm:$0xff]  }
 0x66d   : > { %4377 = vmatpush1.bf16.msra.mxu0 %v8171_v61  ;;  %v8248_v61 = vld [vmem:[%s9591_s10 + $0x3f4] ss:$8 sps:$4 sm:$0xff]  }
 0x66e   : > { %4378 = vmatprep.subr.bf16.mxu0 %v8176_v57  ;;  %v8246_v57 = vld [vmem:[%s9591_s10 + $0x3f0] ss:$8 sps:$4 sm:$0xff]  }
 0x671   : > { %4379 = vmatpush1.bf16.msra.mxu0 %v8174_v39  ;;  %v3621_v39 = vmax.f32 %v10217_v52, 0.0  ;;  %v4449_v52 = vld [vmem:[#allocation18] sm:$0xff] (!%p10679_p4) }
 0x672   : > { %4380 = vmatprep.subr.bf16.mxu0 %v8179_v40 }
 0x673   : > { %v3629_v40 = vpack.c.bf16 %v3621_v39, %v3621_v39  ;;  %v4537_v39 = vld [vmem:[#allocation18 + $0x2c0] sm:$0xff] (!%p10679_p4) }
 0x675   : > { %4381 = vmatpush1.bf16.msra.mxu0 %v8177_v43  ;;  %v1559_v43 = vld [vmem:[%s9593_s7] sm:$0x3] }
 0x676   : > { %4382 = vmatprep.subr.bf16.mxu0 %v8182_v6  ;;  %v3635_v6 = vrot.slane %v1559_v43, %v9719_v63 }
 0x679   : > { %4383 = vmatpush1.bf16.msra.mxu0 %v8180_v59  ;;  %v3639_v59 = vrot.slane %v1559_v43, %v9737_v9 }
 0x67a   : > { %4384 = vmatprep.subr.bf16.mxu0 %v8185_v12 }
 0x67d   : > { %4385 = vmatpush1.bf16.msra.mxu0 %v8183_v13 }
 0x67e   : > { %4386 = vmatprep.subr.bf16.mxu0 %v8188_v16 }
 0x681   : > { %4387 = vmatpush1.bf16.msra.mxu0 %v8186_v22 }
 0x682   : > { %4388 = vmatprep.subr.bf16.mxu0 %v8191_v23 }
 0x685   : > { %4389 = vmatpush1.bf16.msra.mxu0 %v8189_v11 }
 0x686   : > { %4390 = vmatprep.subr.bf16.mxu0 %v8194_v24  ;;  %v4453_v24 = vld [vmem:[#allocation18 + $0x20] sm:$0xff] (!%p10679_p4) }
 0x689   : > { %4391 = vmatpush1.bf16.msra.mxu0 %v8192_v19  ;;  %v4457_v19 = vld [vmem:[#allocation18 + $0x40] sm:$0xff] (!%p10679_p4) }
 0x68a   : > { %4392 = vmatprep.subr.bf16.mxu0 %v8197_v25 }
 0x68d   : > { %4393 = vmatpush1.bf16.msra.mxu0 %v8195_v55  ;;  %v7575_v55 = vcombine.high (!%p10679_p4), %v4449_v52, %v4453_v24 }
 0x68e   : > { %4394 = vmatprep.subr.bf16.mxu0 %v8200_v2  ;;  %v7574_v2 = vcombine.low (!%p10679_p4), %v4449_v52, %v4453_v24  ;;  %v4557_v52 = vld [vmem:[#allocation18 + $0x360] sm:$0xff] (!%p10679_p4) }
 0x68f   : > { %5392 = vmatprep.subr.bf16.mxu1 (!%p10679_p4), %v7575_v55  ;;  %v4561_v55 = vld [vmem:[#allocation18 + $0x380] sm:$0xff] (!%p10679_p4) }
 0x690   : > { %5393 = vmatpush1.bf16.msra.mxu1 (!%p10679_p4), %v7574_v2  ;;  %v4565_v2 = vld [vmem:[#allocation18 + $0x3a0] sm:$0xff] (!%p10679_p4) }
 0x691   : > { %4395 = vmatpush1.bf16.msra.mxu0 %v8198_v31  ;;  %v4461_v31 = vld [vmem:[#allocation18 + $0x60] sm:$0xff] (!%p10679_p4) }
 0x692   : > { %4405 = vmatprep.subr.bf16.mxu0 %v8203_v10  ;;  %v7583_v56 = vcombine.high (!%p10679_p4), %v4457_v19, %v4461_v31  ;;  %v4465_v10 = vld [vmem:[#allocation18 + $0x80] sm:$0xff] (!%p10679_p4) }
 0x694   : > { %4397 = vmatmul.mubr.bf16.vlgmr.msra.gmra.mrb[4].mxu0 %v3627_v53  ;;  %5394 = vmatprep.subr.bf16.mxu1 (!%p10679_p4), %v7583_v56  ;;  %v7591_v53 = vcombine.high (!%p10679_p4), %v4465_v10, %v4469_v8 }
 0x695   : > { %4406 = vmatpush1.bf16.msra.mxu0 %v8201_v21  ;;  %4437 = vmatprep.mubr.bf16.mxu0 %v3630_v27  ;;  %v7582_v21 = vcombine.low (!%p10679_p4), %v4457_v19, %v4461_v31  ;;  %v4477_v27 = vld [vmem:[#allocation18 + $0xe0] sm:$0xff] (!%p10679_p4) }
 0x696   : > { %4407 = vmatprep.subr.bf16.mxu0 %v8206_v26  ;;  %v4473_v26 = vld [vmem:[#allocation18 + $0xc0] sm:$0xff] (!%p10679_p4) }
 0x697   : > { %5395 = vmatpush1.bf16.msra.mxu1 (!%p10679_p4), %v7582_v21  ;;  %v7687_v21 = vcombine.high (!%p10679_p4), %v4561_v55, %v4565_v2 }
 0x698   : > { %5396 = vmatprep.subr.bf16.mxu1 (!%p10679_p4), %v7591_v53  ;;  %v7686_v53 = vcombine.low (!%p10679_p4), %v4561_v55, %v4565_v2  ;;  %v4534_v55 = vld [vmem:[#allocation18 + $0x2a8] sm:$0xff] (!%p10679_p4) }
 0x699   : > { %4408 = vmatpush1.bf16.msra.mxu0 %v8204_v46  ;;  %v7590_v46 = vcombine.low (!%p10679_p4), %v4465_v10, %v4469_v8  ;;  %v4569_v10 = vld [vmem:[#allocation18 + $0x3c0] sm:$0xff] (!%p10679_p4) }
 0x69a   : > { %4409 = vmatprep.subr.bf16.mxu0 %v8209_v38  ;;  %v7599_v38 = vcombine.high (!%p10679_p4), %v4473_v26, %v4477_v27  ;;  %v4573_v8 = vld [vmem:[#allocation18 + $0x3e0] sm:$0xff] (!%p10679_p4) }
 0x69b   : > { %5397 = vmatpush1.bf16.msra.mxu1 (!%p10679_p4), %v7590_v46  ;;  %v7695_v46 = vcombine.high (!%p10679_p4), %v4569_v10, %v4573_v8 }
 0x69c   : > { %5398 = vmatprep.subr.bf16.mxu1 (!%p10679_p4), %v7599_v38  ;;  %v7694_v38 = vcombine.low (!%p10679_p4), %v4569_v10, %v4573_v8  ;;  %v4542_v10 = vld [vmem:[#allocation18 + $0x2e8] sm:$0xff] (!%p10679_p4) }
 0x69d   : > { %4410 = vmatpush1.bf16.msra.mxu0 %v8207_v49  ;;  %v4481_v49 = vld [vmem:[#allocation18 + $0x100] sm:$0xff] (!%p10679_p4) }
 0x69e   : > { %4411 = vmatprep.subr.bf16.mxu0 %v8212_v20  ;;  %v4485_v20 = vld [vmem:[#allocation18 + $0x120] sm:$0xff] (!%p10679_p4) }
 0x6a1   : > { %4412 = vmatpush1.bf16.msra.mxu0 %v8210_v28  ;;  %v7598_v28 = vcombine.low (!%p10679_p4), %v4473_v26, %v4477_v27  ;;  %v4450_v26 = vld [vmem:[#allocation18 + $0x8] sm:$0xff] (!%p10679_p4) }
 0x6a2   : > { %4413 = vmatprep.subr.bf16.mxu0 %v8215_v15  ;;  %v7607_v15 = vcombine.high (!%p10679_p4), %v4481_v49, %v4485_v20  ;;  %v4454_v27 = vld [vmem:[#allocation18 + $0x28] sm:$0xff] (!%p10679_p4) }
 0x6a3   : > { %5399 = vmatpush1.bf16.msra.mxu1 (!%p10679_p4), %v7598_v28  ;;  %v7577_v28 = vcombine.high (!%p10679_p4), %v4450_v26, %v4454_v27 }
 0x6a4   : > { %5400 = vmatprep.subr.bf16.mxu1 (!%p10679_p4), %v7607_v15 }
 0x6a5   : > { %4414 = vmatpush1.bf16.msra.mxu0 %v8213_v5  ;;  %v4489_v5 = vld [vmem:[#allocation18 + $0x140] sm:$0xff] (!%p10679_p4) }
 0x6a6   : > { %4415 = vmatprep.subr.bf16.mxu0 %v8218_v29  ;;  %v4493_v29 = vld [vmem:[#allocation18 + $0x160] sm:$0xff] (!%p10679_p4) }
 0x6a9   : > { %4416 = vmatpush1.bf16.msra.mxu0 %v8216_v30  ;;  %v7606_v30 = vcombine.low (!%p10679_p4), %v4481_v49, %v4485_v20  ;;  %v4458_v49 = vld [vmem:[#allocation18 + $0x48] sm:$0xff] (!%p10679_p4) }
 0x6aa   : > { %4417 = vmatprep.subr.bf16.mxu0 %v8221_v33  ;;  %v7615_v33 = vcombine.high (!%p10679_p4), %v4489_v5, %v4493_v29  ;;  %v4462_v20 = vld [vmem:[#allocation18 + $0x68] sm:$0xff] (!%p10679_p4) }
 0x6ab   : > { %5401 = vmatpush1.bf16.msra.mxu1 (!%p10679_p4), %v7606_v30  ;;  %v4470_v30 = vld [vmem:[#allocation18 + $0xa8] sm:$0xff] (!%p10679_p4) }
 0x6ac   : > { %5402 = vmatprep.subr.bf16.mxu1 (!%p10679_p4), %v7615_v33  ;;  %v7585_v33 = vcombine.high (!%p10679_p4), %v4458_v49, %v4462_v20 }
 0x6ad   : > { %4418 = vmatpush1.bf16.msra.mxu0 %v8219_v34  ;;  %v4497_v34 = vld [vmem:[#allocation18 + $0x180] sm:$0xff] (!%p10679_p4) }
 0x6ae   : > { %4419 = vmatprep.subr.bf16.mxu0 %v8224_v50  ;;  %v4501_v50 = vld [vmem:[#allocation18 + $0x1a0] sm:$0xff] (!%p10679_p4) }
 0x6b1   : > { %4420 = vmatpush1.bf16.msra.mxu0 %v8222_v35  ;;  %v7614_v35 = vcombine.low (!%p10679_p4), %v4489_v5, %v4493_v29  ;;  %v7576_v5 = vcombine.low (!%p10679_p4), %v4450_v26, %v4454_v27  ;;  %v4466_v29 = vld [vmem:[#allocation18 + $0x88] sm:$0xff] (!%p10679_p4) }
 0x6b2   : > { %4421 = vmatprep.subr.bf16.mxu0 %v8227_v36  ;;  %v7623_v36 = vcombine.high (!%p10679_p4), %v4497_v34, %v4501_v50  ;;  %v4550_v26 = vld [vmem:[#allocation18 + $0x328] sm:$0xff] (!%p10679_p4) }
 0x6b3   : > { %5403 = vmatpush1.bf16.msra.mxu1 (!%p10679_p4), %v7614_v35  ;;  %v4478_v35 = vld [vmem:[#allocation18 + $0xe8] sm:$0xff] (!%p10679_p4) }
 0x6b4   : > { %5404 = vmatprep.subr.bf16.mxu1 (!%p10679_p4), %v7623_v36  ;;  %v7593_v36 = vcombine.high (!%p10679_p4), %v4466_v29, %v4470_v30 }
 0x6b5   : > { %4422 = vmatpush1.bf16.msra.mxu0 %v8225_v41  ;;  %v4505_v41 = vld [vmem:[#allocation18 + $0x1c0] sm:$0xff] (!%p10679_p4) }
 0x6b6   : > { %4423 = vmatprep.subr.bf16.mxu0 %v8230_v42  ;;  %v4509_v42 = vld [vmem:[#allocation18 + $0x1e0] sm:$0xff] (!%p10679_p4) }
 0x6b9   : > { %4424 = vmatpush1.bf16.msra.mxu0 %v8228_v44  ;;  %v7622_v44 = vcombine.low (!%p10679_p4), %v4497_v34, %v4501_v50  ;;  %v7584_v34 = vcombine.low (!%p10679_p4), %v4458_v49, %v4462_v20  ;;  %v4474_v50 = vld [vmem:[#allocation18 + $0xc8] sm:$0xff] (!%p10679_p4) }
 0x6ba   : > { %4425 = vmatprep.subr.bf16.mxu0 %v8233_v48  ;;  %v7631_v48 = vcombine.high (!%p10679_p4), %v4505_v41, %v4509_v42  ;;  %v4558_v49 = vld [vmem:[#allocation18 + $0x368] sm:$0xff] (!%p10679_p4) }
 0x6bb   : > { %5405 = vmatpush1.bf16.msra.mxu1 (!%p10679_p4), %v7622_v44  ;;  %v4486_v44 = vld [vmem:[#allocation18 + $0x128] sm:$0xff] (!%p10679_p4) }
 0x6bc   : > { %5406 = vmatprep.subr.bf16.mxu1 (!%p10679_p4), %v7631_v48  ;;  %v7601_v48 = vcombine.high (!%p10679_p4), %v4474_v50, %v4478_v35 }
 0x6bd   : > { %4426 = vmatpush1.bf16.msra.mxu0 %v8231_v1  ;;  %v4513_v1 = vld [vmem:[#allocation18 + $0x200] sm:$0xff] (!%p10679_p4) }
 0x6be   : > { %4427 = vmatprep.subr.bf16.mxu0 %v8236_v58  ;;  %v4517_v58 = vld [vmem:[#allocation18 + $0x220] sm:$0xff] (!%p10679_p4) }
 0x6c1   : > { %4428 = vmatpush1.bf16.msra.mxu0 %v8234_v7  ;;  %v7630_v7 = vcombine.low (!%p10679_p4), %v4505_v41, %v4509_v42  ;;  %v7592_v41 = vcombine.low (!%p10679_p4), %v4466_v29, %v4470_v30  ;;  %v4482_v42 = vld [vmem:[#allocation18 + $0x108] sm:$0xff] (!%p10679_p4) }
 0x6c2   : > { %4429 = vmatprep.subr.bf16.mxu0 %v8239_v51  ;;  %v4521_v51 = vld [vmem:[#allocation18 + $0x240] sm:$0xff] (!%p10679_p4)  ;;  %v4566_v29 = vld [vmem:[#allocation18 + $0x3a8] sm:$0xff] (!%p10679_p4) }
 0x6c3   : > { %5407 = vmatpush1.bf16.msra.mxu1 (!%p10679_p4), %v7630_v7  ;;  %v4490_v7 = vld [vmem:[#allocation18 + $0x148] sm:$0xff] (!%p10679_p4) }
 0x6c5   : > { %4430 = vmatpush1.bf16.msra.mxu0 %v8237_v37  ;;  %v4525_v37 = vld [vmem:[#allocation18 + $0x260] sm:$0xff] (!%p10679_p4) }
 0x6c6   : > { %4431 = vmatprep.subr.bf16.mxu0 %v8242_v47  ;;  %v7639_v47 = vcombine.high (!%p10679_p4), %v4513_v1, %v4517_v58 }
 0x6c8   : > { %5408 = vmatprep.subr.bf16.mxu1 (!%p10679_p4), %v7639_v47 }
 0x6c9   : > { %4432 = vmatpush1.bf16.msra.mxu0 %v8240_v54  ;;  %v7638_v54 = vcombine.low (!%p10679_p4), %v4513_v1, %v4517_v58  ;;  %v7600_v1 = vcombine.low (!%p10679_p4), %v4474_v50, %v4478_v35  ;;  %v7609_v58 = vcombine.high (!%p10679_p4), %v4482_v42, %v4486_v44  ;;  %v4574_v50 = vld [vmem:[#allocation18 + $0x3e8] sm:$0xff] (!%p10679_p4) }
 0x6ca   : > { %4433 = vmatprep.subr.bf16.mxu0 %v8245_v45  ;;  %v4529_v45 = vld [vmem:[#allocation18 + $0x280] sm:$0xff] (!%p10679_p4) }
 0x6cb   : > { %5409 = vmatpush1.bf16.msra.mxu1 (!%p10679_p4), %v7638_v54  ;;  %v4498_v54 = vld [vmem:[#allocation18 + $0x188] sm:$0xff] (!%p10679_p4) }
 0x6cd   : > { %4434 = vmatpush1.bf16.msra.mxu0 %v8243_v60  ;;  %v4533_v60 = vld [vmem:[#allocation18 + $0x2a0] sm:$0xff] (!%p10679_p4) }
 0x6ce   : > { %4435 = vmatprep.subr.bf16.mxu0 %v8248_v61  ;;  %v7647_v61 = vcombine.high (!%p10679_p4), %v4521_v51, %v4525_v37  ;;  %v7655_v43 = vcombine.high (!%p10679_p4), %v4529_v45, %v4533_v60 }
 0x6d0   : > { %5410 = vmatprep.subr.bf16.mxu1 (!%p10679_p4), %v7647_v61 }
 0x6d1   : > { %4436 = vmatpush1.bf16.msra.mxu0 %v8246_v57  ;;  %v7646_v57 = vcombine.low (!%p10679_p4), %v4521_v51, %v4525_v37  ;;  %v4494_v51 = vld [vmem:[#allocation18 + $0x168] sm:$0xff] (!%p10679_p4)  ;;  %v7608_v37 = vcombine.low (!%p10679_p4), %v4482_v42, %v4486_v44  ;;  %v4455_v42 = vld [vmem:[#allocation18 + $0x30] sm:$0xff] (!%p10679_p4) }
 0x6d2   : > { %v7617_v47 = vcombine.high (!%p10679_p4), %v4490_v7, %v4494_v51 }
 0x6d3   : > { %5411 = vmatpush1.bf16.msra.mxu1 (!%p10679_p4), %v7646_v57  ;;  %v4506_v57 = vld [vmem:[#allocation18 + $0x1c8] sm:$0xff] (!%p10679_p4) }
 0x6d4   : > { %4438 = vmatmul.mubr.bf16.vlgmr.msra.gmra.mrb[4].mxu0 %v3629_v40  ;;  %v4541_v40 = vld [vmem:[#allocation18 + $0x2e0] sm:$0xff] (!%p10679_p4)  ;;  %5412 = vmatprep.subr.bf16.mxu1 (!%p10679_p4), %v7655_v43 }
 0x7a4   : > { %4448 = sbr.rel (%p10679_p4) target bundleno = 2875 (0xb3b), region = 152 }
 0x7a7   : > { %v4439_v12 = vpop.f32.mrb[4].mxu0 }
 0x7a8   : > { %v10322_v13 = vadd.f32 %v4439_v12, %v3635_v6  ;;  %v4441_v16 = vpop.f32.mrb[5].mxu0  ;;  %v7654_v6 = vcombine.low (!%p10679_p4), %v4529_v45, %v4533_v60  ;;  %v4549_v12 = vld [vmem:[#allocation18 + $0x320] sm:$0xff] (!%p10679_p4)  ;;  %v4502_v45 = vld [vmem:[#allocation18 + $0x1a8] sm:$0xff] (!%p10679_p4)  ;;  %v7616_v60 = vcombine.low (!%p10679_p4), %v4490_v7, %v4494_v51 }
 0x7a9   : > { %v10324_v22 = vadd.f32 %v4441_v16, %v3639_v59  ;;  %v4443_v23 = vpop.f32.mrb[6].mxu0  ;;  %v4545_v59 = vld [vmem:[#allocation18 + $0x300] sm:$0xff] (!%p10679_p4)  ;;  %v7663_v16 = vcombine.high (!%p10679_p4), %v4537_v39, %v4541_v40  ;;  %v7625_v61 = vcombine.high (!%p10679_p4), %v4498_v54, %v4502_v45 }
 0x7aa   : > { %v4444_v11 = vpop.f32.mrb[7].mxu0  ;;  %5413 = vmatpush1.bf16.msra.mxu1 (!%p10679_p4), %v7654_v6  ;;  %v7662_v23 = vcombine.low (!%p10679_p4), %v4537_v39, %v4541_v40  ;;  %v7671_v24 = vcombine.high (!%p10679_p4), %v4545_v59, %v4549_v12  ;;  %v7670_v19 = vcombine.low (!%p10679_p4), %v4545_v59, %v4549_v12  ;;  %v10335_v15 = vpack.c.bf16 (!%p10679_p4), %v10322_v13, %v10322_v13  ;;  %v4510_v39 = vld [vmem:[#allocation18 + $0x1e8] sm:$0xff] (!%p10679_p4) }
 0x7ab   : > { %v10330_v25 = vpack.c.bf16 %v10324_v22, %v10324_v22  ;;  %v4553_v11 = vld [vmem:[#allocation18 + $0x340] sm:$0xff]  ;;  %5414 = vmatprep.subr.bf16.mxu1 %v7663_v16  ;;  %v7624_v40 = vcombine.low %v4498_v54, %v4502_v45  ;;  %v7633_v43 = vcombine.high %v4506_v57, %v4510_v39  ;;  %v4514_v6 = vld [vmem:[#allocation18 + $0x208] sm:$0xff]  ;;  %v7632_v12 = vcombine.low %v4506_v57, %v4510_v39 }
 0x7ac   : > { %v7679_v31 = vcombine.high %v4553_v11, %v4557_v52  ;;  %v7678_v56 = vcombine.low %v4553_v11, %v4557_v52  ;;  %v4518_v59 = vld [vmem:[#allocation18 + $0x228] sm:$0xff] }
 0x7ad   : > { %5424 = vmatprep.mubr.bf16.mxu1 %v10330_v25  ;;  %v7641_v16 = vcombine.high %v4514_v6, %v4518_v59  ;;  %v4526_v11 = vld [vmem:[#allocation18 + $0x268] sm:$0xff]  ;;  %v7640_v52 = vcombine.low %v4514_v6, %v4518_v59 }
 0x7ae   : > { %5415 = vmatpush1.bf16.msra.mxu1 %v7662_v23  ;;  %v4522_v23 = vld [vmem:[#allocation18 + $0x248] sm:$0xff] }
 0x7af   : > { %5416 = vmatprep.subr.bf16.mxu1 %v7671_v24  ;;  %v7649_v24 = vcombine.high %v4522_v23, %v4526_v11  ;;  %v7648_v2 = vcombine.low %v4522_v23, %v4526_v11 }
 0x7b2   : > { %5417 = vmatpush1.bf16.msra.mxu1 %v7670_v19  ;;  %v4530_v19 = vld [vmem:[#allocation18 + $0x288] sm:$0xff] }
 0x7b3   : > { %5418 = vmatprep.subr.bf16.mxu1 %v7679_v31  ;;  %v7657_v31 = vcombine.high %v4530_v19, %v4534_v55  ;;  %v7656_v8 = vcombine.low %v4530_v19, %v4534_v55 }
 0x7b6   : > { %5419 = vmatpush1.bf16.msra.mxu1 %v7678_v56  ;;  %v4538_v56 = vld [vmem:[#allocation18 + $0x2c8] sm:$0xff] }
 0x7b7   : > { %5420 = vmatprep.subr.bf16.mxu1 %v7687_v21  ;;  %v7665_v21 = vcombine.high %v4538_v56, %v4542_v10  ;;  %v7664_v27 = vcombine.low %v4538_v56, %v4542_v10 }
 0x7ba   : > { %5421 = vmatpush1.bf16.msra.mxu1 %v7686_v53  ;;  %v4546_v53 = vld [vmem:[#allocation18 + $0x308] sm:$0xff] }
 0x7bb   : > { %5422 = vmatprep.subr.bf16.mxu1 %v7695_v46  ;;  %v7673_v46 = vcombine.high %v4546_v53, %v4550_v26  ;;  %v7672_v20 = vcombine.low %v4546_v53, %v4550_v26 }
 0x7be   : > { %5423 = vmatpush1.bf16.msra.mxu1 %v7694_v38  ;;  %v4554_v38 = vld [vmem:[#allocation18 + $0x348] sm:$0xff] }
 0x7bf   : > { %5433 = vmatprep.subr.bf16.mxu1 %v7577_v28  ;;  %v7681_v28 = vcombine.high %v4554_v38, %v4558_v49  ;;  %v7680_v30 = vcombine.low %v4554_v38, %v4558_v49 }
 0x7c1   : > { %5425 = vmatmul.mubr.bf16.vlgmr.msra.gmra.mrb[0].mxu1 %v10335_v15 }
 0x7c2   : > { %5434 = vmatpush1.bf16.msra.mxu1 %v7576_v5  ;;  %5465 = vmatprep.mubr.bf16.mxu1 %v10330_v25  ;;  %v4562_v5 = vld [vmem:[#allocation18 + $0x388] sm:$0xff] }
 0x7c3   : > { %5435 = vmatprep.subr.bf16.mxu1 %v7585_v33  ;;  %v7689_v33 = vcombine.high %v4562_v5, %v4566_v29  ;;  %v7688_v35 = vcombine.low %v4562_v5, %v4566_v29 }
 0x7c6   : > { %5436 = vmatpush1.bf16.msra.mxu1 %v7584_v34  ;;  %v4570_v34 = vld [vmem:[#allocation18 + $0x3c8] sm:$0xff] }
 0x7c7   : > { %5437 = vmatprep.subr.bf16.mxu1 %v7593_v36  ;;  %v7697_v36 = vcombine.high %v4570_v34, %v4574_v50  ;;  %v7696_v44 = vcombine.low %v4570_v34, %v4574_v50 }
 0x7ca   : > { %5438 = vmatpush1.bf16.msra.mxu1 %v7592_v41  ;;  %v4451_v41 = vld [vmem:[#allocation18 + $0x10] sm:$0xff] }
 0x7cb   : > { %5439 = vmatprep.subr.bf16.mxu1 %v7601_v48  ;;  %v7579_v48 = vcombine.high %v4451_v41, %v4455_v42  ;;  %v7578_v7 = vcombine.low %v4451_v41, %v4455_v42 }
 0x7ce   : > { %5440 = vmatpush1.bf16.msra.mxu1 %v7600_v1  ;;  %v4459_v1 = vld [vmem:[#allocation18 + $0x50] sm:$0xff] }
 0x7cf   : > { %5441 = vmatprep.subr.bf16.mxu1 %v7609_v58  ;;  %v4463_v58 = vld [vmem:[#allocation18 + $0x70] sm:$0xff] }
 0x7d0   : > { %v7587_v51 = vcombine.high %v4459_v1, %v4463_v58  ;;  %v7586_v54 = vcombine.low %v4459_v1, %v4463_v58 }
 0x7d2   : > { %5442 = vmatpush1.bf16.msra.mxu1 %v7608_v37  ;;  %v4467_v37 = vld [vmem:[#allocation18 + $0x90] sm:$0xff] }
 0x7d3   : > { %5443 = vmatprep.subr.bf16.mxu1 %v7617_v47  ;;  %v4471_v47 = vld [vmem:[#allocation18 + $0xb0] sm:$0xff] }
 0x7d4   : > { %v7595_v45 = vcombine.high %v4467_v37, %v4471_v47  ;;  %v7594_v57 = vcombine.low %v4467_v37, %v4471_v47 }
 0x7d6   : > { %5444 = vmatpush1.bf16.msra.mxu1 %v7616_v60  ;;  %v4475_v60 = vld [vmem:[#allocation18 + $0xd0] sm:$0xff] }
 0x7d7   : > { %5445 = vmatprep.subr.bf16.mxu1 %v7625_v61  ;;  %v4479_v61 = vld [vmem:[#allocation18 + $0xf0] sm:$0xff] }
 0x7d8   : > { %v7603_v39 = vcombine.high %v4475_v60, %v4479_v61  ;;  %v7602_v6 = vcombine.low %v4475_v60, %v4479_v61 }
 0x7da   : > { %5446 = vmatpush1.bf16.msra.mxu1 %v7624_v40  ;;  %v4483_v40 = vld [vmem:[#allocation18 + $0x110] sm:$0xff] }
 0x7db   : > { %5447 = vmatprep.subr.bf16.mxu1 %v7633_v43  ;;  %v4487_v43 = vld [vmem:[#allocation18 + $0x130] sm:$0xff] }
 0x7dc   : > { %v7611_v59 = vcombine.high %v4483_v40, %v4487_v43  ;;  %v7610_v23 = vcombine.low %v4483_v40, %v4487_v43 }
 0x7de   : > { %5448 = vmatpush1.bf16.msra.mxu1 %v7632_v12  ;;  %v4491_v12 = vld [vmem:[#allocation18 + $0x150] sm:$0xff] }
 0x7df   : > { %5449 = vmatprep.subr.bf16.mxu1 %v7641_v16  ;;  %v4495_v16 = vld [vmem:[#allocation18 + $0x170] sm:$0xff] }
 0x7e0   : > { %v7619_v11 = vcombine.high %v4491_v12, %v4495_v16  ;;  %v7618_v19 = vcombine.low %v4491_v12, %v4495_v16 }
 0x7e2   : > { %5450 = vmatpush1.bf16.msra.mxu1 %v7640_v52  ;;  %v4499_v52 = vld [vmem:[#allocation18 + $0x190] sm:$0xff] }
 0x7e3   : > { %5451 = vmatprep.subr.bf16.mxu1 %v7649_v24  ;;  %v4503_v24 = vld [vmem:[#allocation18 + $0x1b0] sm:$0xff] }
 0x7e4   : > { %v7627_v55 = vcombine.high %v4499_v52, %v4503_v24  ;;  %v7626_v56 = vcombine.low %v4499_v52, %v4503_v24 }
 0x7e6   : > { %5452 = vmatpush1.bf16.msra.mxu1 %v7648_v2  ;;  %v4507_v2 = vld [vmem:[#allocation18 + $0x1d0] sm:$0xff] }
 0x7e7   : > { %5453 = vmatprep.subr.bf16.mxu1 %v7657_v31  ;;  %v4511_v31 = vld [vmem:[#allocation18 + $0x1f0] sm:$0xff] }
 0x7e8   : > { %v7635_v10 = vcombine.high %v4507_v2, %v4511_v31  ;;  %v7634_v53 = vcombine.low %v4507_v2, %v4511_v31 }
 0x7ea   : > { %5454 = vmatpush1.bf16.msra.mxu1 %v7656_v8  ;;  %v4515_v8 = vld [vmem:[#allocation18 + $0x210] sm:$0xff] }
 0x7eb   : > { %5455 = vmatprep.subr.bf16.mxu1 %v7665_v21  ;;  %v4519_v21 = vld [vmem:[#allocation18 + $0x230] sm:$0xff] }
 0x7ec   : > { %v7643_v26 = vcombine.high %v4515_v8, %v4519_v21  ;;  %v7642_v38 = vcombine.low %v4515_v8, %v4519_v21 }
 0x7ee   : > { %5456 = vmatpush1.bf16.msra.mxu1 %v7664_v27  ;;  %v4523_v27 = vld [vmem:[#allocation18 + $0x250] sm:$0xff] }
 0x7ef   : > { %5457 = vmatprep.subr.bf16.mxu1 %v7673_v46  ;;  %v4527_v46 = vld [vmem:[#allocation18 + $0x270] sm:$0xff] }
 0x7f0   : > { %v7651_v49 = vcombine.high %v4523_v27, %v4527_v46  ;;  %v7650_v5 = vcombine.low %v4523_v27, %v4527_v46  ;;  %v4500_v46 = vld [vmem:[#allocation18 + $0x198] sm:$0xff] }
 0x7f2   : > { %5458 = vmatpush1.bf16.msra.mxu1 %v7672_v20  ;;  %v4531_v20 = vld [vmem:[#allocation18 + $0x290] sm:$0xff] }
 0x7f3   : > { %5459 = vmatprep.subr.bf16.mxu1 %v7681_v28  ;;  %v4535_v28 = vld [vmem:[#allocation18 + $0x2b0] sm:$0xff] }
 0x7f4   : > { %v7659_v29 = vcombine.high %v4531_v20, %v4535_v28  ;;  %v7658_v34 = vcombine.low %v4531_v20, %v4535_v28  ;;  %v4508_v28 = vld [vmem:[#allocation18 + $0x1d8] sm:$0xff] }
 0x7f6   : > { %5460 = vmatpush1.bf16.msra.mxu1 %v7680_v30  ;;  %v4539_v30 = vld [vmem:[#allocation18 + $0x2d0] sm:$0xff] }
 0x7f7   : > { %5461 = vmatprep.subr.bf16.mxu1 %v7689_v33  ;;  %v4543_v33 = vld [vmem:[#allocation18 + $0x2f0] sm:$0xff] }
 0x7f8   : > { %v7667_v50 = vcombine.high %v4539_v30, %v4543_v33  ;;  %v7666_v41 = vcombine.low %v4539_v30, %v4543_v33  ;;  %v4516_v33 = vld [vmem:[#allocation18 + $0x218] sm:$0xff] }
 0x7fa   : > { %5462 = vmatpush1.bf16.msra.mxu1 %v7688_v35  ;;  %v4547_v35 = vld [vmem:[#allocation18 + $0x310] sm:$0xff] }
 0x7fb   : > { %5463 = vmatprep.subr.bf16.mxu1 %v7697_v36  ;;  %v4551_v36 = vld [vmem:[#allocation18 + $0x330] sm:$0xff] }
 0x7fc   : > { %v7675_v42 = vcombine.high %v4547_v35, %v4551_v36  ;;  %v7674_v1 = vcombine.low %v4547_v35, %v4551_v36  ;;  %v4524_v36 = vld [vmem:[#allocation18 + $0x258] sm:$0xff] }
 0x7fe   : > { %5464 = vmatpush1.bf16.msra.mxu1 %v7696_v44  ;;  %v4555_v44 = vld [vmem:[#allocation18 + $0x350] sm:$0xff] }
 0x7ff   : > { %5474 = vmatprep.subr.bf16.mxu1 %v7579_v48  ;;  %v4559_v48 = vld [vmem:[#allocation18 + $0x370] sm:$0xff] }
 0x800   : > { %v7683_v58 = vcombine.high %v4555_v44, %v4559_v48  ;;  %v7682_v37 = vcombine.low %v4555_v44, %v4559_v48  ;;  %v4532_v48 = vld [vmem:[#allocation18 + $0x298] sm:$0xff] }
 0x801   : > { %5466 = vmatmul.mubr.bf16.vlgmr.msra.gmra.mrb[4].mxu1 %v10335_v15 }
 0x802   : > { %5475 = vmatpush1.bf16.msra.mxu1 %v7578_v7  ;;  %5506 = vmatprep.mubr.bf16.mxu1 %v10330_v25  ;;  %v4563_v7 = vld [vmem:[#allocation18 + $0x390] sm:$0xff] }
 0x803   : > { %5476 = vmatprep.subr.bf16.mxu1 %v7587_v51  ;;  %v4567_v51 = vld [vmem:[#allocation18 + $0x3b0] sm:$0xff] }
 0x804   : > { %v7691_v47 = vcombine.high %v4563_v7, %v4567_v51  ;;  %v7690_v60 = vcombine.low %v4563_v7, %v4567_v51  ;;  %v4540_v51 = vld [vmem:[#allocation18 + $0x2d8] sm:$0xff] }
 0x806   : > { %5477 = vmatpush1.bf16.msra.mxu1 %v7586_v54  ;;  %v4571_v54 = vld [vmem:[#allocation18 + $0x3d0] sm:$0xff] }
 0x807   : > { %5478 = vmatprep.subr.bf16.mxu1 %v7595_v45  ;;  %v4575_v45 = vld [vmem:[#allocation18 + $0x3f0] sm:$0xff] }
 0x808   : > { %v7699_v61 = vcombine.high %v4571_v54, %v4575_v45  ;;  %v7698_v40 = vcombine.low %v4571_v54, %v4575_v45  ;;  %v4548_v45 = vld [vmem:[#allocation18 + $0x318] sm:$0xff] }
 0x80a   : > { %5479 = vmatpush1.bf16.msra.mxu1 %v7594_v57  ;;  %v4452_v57 = vld [vmem:[#allocation18 + $0x18] sm:$0xff] }
 0x80b   : > { %5480 = vmatprep.subr.bf16.mxu1 %v7603_v39  ;;  %v4456_v39 = vld [vmem:[#allocation18 + $0x38] sm:$0xff] }
 0x80c   : > { %v7581_v43 = vcombine.high %v4452_v57, %v4456_v39  ;;  %v7580_v12 = vcombine.low %v4452_v57, %v4456_v39  ;;  %v4556_v39 = vld [vmem:[#allocation18 + $0x358] sm:$0xff] }
 0x80e   : > { %5481 = vmatpush1.bf16.msra.mxu1 %v7602_v6  ;;  %v4460_v6 = vld [vmem:[#allocation18 + $0x58] sm:$0xff] }
 0x80f   : > { %5482 = vmatprep.subr.bf16.mxu1 %v7611_v59  ;;  %v4464_v59 = vld [vmem:[#allocation18 + $0x78] sm:$0xff] }
 0x810   : > { %v7589_v16 = vcombine.high %v4460_v6, %v4464_v59  ;;  %v7588_v52 = vcombine.low %v4460_v6, %v4464_v59  ;;  %v4564_v59 = vld [vmem:[#allocation18 + $0x398] sm:$0xff] }
 0x812   : > { %5483 = vmatpush1.bf16.msra.mxu1 %v7610_v23  ;;  %v4468_v23 = vld [vmem:[#allocation18 + $0x98] sm:$0xff] }
 0x813   : > { %5484 = vmatprep.subr.bf16.mxu1 %v7619_v11  ;;  %v4472_v11 = vld [vmem:[#allocation18 + $0xb8] sm:$0xff] }
 0x814   : > { %v7597_v24 = vcombine.high %v4468_v23, %v4472_v11  ;;  %v7596_v2 = vcombine.low %v4468_v23, %v4472_v11  ;;  %v4572_v11 = vld [vmem:[#allocation18 + $0x3d8] sm:$0xff] }
 0x816   : > { %5485 = vmatpush1.bf16.msra.mxu1 %v7618_v19  ;;  %v4476_v19 = vld [vmem:[#allocation18 + $0xd8] sm:$0xff] }
 0x817   : > { %5486 = vmatprep.subr.bf16.mxu1 %v7627_v55  ;;  %v4480_v55 = vld [vmem:[#allocation18 + $0xf8] sm:$0xff] }
 0x818   : > { %v7605_v31 = vcombine.high %v4476_v19, %v4480_v55  ;;  %v7604_v8 = vcombine.low %v4476_v19, %v4480_v55 }
 0x81a   : > { %5487 = vmatpush1.bf16.msra.mxu1 %v7626_v56  ;;  %v4484_v56 = vld [vmem:[#allocation18 + $0x118] sm:$0xff] }
 0x81b   : > { %5488 = vmatprep.subr.bf16.mxu1 %v7635_v10  ;;  %v4488_v10 = vld [vmem:[#allocation18 + $0x138] sm:$0xff] }
 0x81c   : > { %v7613_v21 = vcombine.high %v4484_v56, %v4488_v10  ;;  %v7612_v27 = vcombine.low %v4484_v56, %v4488_v10 }
 0x81e   : > { %5489 = vmatpush1.bf16.msra.mxu1 %v7634_v53  ;;  %v4492_v53 = vld [vmem:[#allocation18 + $0x158] sm:$0xff] }
 0x81f   : > { %5490 = vmatprep.subr.bf16.mxu1 %v7643_v26  ;;  %v4496_v26 = vld [vmem:[#allocation18 + $0x178] sm:$0xff] }
 0x822   : > { %5491 = vmatpush1.bf16.msra.mxu1 %v7642_v38  ;;  %v4504_v38 = vld [vmem:[#allocation18 + $0x1b8] sm:$0xff] }
 0x823   : > { %5492 = vmatprep.subr.bf16.mxu1 %v7651_v49  ;;  %v7620_v49 = vcombine.low %v4492_v53, %v4496_v26  ;;  %v7629_v20 = vcombine.high %v4500_v46, %v4504_v38 }
 0x826   : > { %5493 = vmatpush1.bf16.msra.mxu1 %v7650_v5  ;;  %v4512_v5 = vld [vmem:[#allocation18 + $0x1f8] sm:$0xff] }
 0x827   : > { %5494 = vmatprep.subr.bf16.mxu1 %v7659_v29  ;;  %v7628_v29 = vcombine.low %v4500_v46, %v4504_v38  ;;  %v7637_v30 = vcombine.high %v4508_v28, %v4512_v5 }
 0x82a   : > { %5495 = vmatpush1.bf16.msra.mxu1 %v7658_v34  ;;  %v4520_v34 = vld [vmem:[#allocation18 + $0x238] sm:$0xff] }
 0x82b   : > { %5496 = vmatprep.subr.bf16.mxu1 %v7667_v50  ;;  %v7636_v50 = vcombine.low %v4508_v28, %v4512_v5  ;;  %v7645_v35 = vcombine.high %v4516_v33, %v4520_v34 }
 0x82e   : > { %5497 = vmatpush1.bf16.msra.mxu1 %v7666_v41  ;;  %v4528_v41 = vld [vmem:[#allocation18 + $0x278] sm:$0xff] }
 0x82f   : > { %5498 = vmatprep.subr.bf16.mxu1 %v7675_v42  ;;  %v7644_v42 = vcombine.low %v4516_v33, %v4520_v34  ;;  %v7653_v44 = vcombine.high %v4524_v36, %v4528_v41 }
 0x832   : > { %5499 = vmatpush1.bf16.msra.mxu1 %v7674_v1  ;;  %v4536_v1 = vld [vmem:[#allocation18 + $0x2b8] sm:$0xff] }
 0x833   : > { %5500 = vmatprep.subr.bf16.mxu1 %v7683_v58  ;;  %v7652_v58 = vcombine.low %v4524_v36, %v4528_v41  ;;  %v7661_v7 = vcombine.high %v4532_v48, %v4536_v1 }
 0x836   : > { %5501 = vmatpush1.bf16.msra.mxu1 %v7682_v37  ;;  %v4544_v37 = vld [vmem:[#allocation18 + $0x2f8] sm:$0xff] }
 0x837   : > { %5502 = vmatprep.subr.bf16.mxu1 %v7691_v47  ;;  %v7660_v47 = vcombine.low %v4532_v48, %v4536_v1  ;;  %v7669_v54 = vcombine.high %v4540_v51, %v4544_v37 }
 0x83a   : > { %5503 = vmatpush1.bf16.msra.mxu1 %v7690_v60  ;;  %v4552_v60 = vld [vmem:[#allocation18 + $0x338] sm:$0xff] }
 0x83b   : > { %5504 = vmatprep.subr.bf16.mxu1 %v7699_v61  ;;  %v7668_v61 = vcombine.low %v4540_v51, %v4544_v37  ;;  %v7677_v57 = vcombine.high %v4548_v45, %v4552_v60 }
 0x83e   : > { %5505 = vmatpush1.bf16.msra.mxu1 %v7698_v40  ;;  %v4560_v40 = vld [vmem:[#allocation18 + $0x378] sm:$0xff] }
 0x83f   : > { %5515 = vmatprep.subr.bf16.mxu1 %v7581_v43  ;;  %v7676_v43 = vcombine.low %v4548_v45, %v4552_v60  ;;  %v7685_v6 = vcombine.high %v4556_v39, %v4560_v40 }
 0x841   : > { %5507 = vmatmul.mubr.bf16.vlgmr.msra.gmra.mrb[8].mxu1 %v10335_v15 }
 0x842   : > { %5516 = vmatpush1.bf16.msra.mxu1 %v7580_v12  ;;  %5547 = vmatprep.mubr.bf16.mxu1 %v10330_v25  ;;  %v7621_v25 = vcombine.high %v4492_v53, %v4496_v26  ;;  %v4568_v12 = vld [vmem:[#allocation18 + $0x3b8] sm:$0xff] }
 0x843   : > { %5517 = vmatprep.subr.bf16.mxu1 %v7589_v16  ;;  %v7684_v16 = vcombine.low %v4556_v39, %v4560_v40  ;;  %v7693_v23 = vcombine.high %v4564_v59, %v4568_v12 }
 0x846   : > { %5518 = vmatpush1.bf16.msra.mxu1 %v7588_v52  ;;  %v4576_v52 = vld [vmem:[#allocation18 + $0x3f8] sm:$0xff] }
 0x847   : > { %5519 = vmatprep.subr.bf16.mxu1 %v7597_v24  ;;  %v7692_v24 = vcombine.low %v4564_v59, %v4568_v12  ;;  %v7701_v19 = vcombine.high %v4572_v11, %v4576_v52  ;;  %v7700_v55 = vcombine.low %v4572_v11, %v4576_v52 }
 0x84a   : > { %5520 = vmatpush1.bf16.msra.mxu1 %v7596_v2  ;;  %v10344_v2 = vld [vmem:[#allocation19] sm:$0xff] }
 0x84b   : > { %5521 = vmatprep.subr.bf16.mxu1 %v7605_v31  ;;  %v4715_v31 = vrot.slane %v10344_v2, %v9719_v63  ;;  %v4719_v56 = vrot.slane %v10344_v2, %v9737_v9 }
 0x84e   : > { %5522 = vmatpush1.bf16.msra.mxu1 %v7604_v8 }
 0x84f   : > { %5523 = vmatprep.subr.bf16.mxu1 %v7613_v21 }
 0x852   : > { %5524 = vmatpush1.bf16.msra.mxu1 %v7612_v27 }
 0x853   : > { %5525 = vmatprep.subr.bf16.mxu1 %v7621_v25 }
 0x856   : > { %5526 = vmatpush1.bf16.msra.mxu1 %v7620_v49 }
 0x857   : > { %5527 = vmatprep.subr.bf16.mxu1 %v7629_v20 }
 0x85a   : > { %5528 = vmatpush1.bf16.msra.mxu1 %v7628_v29 }
 0x85b   : > { %5529 = vmatprep.subr.bf16.mxu1 %v7637_v30 }
 0x85e   : > { %5530 = vmatpush1.bf16.msra.mxu1 %v7636_v50 }
 0x85f   : > { %5531 = vmatprep.subr.bf16.mxu1 %v7645_v35 }
 0x862   : > { %5532 = vmatpush1.bf16.msra.mxu1 %v7644_v42 }
 0x863   : > { %5533 = vmatprep.subr.bf16.mxu1 %v7653_v44 }
 0x866   : > { %5534 = vmatpush1.bf16.msra.mxu1 %v7652_v58 }
 0x867   : > { %5535 = vmatprep.subr.bf16.mxu1 %v7661_v7 }
 0x86a   : > { %5536 = vmatpush1.bf16.msra.mxu1 %v7660_v47 }
 0x86b   : > { %5537 = vmatprep.subr.bf16.mxu1 %v7669_v54 }
 0x86e   : > { %5538 = vmatpush1.bf16.msra.mxu1 %v7668_v61 }
 0x86f   : > { %5539 = vmatprep.subr.bf16.mxu1 %v7677_v57 }
 0x872   : > { %5540 = vmatpush1.bf16.msra.mxu1 %v7676_v43 }
 0x873   : > { %5541 = vmatprep.subr.bf16.mxu1 %v7685_v6 }
 0x876   : > { %5542 = vmatpush1.bf16.msra.mxu1 %v7684_v16 }
 0x877   : > { %5543 = vmatprep.subr.bf16.mxu1 %v7693_v23 }
 0x87a   : > { %5544 = vmatpush1.bf16.msra.mxu1 %v7692_v24 }
 0x87b   : > { %5545 = vmatprep.subr.bf16.mxu1 %v7701_v19 }
 0x87e   : > { %5546 = vmatpush1.bf16.msra.mxu1 %v7700_v55 }
 0x881   : > { %5548 = vmatmul.mubr.bf16.vlgmr.msra.gmra.mrb[12].mxu1 %v10335_v15 }
 0x894   : > { %v5426_v10 = vpop.f32.mrb[0].mxu1 }
 0x895   : > { %v10350_v8 = vadd.f32 %v5426_v10, %v4715_v31  ;;  %v5428_v21 = vpop.f32.mrb[1].mxu1  ;;  %v4723_v10 = vrot.slane %v10344_v2, %v9727_v3 }
 0x896   : > { %v10352_v53 = vadd.f32 %v5428_v21, %v4719_v56  ;;  %v5430_v26 = vpop.f32.mrb[2].mxu1  ;;  %v4727_v21 = vrot.slane %v10344_v2, %v9749_v17 }
 0x897   : > { %v5556_v27 = vsel %vm3213_vm6, %v10350_v8, 0.0  ;;  %v5620_v15 = vmul.f32 %v10350_v8, %v10350_v8  ;;  %v5431_v25 = vpop.f32.mrb[3].mxu1 }
 0x898   : > { %v5557_v46 = vrot.slane %v5556_v27, 4  ;;  %v5563_v38 = vsel %vm3213_vm6, %v10352_v53, 0.0  ;;  %v5621_v49 = vmul.f32 %v10352_v53, %v10352_v53 }
 0x899   : > { %v5628_v20 = vsel %vm3213_vm6, %v5620_v15, 0.0  ;;  %v5564_v28 = vrot.slane %v5563_v38, 4 }
 0x89a   : > { %v5558_v5 = vadd.f32 %v5557_v46, %v5556_v27  ;;  %v5629_v29 = vrot.slane %v5628_v20, 4  ;;  %v5635_v30 = vsel %vm3213_vm6, %v5621_v49, 0.0 }
 0x89b   : > { %v5565_v33 = vadd.f32 %v5564_v28, %v5563_v38  ;;  %v5636_v34 = vrot.slane %v5635_v30, 4 }
 0x89c   : > { %v5559_v50 = vrot.slane %v5558_v5, 2  ;;  %v5630_v35 = vadd.f32 %v5629_v29, %v5628_v20 }
 0x89d   : > { %v5566_v36 = vrot.slane %v5565_v33, 2  ;;  %v5637_v41 = vadd.f32 %v5636_v34, %v5635_v30 }
 0x89e   : > { %v5560_v42 = vadd.f32 %v5559_v50, %v5558_v5  ;;  %v5631_v44 = vrot.slane %v5630_v35, 2 }
 0x89f   : > { %v5567_v48 = vadd.f32 %v5566_v36, %v5565_v33  ;;  %v5638_v1 = vrot.slane %v5637_v41, 2 }
 0x8a0   : > { %v5561_v58 = vrot.slane %v5560_v42, 1  ;;  %v5632_v7 = vadd.f32 %v5631_v44, %v5630_v35 }
 0x8a1   : > { %v5568_v51 = vrot.slane %v5567_v48, 1  ;;  %v5639_v37 = vadd.f32 %v5638_v1, %v5637_v41 }
 0x8a2   : > { %v5562_v47 = vadd.f32 %v5561_v58, %v5560_v42  ;;  %v5633_v54 = vrot.slane %v5632_v7, 1  ;;  %v8265_v58 = vld [vmem:[#allocation24 + $0x4] ss:$8 sps:$4 sm:$0xff]  }
 0x8a3   : > { %v5569_v45 = vadd.f32 %v5568_v51, %v5567_v48  ;;  %v5640_v60 = vrot.slane %v5639_v37, 1  ;;  %6623 = vmatprep.subr.bf16.mxu0 %v8265_v58  ;;  %v8286_v58 = vld [vmem:[#allocation24 + $0x74] ss:$8 sps:$4 sm:$0xff]  }
 0x8a4   : > { %v10364_v61 = vmul.f32 0.5, %v5562_v47  ;;  %v5634_v57 = vadd.f32 %v5633_v54, %v5632_v7 }
 0x8a5   : > { %v10366_v39 = vmul.f32 0.5, %v5569_v45  ;;  %v5641_v40 = vadd.f32 %v5640_v60, %v5639_v37  ;;  %v8267_v37 = vld [vmem:[#allocation24] ss:$8 sps:$4 sm:$0xff]  }
 0x8a6   : > { %v5684_v43 = vmul.f32 0.5, %v5634_v57  ;;  %v5692_v6 = vmul.f32 %v10364_v61, %v10364_v61  ;;  %6624 = vmatpush1.bf16.msra.mxu0 %v8267_v37 }
 0x8a7   : > { %v5685_v59 = vmul.f32 0.5, %v5641_v40  ;;  %v5693_v12 = vmul.f32 %v10366_v39, %v10366_v39 }
 0x8a8   : > { %v5700_v16 = vsub.f32 %v5684_v43, %v5692_v6  ;;  %v8268_v43 = vld [vmem:[#allocation24 + $0x14] ss:$8 sps:$4 sm:$0xff]  }
 0x8a9   : > { %v5701_v23 = vsub.f32 %v5685_v59, %v5693_v12  ;;  %v8270_v12 = vld [vmem:[#allocation24 + $0x10] ss:$8 sps:$4 sm:$0xff]   ;;  %6625 = vmatprep.subr.bf16.mxu0 %v8268_v43  ;;  %v8295_v43 = vld [vmem:[#allocation24 + $0xa4] ss:$8 sps:$4 sm:$0xff]  }
 0x8aa   : > { %v5708_v11 = vmax.f32 %v5700_v16, 0.0  ;;  %6626 = vmatpush1.bf16.msra.mxu0 %v8270_v12  ;;  %v8304_v12 = vld [vmem:[#allocation24 + $0xd4] ss:$8 sps:$4 sm:$0xff]  }
 0x8ab   : > { %v5709_v52 = vmax.f32 %v5701_v23, 0.0 }
 0x8ac   : > { %v5716_v24 = vadd.f32 1e-05, %v5708_v11 }
 0x8ad   : > { %v5717_v19 = vadd.f32 1e-05, %v5709_v52 }
 0x8ae   : > { %8457 = vrsqrt.f32 %v5716_v24 }
 0x8af   : > { %8459 = vrsqrt.f32 %v5717_v19 }
 0x8b8   : > { %v10372_v55 = vpop.eup %8457 }
 0x8b9   : > { %v10374_v31 = vpop.eup %8459 }
 0x8ba   : > { %v5740_v56 = vcombine.low %v10372_v55, %v10374_v31  ;;  %v8298_v55 = vld [vmem:[#allocation24 + $0xb4] ss:$8 sps:$4 sm:$0xff]   ;;  %v8300_v31 = vld [vmem:[#allocation24 + $0xb0] ss:$8 sps:$4 sm:$0xff]  }
 0x8bc   : > { %v10408_v37 = vrot.slane %v5740_v56, %v10082_v32  ;;  %v8301_v56 = vld [vmem:[#allocation24 + $0xc4] ss:$8 sps:$4 sm:$0xff]  }
 0x8d4   : > { %v5467_v26 = vpop.f32.mrb[4].mxu1 }
 0x8d5   : > { %v10382_v27 = vadd.f32 %v5467_v26, %v4723_v10  ;;  %v5469_v15 = vpop.f32.mrb[5].mxu1  ;;  %v8271_v10 = vld [vmem:[#allocation24 + $0x24] ss:$8 sps:$4 sm:$0xff]  }
 0x8d6   : > { %v10384_v25 = vadd.f32 %v5469_v15, %v4727_v21  ;;  %v5471_v46 = vpop.f32.mrb[6].mxu1  ;;  %v8273_v15 = vld [vmem:[#allocation24 + $0x20] ss:$8 sps:$4 sm:$0xff]   ;;  %6627 = vmatprep.subr.bf16.mxu0 %v8271_v10 }
 0x8d7   : > { %v5570_v38 = vsel %vm3213_vm6, %v10382_v27, 0.0  ;;  %v5622_v49 = vmul.f32 %v10382_v27, %v10382_v27  ;;  %v5472_v20 = vpop.f32.mrb[7].mxu1  ;;  %6628 = vmatpush1.bf16.msra.mxu0 %v8273_v15 }
 0x8d8   : > { %v5571_v28 = vrot.slane %v5570_v38, 4  ;;  %v5577_v5 = vsel %vm3213_vm6, %v10384_v25, 0.0  ;;  %v5623_v29 = vmul.f32 %v10384_v25, %v10384_v25 }
 0x8d9   : > { %v5642_v30 = vsel %vm3213_vm6, %v5622_v49, 0.0  ;;  %v5578_v33 = vrot.slane %v5577_v5, 4 }
 0x8da   : > { %v5572_v34 = vadd.f32 %v5571_v28, %v5570_v38  ;;  %v5643_v50 = vrot.slane %v5642_v30, 4  ;;  %v5649_v35 = vsel %vm3213_vm6, %v5623_v29, 0.0  ;;  %v8274_v28 = vld [vmem:[#allocation24 + $0x34] ss:$8 sps:$4 sm:$0xff]   ;;  %v8276_v29 = vld [vmem:[#allocation24 + $0x30] ss:$8 sps:$4 sm:$0xff]  }
 0x8db   : > { %v5579_v36 = vadd.f32 %v5578_v33, %v5577_v5  ;;  %v5650_v41 = vrot.slane %v5649_v35, 4  ;;  %6629 = vmatprep.subr.bf16.mxu0 %v8274_v28 }
 0x8dc   : > { %v5573_v42 = vrot.slane %v5572_v34, 2  ;;  %v5644_v44 = vadd.f32 %v5643_v50, %v5642_v30  ;;  %6630 = vmatpush1.bf16.msra.mxu0 %v8276_v29  ;;  %v8277_v50 = vld [vmem:[#allocation24 + $0x44] ss:$8 sps:$4 sm:$0xff]  }
 0x8dd   : > { %v5580_v48 = vrot.slane %v5579_v36, 2  ;;  %v5651_v1 = vadd.f32 %v5650_v41, %v5649_v35  ;;  %v8279_v35 = vld [vmem:[#allocation24 + $0x40] ss:$8 sps:$4 sm:$0xff]   ;;  %6631 = vmatprep.subr.bf16.mxu0 %v8277_v50  ;;  %v8282_v41 = vld [vmem:[#allocation24 + $0x50] ss:$8 sps:$4 sm:$0xff]  }
 0x8de   : > { %v5574_v7 = vadd.f32 %v5573_v42, %v5572_v34  ;;  %v5645_v51 = vrot.slane %v5644_v44, 2  ;;  %v8283_v42 = vld [vmem:[#allocation24 + $0x64] ss:$8 sps:$4 sm:$0xff]  }
 0x8df   : > { %v5581_v47 = vadd.f32 %v5580_v48, %v5579_v36  ;;  %v5652_v54 = vrot.slane %v5651_v1, 2  ;;  %v8280_v36 = vld [vmem:[#allocation24 + $0x54] ss:$8 sps:$4 sm:$0xff]  }
 0x8e0   : > { %v5575_v45 = vrot.slane %v5574_v7, 1  ;;  %v5646_v60 = vadd.f32 %v5645_v51, %v5644_v44  ;;  %6632 = vmatpush1.bf16.msra.mxu0 %v8279_v35  ;;  %v8285_v44 = vld [vmem:[#allocation24 + $0x60] ss:$8 sps:$4 sm:$0xff]   ;;  %v8288_v51 = vld [vmem:[#allocation24 + $0x70] ss:$8 sps:$4 sm:$0xff]  }
 0x8e1   : > { %v5582_v57 = vrot.slane %v5581_v47, 1  ;;  %v5653_v40 = vadd.f32 %v5652_v54, %v5651_v1  ;;  %6633 = vmatprep.subr.bf16.mxu0 %v8280_v36  ;;  %v8289_v54 = vld [vmem:[#allocation24 + $0x84] ss:$8 sps:$4 sm:$0xff]  }
 0x8e2   : > { %v5576_v6 = vadd.f32 %v5575_v45, %v5574_v7  ;;  %v5647_v59 = vrot.slane %v5646_v60, 1 }
 0x8e3   : > { %v5583_v16 = vadd.f32 %v5582_v57, %v5581_v47  ;;  %v5654_v23 = vrot.slane %v5653_v40, 1  ;;  %v8292_v57 = vld [vmem:[#allocation24 + $0x94] ss:$8 sps:$4 sm:$0xff]  }
 0x8e4   : > { %v10396_v11 = vmul.f32 0.5, %v5576_v6  ;;  %v5648_v52 = vadd.f32 %v5647_v59, %v5646_v60  ;;  %6634 = vmatpush1.bf16.msra.mxu0 %v8282_v41  ;;  %v8291_v60 = vld [vmem:[#allocation24 + $0x80] ss:$8 sps:$4 sm:$0xff]  }
 0x8e5   : > { %v10398_v24 = vmul.f32 0.5, %v5583_v16  ;;  %v5655_v19 = vadd.f32 %v5654_v23, %v5653_v40  ;;  %6635 = vmatprep.subr.bf16.mxu0 %v8283_v42  ;;  %v8294_v40 = vld [vmem:[#allocation24 + $0x90] ss:$8 sps:$4 sm:$0xff]   ;;  %v8297_v6 = vld [vmem:[#allocation24 + $0xa0] ss:$8 sps:$4 sm:$0xff]  }
 0x8e6   : > { %v5686_v21 = vmul.f32 0.5, %v5648_v52  ;;  %v5694_v26 = vmul.f32 %v10396_v11, %v10396_v11  ;;  %v8303_v59 = vld [vmem:[#allocation24 + $0xc0] ss:$8 sps:$4 sm:$0xff]   ;;  %v8306_v16 = vld [vmem:[#allocation24 + $0xd0] ss:$8 sps:$4 sm:$0xff]  }
 0x8e7   : > { %v5687_v46 = vmul.f32 0.5, %v5655_v19  ;;  %v5695_v38 = vmul.f32 %v10398_v24, %v10398_v24  ;;  %v8307_v23 = vld [vmem:[#allocation24 + $0xe4] ss:$8 sps:$4 sm:$0xff]   ;;  %v8309_v19 = vld [vmem:[#allocation24 + $0xe0] ss:$8 sps:$4 sm:$0xff]  }
 0x8e8   : > { %v5702_v49 = vsub.f32 %v5686_v21, %v5694_v26  ;;  %6636 = vmatpush1.bf16.msra.mxu0 %v8285_v44  ;;  %v8310_v21 = vld [vmem:[#allocation24 + $0xf4] ss:$8 sps:$4 sm:$0xff]  }
 0x8e9   : > { %v5703_v20 = vsub.f32 %v5687_v46, %v5695_v38  ;;  %6637 = vmatprep.subr.bf16.mxu0 %v8286_v58  ;;  %v8312_v46 = vld [vmem:[#allocation24 + $0xf0] ss:$8 sps:$4 sm:$0xff]   ;;  %v8315_v38 = vld [vmem:[#allocation24 + $0x104] ss:$8 sps:$4 sm:$0xff]  }
 0x8ea   : > { %v5710_v5 = vmax.f32 %v5702_v49, 0.0  ;;  %v4731_v49 = vrot.slane %v10344_v2, %v9722_v0 }
 0x8eb   : > { %v5711_v30 = vmax.f32 %v5703_v20, 0.0  ;;  %v4735_v20 = vrot.slane %v10344_v2, %v9744_v14 }
 0x8ec   : > { %v5718_v33 = vadd.f32 1e-05, %v5710_v5  ;;  %6638 = vmatpush1.bf16.msra.mxu0 %v8288_v51 }
 0x8ed   : > { %v5719_v34 = vadd.f32 1e-05, %v5711_v30  ;;  %6639 = vmatprep.subr.bf16.mxu0 %v8289_v54 }
 0x8ee   : > { %8461 = vrsqrt.f32 %v5718_v33 }
 0x8ef   : > { %8463 = vrsqrt.f32 %v5719_v34 }
 0x8f0   : > { %6640 = vmatpush1.bf16.msra.mxu0 %v8291_v60 }
 0x8f1   : > { %6641 = vmatprep.subr.bf16.mxu0 %v8292_v57 }
 0x8f4   : > { %6642 = vmatpush1.bf16.msra.mxu0 %v8294_v40 }
 0x8f5   : > { %6643 = vmatprep.subr.bf16.mxu0 %v8295_v43 }
 0x8f8   : > { %v8462_v48 = vpop.eup %8461  ;;  %6644 = vmatpush1.bf16.msra.mxu0 %v8297_v6 }
 0x8f9   : > { %v8464_v1 = vpop.eup %8463  ;;  %6645 = vmatprep.subr.bf16.mxu0 %v8298_v55 }
 0x8fa   : > { %v5741_v7 = vcombine.low %v8462_v48, %v8464_v1 }
 0x8fc   : > { %v10411_v47 = vrot.slane %v5741_v7, %v10082_v32  ;;  %6646 = vmatpush1.bf16.msra.mxu0 %v8300_v31 }
 0x8fd   : > { %6647 = vmatprep.subr.bf16.mxu0 %v8301_v56 }
 0x8fe   : > { %v5772_v45 = vcombine.low %v10408_v37, %v10411_v47 }
 0x900   : > { %6648 = vmatpush1.bf16.msra.mxu0 %v8303_v59 }
 0x901   : > { %6649 = vmatprep.subr.bf16.mxu0 %v8304_v12  ;;  %v4739_v12 = vrot.slane %v10344_v2, %v9730_v4 }
 0x904   : > { %6650 = vmatpush1.bf16.msra.mxu0 %v8306_v16 }
 0x905   : > { %6651 = vmatprep.subr.bf16.mxu0 %v8307_v23  ;;  %v4743_v23 = vrot.slane %v10344_v2, %v9752_v18 }
 0x908   : > { %6652 = vmatpush1.bf16.msra.mxu0 %v8309_v19 }
 0x909   : > { %6653 = vmatprep.subr.bf16.mxu0 %v8310_v21 }
 0x90c   : > { %6654 = vmatpush1.bf16.msra.mxu0 %v8312_v46 }
 0x90d   : > { %6664 = vmatprep.subr.bf16.mxu0 %v8315_v38 }
 0x914   : > { %v5508_v52 = vpop.f32.mrb[8].mxu1 }
 0x915   : > { %v5510_v10 = vpop.f32.mrb[9].mxu1  ;;  %v10419_v28 = vadd.f32 %v5508_v52, %v4731_v49 }
 0x916   : > { %v5512_v26 = vpop.f32.mrb[10].mxu1  ;;  %v10421_v5 = vadd.f32 %v5510_v10, %v4735_v20 }
 0x917   : > { %v5513_v15 = vpop.f32.mrb[11].mxu1  ;;  %v5624_v29 = vmul.f32 %v10419_v28, %v10419_v28  ;;  %v5584_v30 = vsel %vm3213_vm6, %v10419_v28, 0.0 }
 0x918   : > { %v5591_v33 = vsel %vm3213_vm6, %v10421_v5, 0.0  ;;  %v5625_v34 = vmul.f32 %v10421_v5, %v10421_v5  ;;  %v5585_v50 = vrot.slane %v5584_v30, 4 }
 0x919   : > { %v5656_v35 = vsel %vm3213_vm6, %v5624_v29, 0.0  ;;  %v5592_v36 = vrot.slane %v5591_v33, 4 }
 0x91a   : > { %v5663_v41 = vsel %vm3213_vm6, %v5625_v34, 0.0  ;;  %v5657_v42 = vrot.slane %v5656_v35, 4  ;;  %v5586_v44 = vadd.f32 %v5585_v50, %v5584_v30 }
 0x91b   : > { %v5593_v48 = vadd.f32 %v5592_v36, %v5591_v33  ;;  %v5664_v1 = vrot.slane %v5663_v41, 4 }
 0x91c   : > { %v5658_v58 = vadd.f32 %v5657_v42, %v5656_v35  ;;  %v5587_v7 = vrot.slane %v5586_v44, 2 }
 0x91d   : > { %v5594_v51 = vrot.slane %v5593_v48, 2  ;;  %v5665_v54 = vadd.f32 %v5664_v1, %v5663_v41 }
 0x91e   : > { %v5659_v60 = vrot.slane %v5658_v58, 2  ;;  %v5588_v57 = vadd.f32 %v5587_v7, %v5586_v44 }
 0x91f   : > { %v5595_v40 = vadd.f32 %v5594_v51, %v5593_v48  ;;  %v5666_v43 = vrot.slane %v5665_v54, 2 }
 0x920   : > { %v5660_v6 = vadd.f32 %v5659_v60, %v5658_v58  ;;  %v5589_v55 = vrot.slane %v5588_v57, 1 }
 0x921   : > { %v5596_v31 = vrot.slane %v5595_v40, 1  ;;  %v5667_v56 = vadd.f32 %v5666_v43, %v5665_v54 }
 0x922   : > { %v5661_v59 = vrot.slane %v5660_v6, 1  ;;  %v5590_v16 = vadd.f32 %v5589_v55, %v5588_v57 }
 0x923   : > { %v5597_v52 = vadd.f32 %v5596_v31, %v5595_v40  ;;  %v5668_v19 = vrot.slane %v5667_v56, 1 }
 0x924   : > { %v5662_v21 = vadd.f32 %v5661_v59, %v5660_v6  ;;  %v10439_v46 = vmul.f32 0.5, %v5590_v16 }
 0x925   : > { %v10443_v20 = vmul.f32 0.5, %v5597_v52  ;;  %v5669_v29 = vadd.f32 %v5668_v19, %v5667_v56 }
 0x926   : > { %v5688_v36 = vmul.f32 0.5, %v5662_v21  ;;  %v5696_v44 = vmul.f32 %v10439_v46, %v10439_v46 }
 0x927   : > { %v5689_v7 = vmul.f32 0.5, %v5669_v29  ;;  %v5697_v51 = vmul.f32 %v10443_v20, %v10443_v20 }
 0x928   : > { %v5704_v55 = vsub.f32 %v5688_v36, %v5696_v44 }
 0x929   : > { %v5705_v59 = vsub.f32 %v5689_v7, %v5697_v51 }
 0x92a   : > { %v5712_v21 = vmax.f32 %v5704_v55, 0.0 }
 0x92b   : > { %v5713_v29 = vmax.f32 %v5705_v59, 0.0 }
 0x92c   : > { %v5720_v36 = vadd.f32 1e-05, %v5712_v21 }
 0x92d   : > { %v5721_v44 = vadd.f32 1e-05, %v5713_v29 }
 0x92e   : > { %8465 = vrsqrt.f32 %v5720_v36 }
 0x92f   : > { %8467 = vrsqrt.f32 %v5721_v44 }
 0x954   : > { %v5549_v10 = vpop.f32.mrb[12].mxu1 }
 0x955   : > { %v10437_v26 = vadd.f32 %v5549_v10, %v4739_v12  ;;  %v5551_v15 = vpop.f32.mrb[13].mxu1 }
 0x956   : > { %v10441_v38 = vadd.f32 %v5551_v15, %v4743_v23  ;;  %v5553_v49 = vpop.f32.mrb[14].mxu1 }
 0x957   : > { %v5598_v30 = vsel %vm3213_vm6, %v10437_v26, 0.0  ;;  %v5626_v2 = vmul.f32 %v10437_v26, %v10437_v26  ;;  %v5554_v33 = vpop.f32.mrb[15].mxu1 }
 0x958   : > { %v5599_v34 = vrot.slane %v5598_v30, 4  ;;  %v5605_v50 = vsel %vm3213_vm6, %v10441_v38, 0.0  ;;  %v5627_v35 = vmul.f32 %v10441_v38, %v10441_v38 }
 0x959   : > { %v5670_v41 = vsel %vm3213_vm6, %v5626_v2, 0.0  ;;  %v5606_v42 = vrot.slane %v5605_v50, 4 }
 0x95a   : > { %v5600_v48 = vadd.f32 %v5599_v34, %v5598_v30  ;;  %v5671_v1 = vrot.slane %v5670_v41, 4  ;;  %v5677_v58 = vsel %vm3213_vm6, %v5627_v35, 0.0 }
 0x95b   : > { %v5607_v54 = vadd.f32 %v5606_v42, %v5605_v50  ;;  %v5678_v60 = vrot.slane %v5677_v58, 4 }
 0x95c   : > { %v5601_v57 = vrot.slane %v5600_v48, 2  ;;  %v5672_v40 = vadd.f32 %v5671_v1, %v5670_v41 }
 0x95d   : > { %v5608_v43 = vrot.slane %v5607_v54, 2  ;;  %v5679_v6 = vadd.f32 %v5678_v60, %v5677_v58 }
 0x95e   : > { %v5602_v31 = vadd.f32 %v5601_v57, %v5600_v48  ;;  %v5673_v56 = vrot.slane %v5672_v40, 2 }
 0x95f   : > { %v5609_v12 = vadd.f32 %v5608_v43, %v5607_v54  ;;  %v5680_v16 = vrot.slane %v5679_v6, 2 }
 0x960   : > { %v5603_v23 = vrot.slane %v5602_v31, 1  ;;  %v5674_v52 = vadd.f32 %v5673_v56, %v5672_v40  ;;  %v8466_v40 = vpop.eup %8465 }
 0x961   : > { %v5610_v19 = vrot.slane %v5609_v12, 1  ;;  %v5681_v10 = vadd.f32 %v5680_v16, %v5679_v6  ;;  %v8468_v43 = vpop.eup %8467 }
 0x962   : > { %v5604_v15 = vadd.f32 %v5603_v23, %v5602_v31  ;;  %v5675_v49 = vrot.slane %v5674_v52, 1  ;;  %v5742_v55 = vcombine.low %v8466_v40, %v8468_v43  ;;  %v5780_v23 = vrot.slane %v5772_v45, %v10082_v32 }
 0x963   : > { %v5611_v30 = vadd.f32 %v5610_v19, %v5609_v12  ;;  %v5682_v2 = vrot.slane %v5681_v10, 1  ;;  %v4578_v19 = vld [vmem:[#allocation21] sm:$0xff] }
 0x964   : > { %v5618_v33 = vmul.f32 0.5, %v5604_v15  ;;  %v5676_v34 = vadd.f32 %v5675_v49, %v5674_v52  ;;  %v5764_v59 = vrot.slane %v5742_v55, %v10082_v32 }
 0x965   : > { %v5619_v50 = vmul.f32 0.5, %v5611_v30  ;;  %v5683_v35 = vadd.f32 %v5682_v2, %v5681_v10 }
 0x966   : > { %v5690_v41 = vmul.f32 0.5, %v5676_v34  ;;  %v5698_v42 = vmul.f32 %v5618_v33, %v5618_v33 }
 0x967   : > { %v5691_v48 = vmul.f32 0.5, %v5683_v35  ;;  %v5699_v1 = vmul.f32 %v5619_v50, %v5619_v50 }
 0x968   : > { %v5706_v58 = vsub.f32 %v5690_v41, %v5698_v42 }
 0x969   : > { %v5707_v7 = vsub.f32 %v5691_v48, %v5699_v1 }
 0x96a   : > { %v5714_v51 = vmax.f32 %v5706_v58, 0.0 }
 0x96b   : > { %v5715_v54 = vmax.f32 %v5707_v7, 0.0 }
 0x96c   : > { %v5722_v60 = vadd.f32 1e-05, %v5714_v51 }
 0x96d   : > { %v5723_v57 = vadd.f32 1e-05, %v5715_v54 }
 0x96e   : > { %8469 = vrsqrt.f32 %v5722_v60 }
 0x96f   : > { %8471 = vrsqrt.f32 %v5723_v57 }
 0x978   : > { %v8470_v6 = vpop.eup %8469 }
 0x979   : > { %v8472_v31 = vpop.eup %8471 }
 0x97a   : > { %v5743_v56 = vcombine.low %v8470_v6, %v8472_v31 }
 0x97c   : > { %v5771_v12 = vrot.slane %v5743_v56, %v10082_v32 }
 0x97e   : > { %v5773_v16 = vcombine.low %v5764_v59, %v5771_v12 }
 0x980   : > { %v5787_v52 = vrot.slane %v5773_v16, %v10082_v32 }
 0x982   : > { %v5788_v10 = vcombine.low %v5780_v23, %v5787_v52 }
 0x984   : > { %v5790_v21 = vmul.f32 %v5788_v10, %v4578_v19 }
 0x986   : > { %v5811_v15 = vrot.slane %v5790_v21, %v9722_v0  ;;  %v5815_v49 = vrot.slane %v5790_v21, %v9744_v14  ;;  %v5819_v29 = vrot.slane %v5790_v21, %v9730_v4  ;;  %v5823_v30 = vrot.slane %v5790_v21, %v9752_v18 }
 0x987   : > { %v5795_v2 = vrot.slane %v5790_v21, %v9719_v63  ;;  %v5799_v34 = vrot.slane %v5790_v21, %v9737_v9  ;;  %v5803_v37 = vrot.slane %v5790_v21, %v9727_v3  ;;  %v5807_v47 = vrot.slane %v5790_v21, %v9749_v17 }
 0x988   : > { %v5836_v45 = vmul.f32 %v5811_v15, %v10439_v46  ;;  %v5837_v35 = vmul.f32 %v5815_v49, %v10443_v20  ;;  %v5838_v36 = vmul.f32 %v5819_v29, %v5618_v33  ;;  %v5839_v41 = vmul.f32 %v5823_v30, %v5619_v50 }
 0x989   : > { %v5906_v42 = vmul.f32 %v5823_v30, %v10441_v38  ;;  %v5832_v44 = vmul.f32 %v5795_v2, %v10364_v61  ;;  %v5833_v48 = vmul.f32 %v5799_v34, %v10366_v39  ;;  %v5834_v1 = vmul.f32 %v5803_v37, %v10396_v11 }
 0x98a   : > { %v5850_v58 = vcombine.low %v5836_v45, %v5837_v35  ;;  %v5851_v7 = vcombine.low %v5838_v36, %v5839_v41  ;;  %v5835_v51 = vmul.f32 %v5807_v47, %v10398_v24  ;;  %v5900_v54 = vmul.f32 %v5799_v34, %v10352_v53  ;;  %v8321_v34 = vld [vmem:[#allocation24 + $0x124] ss:$8 sps:$4 sm:$0xff]   ;;  %v8322_v45 = vld [vmem:[#allocation24 + $0x130] ss:$8 sps:$4 sm:$0xff]   ;;  %v8325_v36 = vld [vmem:[#allocation24 + $0x140] ss:$8 sps:$4 sm:$0xff]  }
 0x98b   : > { %v5848_v60 = vcombine.low %v5832_v44, %v5833_v48  ;;  %v5899_v46 = vmul.f32 %v5795_v2, %v10350_v8  ;;  %v5902_v20 = vmul.f32 %v5807_v47, %v10384_v25  ;;  %v5905_v11 = vmul.f32 %v5819_v29, %v10437_v26  ;;  %v4579_v8 = vld [vmem:[#allocation22] sm:$0xff]  ;;  %v8327_v35 = vld [vmem:[#allocation24 + $0x144] ss:$8 sps:$4 sm:$0xff]   ;;  %v8331_v48 = vld [vmem:[#allocation24 + $0x160] ss:$8 sps:$4 sm:$0xff]  }
 0x98c   : > { %v5872_v33 = vrot.slane %v5850_v58, %v10082_v32  ;;  %v5879_v38 = vrot.slane %v5851_v7, %v10082_v32  ;;  %v5849_v61 = vcombine.low %v5834_v1, %v5835_v51  ;;  %v5901_v6 = vmul.f32 %v5803_v37, %v10382_v27  ;;  %v8316_v2 = vld [vmem:[#allocation24 + $0x110] ss:$8 sps:$4 sm:$0xff]   ;;  %v8319_v37 = vld [vmem:[#allocation24 + $0x120] ss:$8 sps:$4 sm:$0xff]   ;;  %v8324_v47 = vld [vmem:[#allocation24 + $0x134] ss:$8 sps:$4 sm:$0xff]  }
 0x98d   : > { %v5858_v39 = vrot.slane %v5848_v60, %v10082_v32  ;;  %v5904_v55 = vmul.f32 %v5815_v49, %v10421_v5  ;;  %v5903_v31 = vmul.f32 %v5811_v15, %v10419_v28  ;;  %v8330_v41 = vld [vmem:[#allocation24 + $0x154] ss:$8 sps:$4 sm:$0xff]   ;;  %v8333_v44 = vld [vmem:[#allocation24 + $0x164] ss:$8 sps:$4 sm:$0xff]   ;;  %v8334_v58 = vld [vmem:[#allocation24 + $0x170] ss:$8 sps:$4 sm:$0xff]  }
 0x98e   : > { %v5881_v50 = vcombine.low %v5872_v33, %v5879_v38  ;;  %v5865_v57 = vrot.slane %v5849_v61, %v10082_v32  ;;  %v8336_v1 = vld [vmem:[#allocation24 + $0x174] ss:$8 sps:$4 sm:$0xff]   ;;  %v8339_v7 = vld [vmem:[#allocation24 + $0x184] ss:$8 sps:$4 sm:$0xff]   ;;  %v8337_v51 = vld [vmem:[#allocation24 + $0x180] ss:$8 sps:$4 sm:$0xff]  }
 0x98f   : > { %v8340_v60 = vld [vmem:[#allocation24 + $0x190] ss:$8 sps:$4 sm:$0xff]   ;;  %v8348_v33 = vld [vmem:[#allocation24 + $0x1b4] ss:$8 sps:$4 sm:$0xff]   ;;  %v8351_v61 = vld [vmem:[#allocation24 + $0x1c4] ss:$8 sps:$4 sm:$0xff]  }
 0x990   : > { %v5895_v24 = vrot.slane %v5881_v50, %v10082_v32  ;;  %v5880_v53 = vcombine.low %v5858_v39, %v5865_v57  ;;  %v8346_v38 = vld [vmem:[#allocation24 + $0x1b0] ss:$8 sps:$4 sm:$0xff]   ;;  %v8349_v39 = vld [vmem:[#allocation24 + $0x1c0] ss:$8 sps:$4 sm:$0xff]   ;;  %v8357_v57 = vld [vmem:[#allocation24 + $0x1e4] ss:$8 sps:$4 sm:$0xff]  }
 0x991   : > { %v8352_v50 = vld [vmem:[#allocation24 + $0x1d0] ss:$8 sps:$4 sm:$0xff]  }
 0x992   : > { %v5888_v40 = vrot.slane %v5880_v53, %v10082_v32  ;;  %v8360_v53 = vld [vmem:[#allocation24 + $0x1f4] ss:$8 sps:$4 sm:$0xff]  }
 0x994   : > { %v5896_v43 = vcombine.low %v5888_v40, %v5895_v24  ;;  %v8355_v24 = vld [vmem:[#allocation24 + $0x1e0] ss:$8 sps:$4 sm:$0xff]   ;;  %v8358_v40 = vld [vmem:[#allocation24 + $0x1f0] ss:$8 sps:$4 sm:$0xff]  }
 0x996   : > { %v5898_v25 = vsub.f32 %v4579_v8, %v5896_v43  ;;  %v8363_v43 = vld [vmem:[#allocation24 + $0x204] ss:$8 sps:$4 sm:$0xff]  }
 0x998   : > { %v5915_v56 = vrot.slane %v5898_v25, %v9737_v9  ;;  %v5911_v26 = vrot.slane %v5898_v25, %v9719_v63  ;;  %v5923_v59 = vrot.slane %v5898_v25, %v9749_v17  ;;  %v5919_v12 = vrot.slane %v5898_v25, %v9727_v3 }
 0x999   : > { %v5931_v16 = vrot.slane %v5898_v25, %v9744_v14  ;;  %v5927_v32 = vrot.slane %v5898_v25, %v9722_v0  ;;  %v5939_v23 = vrot.slane %v5898_v25, %v9752_v18  ;;  %v5935_v27 = vrot.slane %v5898_v25, %v9730_v4  ;;  %v8313_v18 = vld [vmem:[#allocation24 + $0x100] ss:$8 sps:$4 sm:$0xff]   ;;  %v8318_v4 = vld [vmem:[#allocation24 + $0x114] ss:$8 sps:$4 sm:$0xff]  }
 0x99a   : > { %v5949_v52 = vadd.f32 %v5915_v56, %v5900_v54  ;;  %v5948_v5 = vadd.f32 %v5911_v26, %v5899_v46  ;;  %v5951_v19 = vadd.f32 %v5923_v59, %v5902_v20  ;;  %v10502_v28 = vadd.f32 %v5919_v12, %v5901_v6  ;;  %v8342_v54 = vld [vmem:[#allocation24 + $0x194] ss:$8 sps:$4 sm:$0xff]   ;;  %v8345_v46 = vld [vmem:[#allocation24 + $0x1a4] ss:$8 sps:$4 sm:$0xff]   ;;  %v8343_v20 = vld [vmem:[#allocation24 + $0x1a0] ss:$8 sps:$4 sm:$0xff]  }
 0x99b   : > { %v10504_v10 = vadd.f32 %v5931_v16, %v5904_v55  ;;  %v10506_v21 = vadd.f32 %v5927_v32, %v5903_v31  ;;  %v10508_v17 = vadd.f32 %v5939_v23, %v5906_v42  ;;  %v10510_v3 = vadd.f32 %v5935_v27, %v5905_v11  ;;  %v8328_v42 = vld [vmem:[#allocation24 + $0x150] ss:$8 sps:$4 sm:$0xff]   ;;  %v8354_v11 = vld [vmem:[#allocation24 + $0x1d4] ss:$8 sps:$4 sm:$0xff]   ;;  %v8361_v6 = vld [vmem:[#allocation24 + $0x200] ss:$8 sps:$4 sm:$0xff]  }
 0x99c   : > { %v5957_v14 = vmax.f32 %v5949_v52, 0.0  ;;  %v5956_v15 = vmax.f32 %v5948_v5, 0.0  ;;  %v5959_v0 = vmax.f32 %v5951_v19, 0.0  ;;  %v5958_v8 = vmax.f32 %v10502_v28, 0.0  ;;  %v8366_v31 = vld [vmem:[#allocation24 + $0x214] ss:$8 sps:$4 sm:$0xff]  }
 0x99d   : > { %v5961_v25 = vmax.f32 %v10504_v10, 0.0  ;;  %v8364_v26 = vld [vmem:[#allocation24 + $0x210] ss:$8 sps:$4 sm:$0xff]   ;;  %v8369_v59 = vld [vmem:[#allocation24 + $0x224] ss:$8 sps:$4 sm:$0xff]  }
 0x99e   : > { %v5965_v49 = vpack.c.bf16 %v5957_v14, %v5957_v14  ;;  %v5964_v29 = vpack.c.bf16 %v5956_v15, %v5956_v15  ;;  %v5967_v30 = vpack.c.bf16 %v5959_v0, %v5959_v0  ;;  %v5966_v55 = vpack.c.bf16 %v5958_v8, %v5958_v8  ;;  %v8367_v12 = vld [vmem:[#allocation24 + $0x220] ss:$8 sps:$4 sm:$0xff]   ;;  %v8372_v16 = vld [vmem:[#allocation24 + $0x234] ss:$8 sps:$4 sm:$0xff]   ;;  %v8370_v32 = vld [vmem:[#allocation24 + $0x230] ss:$8 sps:$4 sm:$0xff]  }
 0x99f   : > { %v5969_v56 = vpack.c.bf16 %v5961_v25, %v5961_v25  ;;  %v8375_v23 = vld [vmem:[#allocation24 + $0x244] ss:$8 sps:$4 sm:$0xff]   ;;  %v8373_v27 = vld [vmem:[#allocation24 + $0x240] ss:$8 sps:$4 sm:$0xff]   ;;  %v8378_v52 = vld [vmem:[#allocation24 + $0x254] ss:$8 sps:$4 sm:$0xff]  }
 0x9a0   : > { %6655 = vmatprep.mubr.bf16.mxu0 %v5965_v49  ;;  %v8376_v5 = vld [vmem:[#allocation24 + $0x250] ss:$8 sps:$4 sm:$0xff]   ;;  %v8381_v19 = vld [vmem:[#allocation24 + $0x264] ss:$8 sps:$4 sm:$0xff]   ;;  %v8379_v28 = vld [vmem:[#allocation24 + $0x260] ss:$8 sps:$4 sm:$0xff]  }
 0x9a1   : > { %6656 = vmatmul.mubr.bf16.vlgmr.msra.gmra.mrb[0].mxu0 %v5964_v29  ;;  %v8384_v10 = vld [vmem:[#allocation24 + $0x274] ss:$8 sps:$4 sm:$0xff]   ;;  %v8382_v14 = vld [vmem:[#allocation24 + $0x270] ss:$8 sps:$4 sm:$0xff]   ;;  %v8387_v15 = vld [vmem:[#allocation24 + $0x284] ss:$8 sps:$4 sm:$0xff]  }
 0x9a2   : > { %6665 = vmatpush1.bf16.msra.mxu0 %v8313_v18  ;;  %6696 = vmatprep.mubr.bf16.mxu0 %v5967_v30  ;;  %v8385_v0 = vld [vmem:[#allocation24 + $0x280] ss:$8 sps:$4 sm:$0xff]   ;;  %v8390_v49 = vld [vmem:[#allocation24 + $0x294] ss:$8 sps:$4 sm:$0xff]   ;;  %v8388_v18 = vld [vmem:[#allocation24 + $0x290] ss:$8 sps:$4 sm:$0xff]  }
 0x9a3   : > { %6666 = vmatprep.subr.bf16.mxu0 %v8318_v4  ;;  %v8393_v29 = vld [vmem:[#allocation24 + $0x2a4] ss:$8 sps:$4 sm:$0xff]   ;;  %v8391_v4 = vld [vmem:[#allocation24 + $0x2a0] ss:$8 sps:$4 sm:$0xff]   ;;  %v8396_v30 = vld [vmem:[#allocation24 + $0x2b4] ss:$8 sps:$4 sm:$0xff]  }
 0x9a4   : > { %v8438_v8 = vld [vmem:[#allocation24 + $0x394] ss:$8 sps:$4 sm:$0xff]   ;;  %v8441_v25 = vld [vmem:[#allocation24 + $0x3a4] ss:$8 sps:$4 sm:$0xff]  }
 0x9a6   : > { %6667 = vmatpush1.bf16.msra.mxu0 %v8316_v2  ;;  %v8394_v2 = vld [vmem:[#allocation24 + $0x2b0] ss:$8 sps:$4 sm:$0xff]  }
 0x9a7   : > { %6668 = vmatprep.subr.bf16.mxu0 %v8321_v34  ;;  %v8399_v34 = vld [vmem:[#allocation24 + $0x2c4] ss:$8 sps:$4 sm:$0xff]  }
 0x9aa   : > { %6669 = vmatpush1.bf16.msra.mxu0 %v8319_v37  ;;  %v8397_v37 = vld [vmem:[#allocation24 + $0x2c0] ss:$8 sps:$4 sm:$0xff]  }
 0x9ab   : > { %6670 = vmatprep.subr.bf16.mxu0 %v8324_v47  ;;  %v8402_v47 = vld [vmem:[#allocation24 + $0x2d4] ss:$8 sps:$4 sm:$0xff]  }
 0x9ae   : > { %6671 = vmatpush1.bf16.msra.mxu0 %v8322_v45  ;;  %v8400_v45 = vld [vmem:[#allocation24 + $0x2d0] ss:$8 sps:$4 sm:$0xff]  }
 0x9af   : > { %6672 = vmatprep.subr.bf16.mxu0 %v8327_v35  ;;  %v8405_v35 = vld [vmem:[#allocation24 + $0x2e4] ss:$8 sps:$4 sm:$0xff]  }
 0x9b2   : > { %6673 = vmatpush1.bf16.msra.mxu0 %v8325_v36  ;;  %v8403_v36 = vld [vmem:[#allocation24 + $0x2e0] ss:$8 sps:$4 sm:$0xff]  }
 0x9b3   : > { %6674 = vmatprep.subr.bf16.mxu0 %v8330_v41  ;;  %v8408_v41 = vld [vmem:[#allocation24 + $0x2f4] ss:$8 sps:$4 sm:$0xff]  }
 0x9b6   : > { %6675 = vmatpush1.bf16.msra.mxu0 %v8328_v42  ;;  %v8406_v42 = vld [vmem:[#allocation24 + $0x2f0] ss:$8 sps:$4 sm:$0xff]  }
 0x9b7   : > { %6676 = vmatprep.subr.bf16.mxu0 %v8333_v44  ;;  %v5960_v44 = vmax.f32 %v10506_v21, 0.0  ;;  %v8418_v21 = vld [vmem:[#allocation24 + $0x330] ss:$8 sps:$4 sm:$0xff]  }
 0x9ba   : > { %6677 = vmatpush1.bf16.msra.mxu0 %v8331_v48  ;;  %v8411_v48 = vld [vmem:[#allocation24 + $0x304] ss:$8 sps:$4 sm:$0xff]  }
 0x9bb   : > { %6678 = vmatprep.subr.bf16.mxu0 %v8336_v1  ;;  %v5963_v1 = vmax.f32 %v10508_v17, 0.0  ;;  %v8423_v17 = vld [vmem:[#allocation24 + $0x344] ss:$8 sps:$4 sm:$0xff]  }
 0x9be   : > { %6679 = vmatpush1.bf16.msra.mxu0 %v8334_v58  ;;  %v8409_v58 = vld [vmem:[#allocation24 + $0x300] ss:$8 sps:$4 sm:$0xff]  }
 0x9bf   : > { %6680 = vmatprep.subr.bf16.mxu0 %v8339_v7  ;;  %v5968_v7 = vpack.c.bf16 %v5960_v44, %v5960_v44 }
 0x9c2   : > { %6681 = vmatpush1.bf16.msra.mxu0 %v8337_v51  ;;  %v8414_v51 = vld [vmem:[#allocation24 + $0x314] ss:$8 sps:$4 sm:$0xff]  }
 0x9c3   : > { %6682 = vmatprep.subr.bf16.mxu0 %v8342_v54  ;;  %v5971_v54 = vpack.c.bf16 %v5963_v1, %v5963_v1 }
 0x9c6   : > { %6683 = vmatpush1.bf16.msra.mxu0 %v8340_v60  ;;  %v8412_v60 = vld [vmem:[#allocation24 + $0x310] ss:$8 sps:$4 sm:$0xff]  }
 0x9c7   : > { %6684 = vmatprep.subr.bf16.mxu0 %v8345_v46  ;;  %v8417_v46 = vld [vmem:[#allocation24 + $0x324] ss:$8 sps:$4 sm:$0xff]  }
 0x9ca   : > { %6685 = vmatpush1.bf16.msra.mxu0 %v8343_v20  ;;  %v8415_v20 = vld [vmem:[#allocation24 + $0x320] ss:$8 sps:$4 sm:$0xff]  }
 0x9cb   : > { %6686 = vmatprep.subr.bf16.mxu0 %v8348_v33  ;;  %v8420_v33 = vld [vmem:[#allocation24 + $0x334] ss:$8 sps:$4 sm:$0xff]  }
 0x9ce   : > { %6687 = vmatpush1.bf16.msra.mxu0 %v8346_v38  ;;  %v8421_v38 = vld [vmem:[#allocation24 + $0x340] ss:$8 sps:$4 sm:$0xff]  }
 0x9cf   : > { %6688 = vmatprep.subr.bf16.mxu0 %v8351_v61  ;;  %v8426_v61 = vld [vmem:[#allocation24 + $0x354] ss:$8 sps:$4 sm:$0xff]  }
 0x9d2   : > { %6689 = vmatpush1.bf16.msra.mxu0 %v8349_v39  ;;  %v8424_v39 = vld [vmem:[#allocation24 + $0x350] ss:$8 sps:$4 sm:$0xff]  }
 0x9d3   : > { %6690 = vmatprep.subr.bf16.mxu0 %v8354_v11  ;;  %v8429_v11 = vld [vmem:[#allocation24 + $0x364] ss:$8 sps:$4 sm:$0xff]  }
 0x9d6   : > { %6691 = vmatpush1.bf16.msra.mxu0 %v8352_v50  ;;  %v8427_v50 = vld [vmem:[#allocation24 + $0x360] ss:$8 sps:$4 sm:$0xff]  }
 0x9d7   : > { %6692 = vmatprep.subr.bf16.mxu0 %v8357_v57  ;;  %v8432_v57 = vld [vmem:[#allocation24 + $0x374] ss:$8 sps:$4 sm:$0xff]  }
 0x9da   : > { %6693 = vmatpush1.bf16.msra.mxu0 %v8355_v24  ;;  %v8430_v24 = vld [vmem:[#allocation24 + $0x370] ss:$8 sps:$4 sm:$0xff]  }
 0x9db   : > { %6694 = vmatprep.subr.bf16.mxu0 %v8360_v53  ;;  %v8435_v53 = vld [vmem:[#allocation24 + $0x384] ss:$8 sps:$4 sm:$0xff]  }
 0x9de   : > { %6695 = vmatpush1.bf16.msra.mxu0 %v8358_v40  ;;  %v8433_v40 = vld [vmem:[#allocation24 + $0x380] ss:$8 sps:$4 sm:$0xff]  }
 0x9df   : > { %6705 = vmatprep.subr.bf16.mxu0 %v8363_v43  ;;  %v8436_v43 = vld [vmem:[#allocation24 + $0x390] ss:$8 sps:$4 sm:$0xff]  }
 0x9e1   : > { %6697 = vmatmul.mubr.bf16.vlgmr.msra.gmra.mrb[0].mxu0 %v5966_v55  ;;  %v8444_v55 = vld [vmem:[#allocation24 + $0x3b4] ss:$8 sps:$4 sm:$0xff]  }
 0x9e2   : > { %6706 = vmatpush1.bf16.msra.mxu0 %v8361_v6  ;;  %6737 = vmatprep.mubr.bf16.mxu0 %v5969_v56  ;;  %v8439_v6 = vld [vmem:[#allocation24 + $0x3a0] ss:$8 sps:$4 sm:$0xff]   ;;  %v8447_v56 = vld [vmem:[#allocation24 + $0x3c4] ss:$8 sps:$4 sm:$0xff]  }
 0x9e3   : > { %6707 = vmatprep.subr.bf16.mxu0 %v8366_v31  ;;  %v8442_v31 = vld [vmem:[#allocation24 + $0x3b0] ss:$8 sps:$4 sm:$0xff]  }
 0x9e6   : > { %6708 = vmatpush1.bf16.msra.mxu0 %v8364_v26  ;;  %v8445_v26 = vld [vmem:[#allocation24 + $0x3c0] ss:$8 sps:$4 sm:$0xff]  }
 0x9e7   : > { %6709 = vmatprep.subr.bf16.mxu0 %v8369_v59  ;;  %v8450_v59 = vld [vmem:[#allocation24 + $0x3d4] ss:$8 sps:$4 sm:$0xff]  }
 0x9ea   : > { %6710 = vmatpush1.bf16.msra.mxu0 %v8367_v12  ;;  %v8448_v12 = vld [vmem:[#allocation24 + $0x3d0] ss:$8 sps:$4 sm:$0xff]  }
 0x9eb   : > { %6711 = vmatprep.subr.bf16.mxu0 %v8372_v16  ;;  %v8453_v16 = vld [vmem:[#allocation24 + $0x3e4] ss:$8 sps:$4 sm:$0xff]  }
 0x9ee   : > { %6712 = vmatpush1.bf16.msra.mxu0 %v8370_v32  ;;  %v8451_v32 = vld [vmem:[#allocation24 + $0x3e0] ss:$8 sps:$4 sm:$0xff]  }
 0x9ef   : > { %6713 = vmatprep.subr.bf16.mxu0 %v8375_v23  ;;  %v8456_v23 = vld [vmem:[#allocation24 + $0x3f4] ss:$8 sps:$4 sm:$0xff]  }
 0x9f2   : > { %6714 = vmatpush1.bf16.msra.mxu0 %v8373_v27  ;;  %v8454_v27 = vld [vmem:[#allocation24 + $0x3f0] ss:$8 sps:$4 sm:$0xff]  }
 0x9f3   : > { %6715 = vmatprep.subr.bf16.mxu0 %v8378_v52  ;;  %v5962_v52 = vmax.f32 %v10510_v3, 0.0 }
 0x9f6   : > { %6716 = vmatpush1.bf16.msra.mxu0 %v8376_v5  ;;  %v5970_v5 = vpack.c.bf16 %v5962_v52, %v5962_v52 }
 0x9f7   : > { %6717 = vmatprep.subr.bf16.mxu0 %v8381_v19  ;;  %v4708_v19 = vld [vmem:[#allocation25] sm:$0x3] }
 0x9fa   : > { %6718 = vmatpush1.bf16.msra.mxu0 %v8379_v28  ;;  %v5976_v28 = vrot.slane %v4708_v19, %v9719_v63 }
 0x9fb   : > { %6719 = vmatprep.subr.bf16.mxu0 %v8384_v10  ;;  %v5980_v10 = vrot.slane %v4708_v19, %v9737_v9 }
 0x9fe   : > { %6720 = vmatpush1.bf16.msra.mxu0 %v8382_v14 }
 0x9ff   : > { %6721 = vmatprep.subr.bf16.mxu0 %v8387_v15 }
 0xa02   : > { %6722 = vmatpush1.bf16.msra.mxu0 %v8385_v0 }
 0xa03   : > { %6723 = vmatprep.subr.bf16.mxu0 %v8390_v49 }
 0xa06   : > { %6724 = vmatpush1.bf16.msra.mxu0 %v8388_v18 }
 0xa07   : > { %6725 = vmatprep.subr.bf16.mxu0 %v8393_v29 }
 0xa0a   : > { %6726 = vmatpush1.bf16.msra.mxu0 %v8391_v4 }
 0xa0b   : > { %6727 = vmatprep.subr.bf16.mxu0 %v8396_v30 }
 0xa0e   : > { %6728 = vmatpush1.bf16.msra.mxu0 %v8394_v2 }
 0xa0f   : > { %6729 = vmatprep.subr.bf16.mxu0 %v8399_v34 }
 0xa12   : > { %6730 = vmatpush1.bf16.msra.mxu0 %v8397_v37 }
 0xa13   : > { %6731 = vmatprep.subr.bf16.mxu0 %v8402_v47 }
 0xa16   : > { %6732 = vmatpush1.bf16.msra.mxu0 %v8400_v45 }
 0xa17   : > { %6733 = vmatprep.subr.bf16.mxu0 %v8405_v35 }
 0xa1a   : > { %6734 = vmatpush1.bf16.msra.mxu0 %v8403_v36 }
 0xa1b   : > { %6735 = vmatprep.subr.bf16.mxu0 %v8408_v41 }
 0xa1e   : > { %6736 = vmatpush1.bf16.msra.mxu0 %v8406_v42 }
 0xa1f   : > { %6746 = vmatprep.subr.bf16.mxu0 %v8411_v48 }
 0xa21   : > { %6738 = vmatmul.mubr.bf16.vlgmr.msra.gmra.mrb[0].mxu0 %v5968_v7 }
 0xa22   : > { %6747 = vmatpush1.bf16.msra.mxu0 %v8409_v58  ;;  %6778 = vmatprep.mubr.bf16.mxu0 %v5971_v54 }
 0xa23   : > { %6748 = vmatprep.subr.bf16.mxu0 %v8414_v51 }
 0xa26   : > { %6749 = vmatpush1.bf16.msra.mxu0 %v8412_v60 }
 0xa27   : > { %6750 = vmatprep.subr.bf16.mxu0 %v8417_v46 }
 0xa2a   : > { %6751 = vmatpush1.bf16.msra.mxu0 %v8415_v20 }
 0xa2b   : > { %6752 = vmatprep.subr.bf16.mxu0 %v8420_v33 }
 0xa2e   : > { %6753 = vmatpush1.bf16.msra.mxu0 %v8418_v21 }
 0xa2f   : > { %6754 = vmatprep.subr.bf16.mxu0 %v8423_v17 }
 0xa32   : > { %6755 = vmatpush1.bf16.msra.mxu0 %v8421_v38 }
 0xa33   : > { %6756 = vmatprep.subr.bf16.mxu0 %v8426_v61 }
 0xa36   : > { %6757 = vmatpush1.bf16.msra.mxu0 %v8424_v39 }
 0xa37   : > { %6758 = vmatprep.subr.bf16.mxu0 %v8429_v11 }
 0xa3a   : > { %6759 = vmatpush1.bf16.msra.mxu0 %v8427_v50 }
 0xa3b   : > { %6760 = vmatprep.subr.bf16.mxu0 %v8432_v57 }
 0xa3e   : > { %6761 = vmatpush1.bf16.msra.mxu0 %v8430_v24 }
 0xa3f   : > { %6762 = vmatprep.subr.bf16.mxu0 %v8435_v53 }
 0xa42   : > { %6763 = vmatpush1.bf16.msra.mxu0 %v8433_v40 }
 0xa43   : > { %6764 = vmatprep.subr.bf16.mxu0 %v8438_v8 }
 0xa46   : > { %6765 = vmatpush1.bf16.msra.mxu0 %v8436_v43 }
 0xa47   : > { %6766 = vmatprep.subr.bf16.mxu0 %v8441_v25 }
 0xa4a   : > { %6767 = vmatpush1.bf16.msra.mxu0 %v8439_v6 }
 0xa4b   : > { %6768 = vmatprep.subr.bf16.mxu0 %v8444_v55 }
 0xa4e   : > { %6769 = vmatpush1.bf16.msra.mxu0 %v8442_v31 }
 0xa4f   : > { %6770 = vmatprep.subr.bf16.mxu0 %v8447_v56 }
 0xa52   : > { %6771 = vmatpush1.bf16.msra.mxu0 %v8445_v26 }
 0xa53   : > { %6772 = vmatprep.subr.bf16.mxu0 %v8450_v59 }
 0xa56   : > { %6773 = vmatpush1.bf16.msra.mxu0 %v8448_v12 }
 0xa57   : > { %6774 = vmatprep.subr.bf16.mxu0 %v8453_v16 }
 0xa5a   : > { %6775 = vmatpush1.bf16.msra.mxu0 %v8451_v32 }
 0xa5b   : > { %6776 = vmatprep.subr.bf16.mxu0 %v8456_v23 }
 0xa5e   : > { %6777 = vmatpush1.bf16.msra.mxu0 %v8454_v27 }
 0xa61   : > { %6779 = vmatmul.mubr.bf16.vlgmr.msra.gmra.mrb[0].mxu0 %v5970_v5 }
 0xb34   : > { %v6780_v14 = vpop.f32.mrb[0].mxu0 }
 0xb35   : > { %v7882_v15 = vadd.f32 %v6780_v14, %v5976_v28  ;;  %v6782_v0 = vpop.f32.mrb[1].mxu0 }
 0xb36   : > { %v7883_v49 = vadd.f32 %v6782_v0, %v5980_v10  ;;  %v6784_v18 = vpop.f32.mrb[2].mxu0 }
 0xb37   : > { %v6785_v29 = vpop.f32.mrb[3].mxu0 }
 0xb38   : > { %v6789_v4 = vcombine.low %v7882_v15, %v7883_v49 }
 0xb3a   : > { %7830 = vst.sshfl [vmem:[#allocation3] sm:$0x33 pattern:$0x76325410] %v6789_v4 }
 0xb3b PF: > { %6801 = sbr.rel (%p7188_p9) target bundleno = 3072 (0xc00), region = 156  ;;  %v9006_v30 = vmov (!%p7188_p9), 1983009808   ;;  %v6833_v63 = vcombine.low (!%p7188_p9), %v10322_v13, %v10324_v22  ;;  %v6822_v45 = vmul.f32 (!%p7188_p9), %v10322_v13, %v10322_v13  ;;  %v6823_v35 = vmul.f32 (!%p7188_p9), %v10324_v22, %v10324_v22 }
 0xb3c   : > { %v6806_v2 = vunpack.c.l.s4 (!%p7188_p9), %v9006_v30  ;;  %vm6871_vm7 = vcmask (!%p7188_p9), 0  }
 0xb3d   : > { %v6824_v1 = vsel (!%p7188_p9), %vm3213_vm6, %v6822_v45, 0.0  ;;  %v6825_v58 = vsel (!%p7188_p9), %vm3213_vm6, %v6823_v35, 0.0 }
 0xb3e   : > { %v6807_v37 = vunpack.c.0.s8 (!%p7188_p9), %v6806_v2  ;;  %v6826_v13 = vadd.f32 (!%p7188_p9), %v6825_v58, %v6824_v1 }
 0xb40   : > { %v6810_v9 = vsub.s32 (!%p7188_p9), %v6807_v37, %v9716_v62 }
 0xb41   : > { %v6802_v3 = vld [vmem:[#allocation3] sm:$0xf] (!%p7188_p9) }
 0xb42   : > { %v6803_v34 = vmul.f32 %v6802_v3, %v6802_v3  ;;  %v6840_v36 = vrot.slane %v6833_v63, %v6810_v9 }
 0xb44   : > { %v6811_v47 = vrot.slane %v6803_v34, %v6810_v9  ;;  %v6842_v44 = vmul.f32 %v6840_v36, %v6802_v3 }
 0xb46   : > { %v6812_v41 = vcombine.high %v6811_v47, %v6811_v47  ;;  %v6815_v42 = vsel %vm3213_vm6, %v6811_v47, 0.0  ;;  %v6850_v7 = vrot.slane %v6842_v44, %v6810_v9 }
 0xb48   : > { %v6816_v48 = vsel %vm3213_vm6, %v6812_v41, 0.0  ;;  %v6851_v51 = vcombine.high %v6850_v7, %v6850_v7  ;;  %v6854_v54 = vsel %vm3213_vm6, %v6850_v7, 0.0 }
 0xb49   : > { %v6817_v62 = vadd.f32 %v6816_v48, %v6815_v42 }
 0xb4a   : > { %v6855_v22 = vsel %vm3213_vm6, %v6851_v51, 0.0 }
 0xb4b   : > { %6818 = vadd.xlane.f32.xlu0 %v6817_v62  ;;  %v6856_v60 = vadd.f32 %v6855_v22, %v6854_v54 }
 0xb4d   : > { %6857 = vadd.xlane.f32.xlu1 %v6856_v60 }
 0xb4f   : > { %6827 = vadd.xlane.f32.xlu0 %v6826_v13 }
 0xbd8   : > { %v6819_v46 = vpop.xlane.xlu0 %6818 }
 0xbd9   : > { %v6820_v20 = vmax.f32 %v6819_v46, 1e-24 }
 0xbda   : > { %v6858_v38 = vpop.xlane.xlu1 %6857 }
 0xbdb   : > { %8473 = vrsqrt.f32 %v6820_v20 }
 0xbdc   : > { %v6828_v33 = vpop.xlane.xlu0 %6827 }
 0xbdd   : > { %v6829_v21 = vmax.f32 %v6828_v33, 1e-24 }
 0xbdf   : > { %8475 = vrsqrt.f32 %v6829_v21 }
 0xbe5   : > { %v8474_v17 = vpop.eup %8473 }
 0xbe6   : > { %v6859_v61 = vmul.f32 %v8474_v17, %v6858_v38 }
 0xbe9   : > { %v8476_v39 = vpop.eup %8475 }
 0xbea   : > { %v6860_v11 = vmul.f32 %v8476_v39, %v6859_v61 }
 0xbec   : > { %v6861_v50 = vsel %vm3213_vm6, %v6860_v11, 0.0 }
 0xbed   : > { %v6862_v57 = vrot.slane %v6861_v50, 4 }
 0xbef   : > { %v6863_v24 = vadd.f32 %v6862_v57, %v6861_v50 }
 0xbf1   : > { %v6864_v53 = vrot.slane %v6863_v24, 2 }
 0xbf3   : > { %v6865_v40 = vadd.f32 %v6864_v53, %v6863_v24 }
 0xbf5   : > { %v6866_v8 = vrot.slane %v6865_v40, 1 }
 0xbf7   : > { %v6867_v43 = vadd.f32 %v6866_v8, %v6865_v40 }
 0xbf9   : > { %v6868_v25 = vmul.f32 0.5, %v6867_v43 }
 0xbfb   : > { %v6869_v6 = vmul.f32 2.0, %v6868_v25 }
 0xbfd   : > { %v6870_v55 = vsub.f32 2.0, %v6869_v6 }
 0xbff   : > { %6872 = vst.msk [vmem:[#allocation27] sm:$0x1] %vm6871_vm7, %v6870_v55 }
 0xc00 PF: > { %p7997_p8 = scmp.eq.s32.totalorder %s9114_s27, 1  ;;  %s9007_s9 = smov [#allocation27]  }
 0xc01   : > { %s6880_s13 = sshll.u32 %s9007_s9, 4  ;;  %s6881_s13 = int_to_ptr.vmem [resolvable:$true] %s6880_s13 }
 0xc02   : > { %s8885_s3 = scalar_lea.vmem %s6881_s13, 16  ;;  %s8891_s18 = scalar_lea.vmem %s6881_s13, 32 }
 0xc03   : > { %p8886_p5 = scmp.ne.s32.totalorder %s6881_s13, %s8885_s3  ;;  %p8892_p1 = scmp.lt.s32.totalorder %s6881_s13, %s6881_s13 }
 0xc04   : > { %p8893_p10 = scmp.lt.s32.totalorder %s8891_s18, %s8885_s3 }
 0xc05   : > { %p8887_p12 = pnand %p8886_p5, %p7997_p8 }
 0xc06   : > { %p8894_p3 = por %p8893_p10, %p8892_p1 }
 0xc07   : > { %p8888_p7 = pneg %p8887_p12 }
 0xc09   : > { %p8895_p2 = pnand %p8894_p3, %p8888_p7 }
 0xc0b   : > { %8898 = shalt.err (!%p8895_p2)
}
 0xc0c   : > { %s10680_s25 = sld [smem:[#allocation54_spill]] }
 0xc12   : > { %s8899_s10 = scalar_lea.hbm %s10680_s25, 16 }
 0xc13   : > { %p8900_p6 = scmp.ne.s32.totalorder %s10680_s25, %s8899_s10  ;;  %p8905_p11 = scmp.lt.u32.totalorder %s8899_s10, %s10680_s25 }
 0xc15   : > { %p8901_p13 = pnand %p8900_p6, %p7997_p8 }
 0xc17   : > { %p8902_p0 = pneg %p8901_p13 }
 0xc19   : > { %p8907_p9 = pnand %p8905_p11, %p8902_p0 }
 0xc1b   : > { %8910 = shalt.err (!%p8907_p9)
}
 0xc1c   : > { %7937 = dma.vmem_to_hbm [thread:$0]  (%p7997_p8), %s6881_s13, 16, %s10680_s25, [#allocation6]  }
 0xc1d   : > { %8964 = dma.done.wait (%p7997_p8), [#allocation6], 16  }
 0xc1e   : > { %8966 = vsyncadd (%p7997_p8), [#allocation6], 4294967280 }
 0xc1f PF: > { %s10681_s16 = sld [smem:[#allocation38_spill]]  ;;  %s10682_s23 = sld [smem:[#allocation40_spill]] }
 0xc20   : > { %p42_p4 = scmp.ge.s32.totalorder %s9217_s6, 4   ;;  %s10683_s21 = smov %s8973_s22 }
 0xc21   : > { %s10685_s24 = smov %s9217_s6 }
 0xc22   :  { %44 = sbr.rel (!%p42_p4) target bundleno = 30 (0x1e), region = 246 }
 0xc25   : > { %s10684_s22 = smov %s10681_s16 }
 0xc29   :  { %6893 = vsyncpa [#allocation5], 1 }
 0xc2a   :  { %6895 = vsyncpa [#allocation5 + $0x1], 1 }
 0xc2b   :  { %6896 = vsyncpa [#allocation8], 1 }
 0xc2c   :  { %6898 = vsyncpa [#allocation8 + $0x1], 1 }
 0xc2d   :  { %6899 = vsyncpa [#allocation11], 1 }
 0xc2e   :  { %6901 = vsyncpa [#allocation11 + $0x1], 1 }
 0xc2f   :  { %6902 = vsyncpa [#allocation14], 1 }
 0xc30   :  { %6904 = vsyncpa [#allocation14 + $0x1], 1 }
 0xc31   :  { %6905 = vsyncpa [#allocation17], 1 }
 0xc32   :  { %6907 = vsyncpa [#allocation17 + $0x1], 1 }
 0xc33   :  { %6908 = vsyncpa [#allocation20], 1 }
 0xc34   :  { %6909 = vsyncpa [#allocation23], 1 }
 0xc35   :  { %6910 = vsyncpa [#allocation26], 1 }
 0xc36   :  { %6911 = vsyncpa [#allocation6], 1 }
 0xc37   :  { %6913 = vsyncpa [#allocation6 + $0x1], 1 }

</bundles_post_ra>
